<compile_context>
chip_gen: v6e
topology: v6e:2x2x1
jax: 0.10.0
libtpu: 0.0.40
codegen_flags: <defaults>
</compile_context>

<pallas_src>
import functools

import jax
import jax.numpy as jnp
from jax.experimental import pallas as pl
from jax.experimental.pallas import tpu as pltpu

# ---- hyper-parameters mirroring transformer_v2.py -------------------------
INPUT_SIZE = 5          # ['open', 'high', 'low', 'close', 'volume']
D_MODEL = 128
NHEAD = 8
NUM_LAYERS = 4
DIM_FF = 512
OUTPUT_SIZE = 2
LN_EPS = 1e-5
HEAD_DIM = D_MODEL // NHEAD


# ---------------------------------------------------------------------------
# Kernel helpers
# ---------------------------------------------------------------------------
def _layer_norm(x2, gamma, beta):
    mu = jnp.mean(x2, axis=-1, keepdims=True)
    xc = x2 - mu
    var = jnp.mean(xc * xc, axis=-1, keepdims=True)
    return xc * jax.lax.rsqrt(var + LN_EPS) * gamma + beta


def _encoder_layer(x2, e_fwd, e_bwd, wqkv, bqkv, wo, bo,
                   w1, b1, w2, b2, g1, be1, g2, be2, *, L, Sb):
    """One nn.TransformerEncoderLayer (post-norm, relu, eval) on (L*Sb, D) rows.

    Row i = l*Sb + s  <->  (sequence position l, effective-batch column s).
    """
    D = D_MODEL
    qkv = jnp.dot(x2.astype(jnp.bfloat16), wqkv,
                  preferred_element_type=jnp.float32) + bqkv          # (L*Sb, 3D)
    q2 = qkv[:, 0 * D:1 * D]                       # 128-aligned lane slices
    k2 = qkv[:, 1 * D:2 * D]
    v2 = qkv[:, 2 * D:3 * D]

    # ---- ONE score matmul for all (l, m) pairs; rows ordered (l, m, s) ------
    qk = jnp.concatenate(
        [q2[l * Sb:(l + 1) * Sb, :] * k2[m * Sb:(m + 1) * Sb, :]
         for l in range(L) for m in range(L)], axis=0)                 # (L*L*Sb, D)
    scores = jnp.dot(qk.astype(jnp.bfloat16), e_fwd,                   # scale pre-folded
                     preferred_element_type=jnp.float32)               # (L*L*Sb, H)

    # ---- softmax over key position m (tiny static loop, L == B) -------------
    pw_blocks = []
    for l in range(L):
        s_lm = [scores[(l * L + m) * Sb:(l * L + m + 1) * Sb, :] for m in range(L)]
        smax = s_lm[0]
        for sc in s_lm[1:]:
            smax = jnp.maximum(smax, sc)
        e_lm = [jnp.exp(sc - smax) for sc in s_lm]
        denom = e_lm[0]
        for ev in e_lm[1:]:
            denom = denom + ev
        inv = pl.reciprocal(denom, approx=True)                        # EUP slot
        pw_blocks.extend([ev * inv for ev in e_lm])
    pw = jnp.concatenate(pw_blocks, axis=0)                            # (L*L*Sb, H)

    # ---- ONE broadcast matmul back onto head lanes, weight V, reduce over m -
    wb = jnp.dot(pw.astype(jnp.bfloat16), e_bwd,
                 preferred_element_type=jnp.float32)                   # (L*L*Sb, D)
    weighted = wb * jnp.concatenate([v2] * L, axis=0)                  # row (l,m,s) uses v2[m,s]
    attn_blocks = []
    for l in range(L):
        acc = weighted[(l * L) * Sb:(l * L + 1) * Sb, :]
        for m in range(1, L):
            acc = acc + weighted[(l * L + m) * Sb:(l * L + m + 1) * Sb, :]
        attn_blocks.append(acc)
    attn = jnp.concatenate(attn_blocks, axis=0)                        # (L*Sb, D)

    attn = jnp.dot(attn.astype(jnp.bfloat16), wo,
                   preferred_element_type=jnp.float32) + bo
    h1 = _layer_norm(x2 + attn, g1, be1)                               # dropout = id (eval)
    ff = jnp.maximum(
        jnp.dot(h1.astype(jnp.bfloat16), w1,
                preferred_element_type=jnp.float32) + b1, 0.0)
    ff = jnp.dot(ff.astype(jnp.bfloat16), w2,
                 preferred_element_type=jnp.float32) + b2
    return _layer_norm(h1 + ff, g2, be2)


# ---------------------------------------------------------------------------
# Kernel: whole forward pass, single invocation, everything VMEM-resident
# ---------------------------------------------------------------------------
def fused_forward_kernel(
        x_ref, emb_w_ref, emb_b_ref, convw_ref, convb_ref,
        e_fwd_ref, e_bwd_ref, fcw_ref, fcb_ref,
        wqkv_ref, bqkv_ref, wo_ref, bo_ref,
        w1_ref, b1_ref, w2_ref, b2_ref,
        g1_ref, be1_ref, g2_ref, be2_ref,
        out_ref, *, B, S):
    D = D_MODEL
    BS = B * S                     # activation rows, ordered b*S + s
    L, Sb = B, S                   # batch_first=False quirk: seq axis = B, batch = S

    # ---- embedding Linear + Conv1d(k=3, pad=1): one MXU pass over [W0|W1|W2] -
    emb = jnp.dot(x_ref[...].astype(jnp.bfloat16), emb_w_ref[...],
                  preferred_element_type=jnp.float32) + emb_b_ref[...]     # (BS, D)
    taps = jnp.dot(emb.astype(jnp.bfloat16), convw_ref[...],
                   preferred_element_type=jnp.float32)                     # (BS, 3D)
    t0 = taps[:, 0 * D:1 * D]      # W0 . emb[s]   (to be shifted to s-1 position)
    t1 = taps[:, 1 * D:2 * D]      # W1 . emb[s]
    t2 = taps[:, 2 * D:3 * D]      # W2 . emb[s]   (to be shifted to s+1 position)

    # within-sequence position of every flattened row (no cross-batch leakage:
    # the rolled rows that wrap across a batch boundary are exactly the masked ones)
    pos = jax.lax.broadcasted_iota(jnp.int32, (B, S, D), 1).reshape(BS, D)
    prev = jnp.where(pos != 0,
                     pltpu.roll(t0, shift=1, axis=0), 0.0)       # W0 . emb[s-1]
    nxt = jnp.where(pos != S - 1,
                    pltpu.roll(t2, shift=BS - 1, axis=0), 0.0)   # W2 . emb[s+1]
    h = t1 + prev + nxt + convb_ref[...]                         # (BS, D) f32

    # ---- NUM_LAYERS encoder layers, statically unrolled ----------------------
    e_fwd = e_fwd_ref[...]
    e_bwd = e_bwd_ref[...]
    for layer in range(NUM_LAYERS):
        h = _encoder_layer(
            h, e_fwd, e_bwd,
            wqkv_ref[layer], bqkv_ref[layer], wo_ref[layer], bo_ref[layer],
            w1_ref[layer], b1_ref[layer], w2_ref[layer], b2_ref[layer],
            g1_ref[layer], be1_ref[layer], g2_ref[layer], be2_ref[layer],
            L=L, Sb=Sb)

    # ---- final fc on ALL rows (linear, so it commutes with the x[:, -1, :]
    #      selection); lane-dense, sublane-aligned (BS, 128) unmasked store.
    out_ref[...] = jnp.dot(h.astype(jnp.bfloat16), fcw_ref[...],
                           preferred_element_type=jnp.float32) + fcb_ref[...]


# ---------------------------------------------------------------------------
# Deterministic parameter initialization (PyTorch-shaped, synthetic weights)
# ---------------------------------------------------------------------------
def init_params(key):
    keys = iter(jax.random.split(key, 64))

    def w(shape, scale=0.05):
        return jax.random.normal(next(keys), shape, jnp.float32) * scale

    D, FF = D_MODEL, DIM_FF
    params = {
        'emb_w': w((D, INPUT_SIZE)),        # nn.Linear weight: (out, in)
        'emb_b': w((D,)),
        'conv_w': w((D, D, 3)),             # nn.Conv1d weight: (out, in, k)
        'conv_b': w((D,)),
        'fc_w': w((OUTPUT_SIZE, D)),
        'fc_b': w((OUTPUT_SIZE,)),
        'layers': [],
    }
    for _ in range(NUM_LAYERS):
        params['layers'].append(dict(
            wq=w((D, D)), wk=w((D, D)), wv=w((D, D)),     # in_proj split in 3
            bq=w((D,)), bk=w((D,)), bv=w((D,)),
            wo=w((D, D)), bo=w((D,)),
            w1=w((FF, D)), b1=w((FF,)),
            w2=w((D, FF)), b2=w((D,)),
            g1=jnp.ones((D,), jnp.float32), be1=jnp.zeros((D,), jnp.float32),
            g2=jnp.ones((D,), jnp.float32), be2=jnp.zeros((D,), jnp.float32),
        ))
    return params


# ---------------------------------------------------------------------------
# One-time parameter preprocessing (transposes / packing / bf16 casts hoisted)
# ---------------------------------------------------------------------------
def preprocess_params(params):
    D = D_MODEL
    scale = 1.0 / float(HEAD_DIM) ** 0.5

    wc = params['conv_w']                                        # (D_out, D_in, 3)
    conv_cat = jnp.concatenate(
        [wc[:, :, 0].T, wc[:, :, 1].T, wc[:, :, 2].T], axis=1).astype(jnp.bfloat16)

    head_ind = (jnp.arange(D)[:, None] // HEAD_DIM
                == jnp.arange(NHEAD)[None, :]).astype(jnp.float32)   # (D, H)
    e_fwd = (head_ind * scale).astype(jnp.bfloat16)     # scale folded; exact in bf16
    e_bwd = head_ind.T.astype(jnp.bfloat16)             # (H, D) 0/1 broadcast matrix

    emb_w = jnp.zeros((D, D), jnp.float32).at[:INPUT_SIZE, :].set(
        params['emb_w'].T).astype(jnp.bfloat16)                  # K padded to 128
    fc_w = jnp.zeros((D, 128), jnp.float32).at[:, :OUTPUT_SIZE].set(
        params['fc_w'].T).astype(jnp.bfloat16)                   # lane padded
    fc_b = jnp.zeros((1, 128), jnp.float32).at[0, :OUTPUT_SIZE].set(params['fc_b'])

    def stack(fn):
        return jnp.stack([fn(lp) for lp in params['layers']], axis=0)

    return dict(
        emb_w=emb_w,
        emb_b=params['emb_b'][None, :],
        conv_cat=conv_cat,
        conv_b=params['conv_b'][None, :],
        e_fwd=e_fwd, e_bwd=e_bwd,
        fc_w=fc_w, fc_b=fc_b,
        wqkv=stack(lambda lp: jnp.concatenate(
            [lp['wq'].T, lp['wk'].T, lp['wv'].T], axis=1)).astype(jnp.bfloat16),
        bqkv=stack(lambda lp: jnp.concatenate(
            [lp['bq'], lp['bk'], lp['bv']])[None, :]),
        wo=stack(lambda lp: lp['wo'].T).astype(jnp.bfloat16),
        bo=stack(lambda lp: lp['bo'][None, :]),
        w1=stack(lambda lp: lp['w1'].T).astype(jnp.bfloat16),
        b1=stack(lambda lp: lp['b1'][None, :]),
        w2=stack(lambda lp: lp['w2'].T).astype(jnp.bfloat16),
        b2=stack(lambda lp: lp['b2'][None, :]),
        g1=stack(lambda lp: lp['g1'][None, :]),
        be1=stack(lambda lp: lp['be1'][None, :]),
        g2=stack(lambda lp: lp['g2'][None, :]),
        be2=stack(lambda lp: lp['be2'][None, :]),
    )


# ---------------------------------------------------------------------------
# Forward pass wrapper: ONE pallas_call, no grid, whole arrays VMEM-resident
# ---------------------------------------------------------------------------
@jax.jit
def transformer_cnn_forward(x, pp):
    B, S, F = x.shape
    BS = B * S
    # flatten + lane-pad the input host/XLA-side so the kernel block is aligned
    x_pad = jnp.zeros((BS, D_MODEL), jnp.float32).at[:, :F].set(x.reshape(BS, F))

    kernel = functools.partial(fused_forward_kernel, B=B, S=S)
    out_all = pl.pallas_call(
        kernel,
        out_shape=jax.ShapeDtypeStruct((BS, 128), jnp.float32),
    )(x_pad, pp['emb_w'], pp['emb_b'], pp['conv_cat'], pp['conv_b'],
      pp['e_fwd'], pp['e_bwd'], pp['fc_w'], pp['fc_b'],
      pp['wqkv'], pp['bqkv'], pp['wo'], pp['bo'],
      pp['w1'], pp['b1'], pp['w2'], pp['b2'],
      pp['g1'], pp['be1'], pp['g2'], pp['be2'])

    # rows b*S + (S-1)  ==  PyTorch x[:, -1, :]
    return out_all[S - 1::S, :OUTPUT_SIZE]


# ---------------------------------------------------------------------------
# Pure-JAX f32 reference (PyTorch semantics incl. batch_first=False quirk)
# ---------------------------------------------------------------------------
def reference_forward(x, params):
    D = D_MODEL

    def ln(v, g, b):
        mu = jnp.mean(v, axis=-1, keepdims=True)
        vc = v - mu
        var = jnp.mean(vc * vc, axis=-1, keepdims=True)
        return vc * jax.lax.rsqrt(var + LN_EPS) * g + b

    emb = jnp.einsum('bsf,df->bsd', x, params['emb_w']) + params['emb_b']
    w = params['conv_w']
    xp = jnp.pad(emb, ((0, 0), (1, 1), (0, 0)))
    conv = (jnp.einsum('bsc,oc->bso', xp[:, :-2], w[:, :, 0])
            + jnp.einsum('bsc,oc->bso', xp[:, 1:-1], w[:, :, 1])
            + jnp.einsum('bsc,oc->bso', xp[:, 2:], w[:, :, 2])
            + params['conv_b'])

    h = conv                       # (B,S,D) interpreted as (seq=B, batch=S, D)
    for lp in params['layers']:
        q = jnp.einsum('lnd,ed->lne', h, lp['wq']) + lp['bq']
        k = jnp.einsum('lnd,ed->lne', h, lp['wk']) + lp['bk']
        v = jnp.einsum('lnd,ed->lne', h, lp['wv']) + lp['bv']
        L, N = h.shape[0], h.shape[1]
        qh = q.reshape(L, N, NHEAD, HEAD_DIM)
        kh = k.reshape(L, N, NHEAD, HEAD_DIM)
        vh = v.reshape(L, N, NHEAD, HEAD_DIM)
        sc = jnp.einsum('lnhd,mnhd->nhlm', qh, kh) / (HEAD_DIM ** 0.5)
        p = jax.nn.softmax(sc, axis=-1)
        o = jnp.einsum('nhlm,mnhd->lnhd', p, vh).reshape(L, N, D)
        o = jnp.einsum('lnd,ed->lne', o, lp['wo']) + lp['bo']
        h1 = ln(h + o, lp['g1'], lp['be1'])
        ff = jax.nn.relu(jnp.einsum('lnd,fd->lnf', h1, lp['w1']) + lp['b1'])
        ff = jnp.einsum('lnf,df->lnd', ff, lp['w2']) + lp['b2']
        h = ln(h1 + ff, lp['g2'], lp['be2'])
    return jnp.einsum('bd,od->bo', h[:, -1, :], params['fc_w']) + params['fc_b']


# ---------------------------------------------------------------------------
if __name__ == "__main__":
    key = jax.random.PRNGKey(0)
    kx, kp = jax.random.split(key)

    B, S = 2, 8
    x = jax.random.normal(kx, (B, S, INPUT_SIZE), jnp.float32)
    params = init_params(kp)
    packed = preprocess_params(params)

    out = transformer_cnn_forward(x, packed)
    out = jax.block_until_ready(out)

    assert out.shape == (B, OUTPUT_SIZE), out.shape
    assert bool(jnp.all(jnp.isfinite(out)))

    # explicit tolerance check vs f32 reference (bf16 weights + approx reciprocal
    # are the only intentional deviations)
    ref = reference_forward(x, params)
    max_err = float(jnp.max(jnp.abs(out - ref)))
    assert max_err < 8e-2, f"kernel vs reference max |diff| = {max_err}"

    print("KERNEL_OK")
</pallas_src>

<mosaic_0001>
module attributes {stable_mosaic.version = 11 : i64} {
  func.func @fused_forward_kernel(%arg0: memref<16x128xf32, #tpu.memory_space<vmem>>, %arg1: memref<128x128xbf16, #tpu.memory_space<vmem>>, %arg2: memref<1x128xf32, #tpu.memory_space<vmem>>, %arg3: memref<128x384xbf16, #tpu.memory_space<vmem>>, %arg4: memref<1x128xf32, #tpu.memory_space<vmem>>, %arg5: memref<128x8xbf16, #tpu.memory_space<vmem>>, %arg6: memref<8x128xbf16, #tpu.memory_space<vmem>>, %arg7: memref<128x128xbf16, #tpu.memory_space<vmem>>, %arg8: memref<1x128xf32, #tpu.memory_space<vmem>>, %arg9: memref<4x128x384xbf16, #tpu.memory_space<vmem>>, %arg10: memref<4x1x384xf32, #tpu.memory_space<vmem>>, %arg11: memref<4x128x128xbf16, #tpu.memory_space<vmem>>, %arg12: memref<4x1x128xf32, #tpu.memory_space<vmem>>, %arg13: memref<4x128x512xbf16, #tpu.memory_space<vmem>>, %arg14: memref<4x1x512xf32, #tpu.memory_space<vmem>>, %arg15: memref<4x512x128xbf16, #tpu.memory_space<vmem>>, %arg16: memref<4x1x128xf32, #tpu.memory_space<vmem>>, %arg17: memref<4x1x128xf32, #tpu.memory_space<vmem>>, %arg18: memref<4x1x128xf32, #tpu.memory_space<vmem>>, %arg19: memref<4x1x128xf32, #tpu.memory_space<vmem>>, %arg20: memref<4x1x128xf32, #tpu.memory_space<vmem>>, %arg21: memref<16x128xf32, #tpu.memory_space<vmem>>) attributes {dimension_semantics = [], scalar_prefetch = 0 : i64, scratch_operands = 0 : i64, tpu.core_type = #tpu.core_type<tc>} {
    %c0 = arith.constant 0 : index
    %c0_0 = arith.constant 0 : index
    %0 = vector.load %arg0[%c0, %c0_0] : memref<16x128xf32, #tpu.memory_space<vmem>>, vector<16x128xf32>
    %1 = arith.truncf %0 : vector<16x128xf32> to vector<16x128xbf16>
    %c0_1 = arith.constant 0 : index
    %c0_2 = arith.constant 0 : index
    %2 = vector.load %arg1[%c0_1, %c0_2] : memref<128x128xbf16, #tpu.memory_space<vmem>>, vector<128x128xbf16>
    %cst = arith.constant dense<0.000000e+00> : vector<16x128xf32>
    %3 = tpu.matmul %1, %2, %cst {dimension_numbers = #tpu.dot_dimension_numbers<[1], [0], [0], [1], [0, 0, 1, 1], [], []>} : vector<16x128xbf16>, vector<128x128xbf16>, vector<16x128xf32> -> vector<16x128xf32>
    %c0_3 = arith.constant 0 : index
    %c0_4 = arith.constant 0 : index
    %4 = vector.load %arg2[%c0_3, %c0_4] : memref<1x128xf32, #tpu.memory_space<vmem>>, vector<1x128xf32>
    %5 = vector.broadcast %4 : vector<1x128xf32> to vector<16x128xf32>
    %6 = arith.addf %3, %5 : vector<16x128xf32>
    %7 = arith.truncf %6 : vector<16x128xf32> to vector<16x128xbf16>
    %c0_5 = arith.constant 0 : index
    %c0_6 = arith.constant 0 : index
    %8 = vector.load %arg3[%c0_5, %c0_6] : memref<128x384xbf16, #tpu.memory_space<vmem>>, vector<128x384xbf16>
    %cst_7 = arith.constant dense<0.000000e+00> : vector<16x384xf32>
    %9 = tpu.matmul %7, %8, %cst_7 {dimension_numbers = #tpu.dot_dimension_numbers<[1], [0], [0], [1], [0, 0, 1, 1], [], []>} : vector<16x128xbf16>, vector<128x384xbf16>, vector<16x384xf32> -> vector<16x384xf32>
    %10 = vector.extract_strided_slice %9 {offsets = [0, 0], sizes = [16, 128], strides = [1, 1]} : vector<16x384xf32> to vector<16x128xf32>
    %11 = vector.extract_strided_slice %9 {offsets = [0, 128], sizes = [16, 128], strides = [1, 1]} : vector<16x384xf32> to vector<16x128xf32>
    %12 = vector.extract_strided_slice %9 {offsets = [0, 256], sizes = [16, 128], strides = [1, 1]} : vector<16x384xf32> to vector<16x128xf32>
    %13 = tpu.iota {dimensions = array<i32: 1>} : vector<2x8x128xi32>
    %14 = vector.shape_cast %13 : vector<2x8x128xi32> to vector<16x128xi32>
    %c0_i32 = arith.constant 0 : i32
    %15 = vector.broadcast %c0_i32 : i32 to vector<16x128xi32>
    %16 = arith.cmpi ne, %14, %15 : vector<16x128xi32>
    %c1_i32 = arith.constant 1 : i32
    %17 = tpu.dynamic_rotate %10 by %c1_i32 dim 0 : vector<16x128xf32>, i32 -> vector<16x128xf32>
    %cst_8 = arith.constant 0.000000e+00 : f32
    %18 = vector.broadcast %cst_8 : f32 to vector<16x128xf32>
    %19 = arith.select %16, %17, %18 : vector<16x128xi1>, vector<16x128xf32>
    %c7_i32 = arith.constant 7 : i32
    %20 = vector.broadcast %c7_i32 : i32 to vector<16x128xi32>
    %21 = arith.cmpi ne, %14, %20 : vector<16x128xi32>
    %c15_i32 = arith.constant 15 : i32
    %22 = tpu.dynamic_rotate %12 by %c15_i32 dim 0 : vector<16x128xf32>, i32 -> vector<16x128xf32>
    %cst_9 = arith.constant 0.000000e+00 : f32
    %23 = vector.broadcast %cst_9 : f32 to vector<16x128xf32>
    %24 = arith.select %21, %22, %23 : vector<16x128xi1>, vector<16x128xf32>
    %25 = arith.addf %11, %19 : vector<16x128xf32>
    %26 = arith.addf %25, %24 : vector<16x128xf32>
    %c0_10 = arith.constant 0 : index
    %c0_11 = arith.constant 0 : index
    %27 = vector.load %arg4[%c0_10, %c0_11] : memref<1x128xf32, #tpu.memory_space<vmem>>, vector<1x128xf32>
    %28 = vector.broadcast %27 : vector<1x128xf32> to vector<16x128xf32>
    %29 = arith.addf %26, %28 : vector<16x128xf32>
    %c0_12 = arith.constant 0 : index
    %c0_13 = arith.constant 0 : index
    %30 = vector.load %arg5[%c0_12, %c0_13] : memref<128x8xbf16, #tpu.memory_space<vmem>>, vector<128x8xbf16>
    %c0_14 = arith.constant 0 : index
    %c0_15 = arith.constant 0 : index
    %31 = vector.load %arg6[%c0_14, %c0_15] : memref<8x128xbf16, #tpu.memory_space<vmem>>, vector<8x128xbf16>
    %c0_16 = arith.constant 0 : index
    %c0_17 = arith.constant 0 : index
    %c0_18 = arith.constant 0 : index
    %32 = vector.load %arg9[%c0_16, %c0_17, %c0_18] : memref<4x128x384xbf16, #tpu.memory_space<vmem>>, vector<1x128x384xbf16>
    %33 = vector.shape_cast %32 : vector<1x128x384xbf16> to vector<128x384xbf16>
    %c0_19 = arith.constant 0 : index
    %c0_20 = arith.constant 0 : index
    %c0_21 = arith.constant 0 : index
    %34 = vector.load %arg10[%c0_19, %c0_20, %c0_21] : memref<4x1x384xf32, #tpu.memory_space<vmem>>, vector<1x1x384xf32>
    %35 = vector.shape_cast %34 : vector<1x1x384xf32> to vector<1x384xf32>
    %c0_22 = arith.constant 0 : index
    %c0_23 = arith.constant 0 : index
    %c0_24 = arith.constant 0 : index
    %36 = vector.load %arg11[%c0_22, %c0_23, %c0_24] : memref<4x128x128xbf16, #tpu.memory_space<vmem>>, vector<1x128x128xbf16>
    %37 = vector.shape_cast %36 : vector<1x128x128xbf16> to vector<128x128xbf16>
    %c0_25 = arith.constant 0 : index
    %c0_26 = arith.constant 0 : index
    %c0_27 = arith.constant 0 : index
    %38 = vector.load %arg12[%c0_25, %c0_26, %c0_27] : memref<4x1x128xf32, #tpu.memory_space<vmem>>, vector<1x1x128xf32>
    %39 = vector.shape_cast %38 : vector<1x1x128xf32> to vector<1x128xf32>
    %c0_28 = arith.constant 0 : index
    %c0_29 = arith.constant 0 : index
    %c0_30 = arith.constant 0 : index
    %40 = vector.load %arg13[%c0_28, %c0_29, %c0_30] : memref<4x128x512xbf16, #tpu.memory_space<vmem>>, vector<1x128x512xbf16>
    %41 = vector.shape_cast %40 : vector<1x128x512xbf16> to vector<128x512xbf16>
    %c0_31 = arith.constant 0 : index
    %c0_32 = arith.constant 0 : index
    %c0_33 = arith.constant 0 : index
    %42 = vector.load %arg14[%c0_31, %c0_32, %c0_33] : memref<4x1x512xf32, #tpu.memory_space<vmem>>, vector<1x1x512xf32>
    %43 = vector.shape_cast %42 : vector<1x1x512xf32> to vector<1x512xf32>
    %c0_34 = arith.constant 0 : index
    %c0_35 = arith.constant 0 : index
    %c0_36 = arith.constant 0 : index
    %44 = vector.load %arg15[%c0_34, %c0_35, %c0_36] : memref<4x512x128xbf16, #tpu.memory_space<vmem>>, vector<1x512x128xbf16>
    %45 = vector.shape_cast %44 : vector<1x512x128xbf16> to vector<512x128xbf16>
    %c0_37 = arith.constant 0 : index
    %c0_38 = arith.constant 0 : index
    %c0_39 = arith.constant 0 : index
    %46 = vector.load %arg16[%c0_37, %c0_38, %c0_39] : memref<4x1x128xf32, #tpu.memory_space<vmem>>, vector<1x1x128xf32>
    %47 = vector.shape_cast %46 : vector<1x1x128xf32> to vector<1x128xf32>
    %c0_40 = arith.constant 0 : index
    %c0_41 = arith.constant 0 : index
    %c0_42 = arith.constant 0 : index
    %48 = vector.load %arg17[%c0_40, %c0_41, %c0_42] : memref<4x1x128xf32, #tpu.memory_space<vmem>>, vector<1x1x128xf32>
    %49 = vector.shape_cast %48 : vector<1x1x128xf32> to vector<1x128xf32>
    %c0_43 = arith.constant 0 : index
    %c0_44 = arith.constant 0 : index
    %c0_45 = arith.constant 0 : index
    %50 = vector.load %arg18[%c0_43, %c0_44, %c0_45] : memref<4x1x128xf32, #tpu.memory_space<vmem>>, vector<1x1x128xf32>
    %51 = vector.shape_cast %50 : vector<1x1x128xf32> to vector<1x128xf32>
    %c0_46 = arith.constant 0 : index
    %c0_47 = arith.constant 0 : index
    %c0_48 = arith.constant 0 : index
    %52 = vector.load %arg19[%c0_46, %c0_47, %c0_48] : memref<4x1x128xf32, #tpu.memory_space<vmem>>, vector<1x1x128xf32>
    %53 = vector.shape_cast %52 : vector<1x1x128xf32> to vector<1x128xf32>
    %c0_49 = arith.constant 0 : index
    %c0_50 = arith.constant 0 : index
    %c0_51 = arith.constant 0 : index
    %54 = vector.load %arg20[%c0_49, %c0_50, %c0_51] : memref<4x1x128xf32, #tpu.memory_space<vmem>>, vector<1x1x128xf32>
    %55 = vector.shape_cast %54 : vector<1x1x128xf32> to vector<1x128xf32>
    %56 = arith.truncf %29 : vector<16x128xf32> to vector<16x128xbf16>
    %cst_52 = arith.constant dense<0.000000e+00> : vector<16x384xf32>
    %57 = tpu.matmul %56, %33, %cst_52 {dimension_numbers = #tpu.dot_dimension_numbers<[1], [0], [0], [1], [0, 0, 1, 1], [], []>} : vector<16x128xbf16>, vector<128x384xbf16>, vector<16x384xf32> -> vector<16x384xf32>
    %58 = vector.broadcast %35 : vector<1x384xf32> to vector<16x384xf32>
    %59 = arith.addf %57, %58 : vector<16x384xf32>
    %60 = vector.extract_strided_slice %59 {offsets = [0, 0], sizes = [16, 128], strides = [1, 1]} : vector<16x384xf32> to vector<16x128xf32>
    %61 = vector.extract_strided_slice %59 {offsets = [0, 128], sizes = [16, 128], strides = [1, 1]} : vector<16x384xf32> to vector<16x128xf32>
    %62 = vector.extract_strided_slice %59 {offsets = [0, 256], sizes = [16, 128], strides = [1, 1]} : vector<16x384xf32> to vector<16x128xf32>
    %63 = vector.extract_strided_slice %60 {offsets = [0, 0], sizes = [8, 128], strides = [1, 1]} : vector<16x128xf32> to vector<8x128xf32>
    %64 = vector.extract_strided_slice %61 {offsets = [0, 0], sizes = [8, 128], strides = [1, 1]} : vector<16x128xf32> to vector<8x128xf32>
    %65 = arith.mulf %63, %64 : vector<8x128xf32>
    %66 = vector.extract_strided_slice %60 {offsets = [0, 0], sizes = [8, 128], strides = [1, 1]} : vector<16x128xf32> to vector<8x128xf32>
    %67 = vector.extract_strided_slice %61 {offsets = [8, 0], sizes = [8, 128], strides = [1, 1]} : vector<16x128xf32> to vector<8x128xf32>
    %68 = arith.mulf %66, %67 : vector<8x128xf32>
    %69 = vector.extract_strided_slice %60 {offsets = [8, 0], sizes = [8, 128], strides = [1, 1]} : vector<16x128xf32> to vector<8x128xf32>
    %70 = vector.extract_strided_slice %61 {offsets = [0, 0], sizes = [8, 128], strides = [1, 1]} : vector<16x128xf32> to vector<8x128xf32>
    %71 = arith.mulf %69, %70 : vector<8x128xf32>
    %72 = vector.extract_strided_slice %60 {offsets = [8, 0], sizes = [8, 128], strides = [1, 1]} : vector<16x128xf32> to vector<8x128xf32>
    %73 = vector.extract_strided_slice %61 {offsets = [8, 0], sizes = [8, 128], strides = [1, 1]} : vector<16x128xf32> to vector<8x128xf32>
    %74 = arith.mulf %72, %73 : vector<8x128xf32>
    %75 = tpu.concatenate %65, %68, %71, %74 in 0 : vector<8x128xf32>, vector<8x128xf32>, vector<8x128xf32>, vector<8x128xf32> -> vector<32x128xf32>
    %76 = arith.truncf %75 : vector<32x128xf32> to vector<32x128xbf16>
    %cst_53 = arith.constant dense<0.000000e+00> : vector<32x8xf32>
    %77 = tpu.matmul %76, %30, %cst_53 {dimension_numbers = #tpu.dot_dimension_numbers<[1], [0], [0], [1], [0, 0, 1, 1], [], []>} : vector<32x128xbf16>, vector<128x8xbf16>, vector<32x8xf32> -> vector<32x8xf32>
    %78 = vector.extract_strided_slice %77 {offsets = [0, 0], sizes = [8, 8], strides = [1, 1]} : vector<32x8xf32> to vector<8x8xf32>
    %79 = vector.extract_strided_slice %77 {offsets = [8, 0], sizes = [8, 8], strides = [1, 1]} : vector<32x8xf32> to vector<8x8xf32>
    %80 = arith.maximumf %78, %79 : vector<8x8xf32>
    %81 = arith.subf %78, %80 : vector<8x8xf32>
    %82 = math.exp %81 : vector<8x8xf32>
    %83 = arith.subf %79, %80 : vector<8x8xf32>
    %84 = math.exp %83 : vector<8x8xf32>
    %85 = arith.addf %82, %84 : vector<8x8xf32>
    %86 = tpu.reciprocal %85 {approx = true} : vector<8x8xf32> -> vector<8x8xf32>
    %87 = arith.mulf %82, %86 : vector<8x8xf32>
    %88 = arith.mulf %84, %86 : vector<8x8xf32>
    %89 = vector.extract_strided_slice %77 {offsets = [16, 0], sizes = [8, 8], strides = [1, 1]} : vector<32x8xf32> to vector<8x8xf32>
    %90 = vector.extract_strided_slice %77 {offsets = [24, 0], sizes = [8, 8], strides = [1, 1]} : vector<32x8xf32> to vector<8x8xf32>
    %91 = arith.maximumf %89, %90 : vector<8x8xf32>
    %92 = arith.subf %89, %91 : vector<8x8xf32>
    %93 = math.exp %92 : vector<8x8xf32>
    %94 = arith.subf %90, %91 : vector<8x8xf32>
    %95 = math.exp %94 : vector<8x8xf32>
    %96 = arith.addf %93, %95 : vector<8x8xf32>
    %97 = tpu.reciprocal %96 {approx = true} : vector<8x8xf32> -> vector<8x8xf32>
    %98 = arith.mulf %93, %97 : vector<8x8xf32>
    %99 = arith.mulf %95, %97 : vector<8x8xf32>
    %100 = tpu.concatenate %87, %88, %98, %99 in 0 : vector<8x8xf32>, vector<8x8xf32>, vector<8x8xf32>, vector<8x8xf32> -> vector<32x8xf32>
    %101 = arith.truncf %100 : vector<32x8xf32> to vector<32x8xbf16>
    %cst_54 = arith.constant dense<0.000000e+00> : vector<32x128xf32>
    %102 = tpu.matmul %101, %31, %cst_54 {dimension_numbers = #tpu.dot_dimension_numbers<[1], [0], [0], [1], [0, 0, 1, 1], [], []>} : vector<32x8xbf16>, vector<8x128xbf16>, vector<32x128xf32> -> vector<32x128xf32>
    %103 = tpu.concatenate %62, %62 in 0 : vector<16x128xf32>, vector<16x128xf32> -> vector<32x128xf32>
    %104 = arith.mulf %102, %103 : vector<32x128xf32>
    %105 = vector.extract_strided_slice %104 {offsets = [0, 0], sizes = [8, 128], strides = [1, 1]} : vector<32x128xf32> to vector<8x128xf32>
    %106 = vector.extract_strided_slice %104 {offsets = [8, 0], sizes = [8, 128], strides = [1, 1]} : vector<32x128xf32> to vector<8x128xf32>
    %107 = arith.addf %105, %106 : vector<8x128xf32>
    %108 = vector.extract_strided_slice %104 {offsets = [16, 0], sizes = [8, 128], strides = [1, 1]} : vector<32x128xf32> to vector<8x128xf32>
    %109 = vector.extract_strided_slice %104 {offsets = [24, 0], sizes = [8, 128], strides = [1, 1]} : vector<32x128xf32> to vector<8x128xf32>
    %110 = arith.addf %108, %109 : vector<8x128xf32>
    %111 = tpu.concatenate %107, %110 in 0 : vector<8x128xf32>, vector<8x128xf32> -> vector<16x128xf32>
    %112 = arith.truncf %111 : vector<16x128xf32> to vector<16x128xbf16>
    %cst_55 = arith.constant dense<0.000000e+00> : vector<16x128xf32>
    %113 = tpu.matmul %112, %37, %cst_55 {dimension_numbers = #tpu.dot_dimension_numbers<[1], [0], [0], [1], [0, 0, 1, 1], [], []>} : vector<16x128xbf16>, vector<128x128xbf16>, vector<16x128xf32> -> vector<16x128xf32>
    %114 = vector.broadcast %39 : vector<1x128xf32> to vector<16x128xf32>
    %115 = arith.addf %113, %114 : vector<16x128xf32>
    %116 = arith.addf %29, %115 : vector<16x128xf32>
    %cst_56 = arith.constant dense<0.000000e+00> : vector<16xf32>
    %117 = vector.multi_reduction <add>, %116, %cst_56 [1] : vector<16x128xf32> to vector<16xf32>
    %118 = vector.shape_cast %117 : vector<16xf32> to vector<16x1xf32>
    %cst_57 = arith.constant 1.280000e+02 : f32
    %119 = vector.broadcast %cst_57 : f32 to vector<16x1xf32>
    %120 = arith.divf %118, %119 : vector<16x1xf32>
    %121 = vector.broadcast %120 : vector<16x1xf32> to vector<16x128xf32>
    %122 = arith.subf %116, %121 : vector<16x128xf32>
    %123 = arith.mulf %122, %122 : vector<16x128xf32>
    %cst_58 = arith.constant dense<0.000000e+00> : vector<16xf32>
    %124 = vector.multi_reduction <add>, %123, %cst_58 [1] : vector<16x128xf32> to vector<16xf32>
    %125 = vector.shape_cast %124 : vector<16xf32> to vector<16x1xf32>
    %cst_59 = arith.constant 1.280000e+02 : f32
    %126 = vector.broadcast %cst_59 : f32 to vector<16x1xf32>
    %127 = arith.divf %125, %126 : vector<16x1xf32>
    %cst_60 = arith.constant 9.99999974E-6 : f32
    %128 = vector.broadcast %cst_60 : f32 to vector<16x1xf32>
    %129 = arith.addf %127, %128 : vector<16x1xf32>
    %130 = math.rsqrt %129 : vector<16x1xf32>
    %131 = vector.broadcast %130 : vector<16x1xf32> to vector<16x128xf32>
    %132 = arith.mulf %122, %131 : vector<16x128xf32>
    %133 = vector.broadcast %49 : vector<1x128xf32> to vector<16x128xf32>
    %134 = arith.mulf %132, %133 : vector<16x128xf32>
    %135 = vector.broadcast %51 : vector<1x128xf32> to vector<16x128xf32>
    %136 = arith.addf %134, %135 : vector<16x128xf32>
    %137 = arith.truncf %136 : vector<16x128xf32> to vector<16x128xbf16>
    %cst_61 = arith.constant dense<0.000000e+00> : vector<16x512xf32>
    %138 = tpu.matmul %137, %41, %cst_61 {dimension_numbers = #tpu.dot_dimension_numbers<[1], [0], [0], [1], [0, 0, 1, 1], [], []>} : vector<16x128xbf16>, vector<128x512xbf16>, vector<16x512xf32> -> vector<16x512xf32>
    %139 = vector.broadcast %43 : vector<1x512xf32> to vector<16x512xf32>
    %140 = arith.addf %138, %139 : vector<16x512xf32>
    %cst_62 = arith.constant 0.000000e+00 : f32
    %141 = vector.broadcast %cst_62 : f32 to vector<16x512xf32>
    %142 = arith.maximumf %140, %141 : vector<16x512xf32>
    %143 = arith.truncf %142 : vector<16x512xf32> to vector<16x512xbf16>
    %cst_63 = arith.constant dense<0.000000e+00> : vector<16x128xf32>
    %144 = tpu.matmul %143, %45, %cst_63 {dimension_numbers = #tpu.dot_dimension_numbers<[1], [0], [0], [1], [0, 0, 1, 1], [], []>} : vector<16x512xbf16>, vector<512x128xbf16>, vector<16x128xf32> -> vector<16x128xf32>
    %145 = vector.broadcast %47 : vector<1x128xf32> to vector<16x128xf32>
    %146 = arith.addf %144, %145 : vector<16x128xf32>
    %147 = arith.addf %136, %146 : vector<16x128xf32>
    %cst_64 = arith.constant dense<0.000000e+00> : vector<16xf32>
    %148 = vector.multi_reduction <add>, %147, %cst_64 [1] : vector<16x128xf32> to vector<16xf32>
    %149 = vector.shape_cast %148 : vector<16xf32> to vector<16x1xf32>
    %cst_65 = arith.constant 1.280000e+02 : f32
    %150 = vector.broadcast %cst_65 : f32 to vector<16x1xf32>
    %151 = arith.divf %149, %150 : vector<16x1xf32>
    %152 = vector.broadcast %151 : vector<16x1xf32> to vector<16x128xf32>
    %153 = arith.subf %147, %152 : vector<16x128xf32>
    %154 = arith.mulf %153, %153 : vector<16x128xf32>
    %cst_66 = arith.constant dense<0.000000e+00> : vector<16xf32>
    %155 = vector.multi_reduction <add>, %154, %cst_66 [1] : vector<16x128xf32> to vector<16xf32>
    %156 = vector.shape_cast %155 : vector<16xf32> to vector<16x1xf32>
    %cst_67 = arith.constant 1.280000e+02 : f32
    %157 = vector.broadcast %cst_67 : f32 to vector<16x1xf32>
    %158 = arith.divf %156, %157 : vector<16x1xf32>
    %cst_68 = arith.constant 9.99999974E-6 : f32
    %159 = vector.broadcast %cst_68 : f32 to vector<16x1xf32>
    %160 = arith.addf %158, %159 : vector<16x1xf32>
    %161 = math.rsqrt %160 : vector<16x1xf32>
    %162 = vector.broadcast %161 : vector<16x1xf32> to vector<16x128xf32>
    %163 = arith.mulf %153, %162 : vector<16x128xf32>
    %164 = vector.broadcast %53 : vector<1x128xf32> to vector<16x128xf32>
    %165 = arith.mulf %163, %164 : vector<16x128xf32>
    %166 = vector.broadcast %55 : vector<1x128xf32> to vector<16x128xf32>
    %167 = arith.addf %165, %166 : vector<16x128xf32>
    %c1 = arith.constant 1 : index
    %c0_69 = arith.constant 0 : index
    %c0_70 = arith.constant 0 : index
    %168 = vector.load %arg9[%c1, %c0_69, %c0_70] : memref<4x128x384xbf16, #tpu.memory_space<vmem>>, vector<1x128x384xbf16>
    %169 = vector.shape_cast %168 : vector<1x128x384xbf16> to vector<128x384xbf16>
    %c1_71 = arith.constant 1 : index
    %c0_72 = arith.constant 0 : index
    %c0_73 = arith.constant 0 : index
    %170 = vector.load %arg10[%c1_71, %c0_72, %c0_73] : memref<4x1x384xf32, #tpu.memory_space<vmem>>, vector<1x1x384xf32>
    %171 = vector.shape_cast %170 : vector<1x1x384xf32> to vector<1x384xf32>
    %c1_74 = arith.constant 1 : index
    %c0_75 = arith.constant 0 : index
    %c0_76 = arith.constant 0 : index
    %172 = vector.load %arg11[%c1_74, %c0_75, %c0_76] : memref<4x128x128xbf16, #tpu.memory_space<vmem>>, vector<1x128x128xbf16>
    %173 = vector.shape_cast %172 : vector<1x128x128xbf16> to vector<128x128xbf16>
    %c1_77 = arith.constant 1 : index
    %c0_78 = arith.constant 0 : index
    %c0_79 = arith.constant 0 : index
    %174 = vector.load %arg12[%c1_77, %c0_78, %c0_79] : memref<4x1x128xf32, #tpu.memory_space<vmem>>, vector<1x1x128xf32>
    %175 = vector.shape_cast %174 : vector<1x1x128xf32> to vector<1x128xf32>
    %c1_80 = arith.constant 1 : index
    %c0_81 = arith.constant 0 : index
    %c0_82 = arith.constant 0 : index
    %176 = vector.load %arg13[%c1_80, %c0_81, %c0_82] : memref<4x128x512xbf16, #tpu.memory_space<vmem>>, vector<1x128x512xbf16>
    %177 = vector.shape_cast %176 : vector<1x128x512xbf16> to vector<128x512xbf16>
    %c1_83 = arith.constant 1 : index
    %c0_84 = arith.constant 0 : index
    %c0_85 = arith.constant 0 : index
    %178 = vector.load %arg14[%c1_83, %c0_84, %c0_85] : memref<4x1x512xf32, #tpu.memory_space<vmem>>, vector<1x1x512xf32>
    %179 = vector.shape_cast %178 : vector<1x1x512xf32> to vector<1x512xf32>
    %c1_86 = arith.constant 1 : index
    %c0_87 = arith.constant 0 : index
    %c0_88 = arith.constant 0 : index
    %180 = vector.load %arg15[%c1_86, %c0_87, %c0_88] : memref<4x512x128xbf16, #tpu.memory_space<vmem>>, vector<1x512x128xbf16>
    %181 = vector.shape_cast %180 : vector<1x512x128xbf16> to vector<512x128xbf16>
    %c1_89 = arith.constant 1 : index
    %c0_90 = arith.constant 0 : index
    %c0_91 = arith.constant 0 : index
    %182 = vector.load %arg16[%c1_89, %c0_90, %c0_91] : memref<4x1x128xf32, #tpu.memory_space<vmem>>, vector<1x1x128xf32>
    %183 = vector.shape_cast %182 : vector<1x1x128xf32> to vector<1x128xf32>
    %c1_92 = arith.constant 1 : index
    %c0_93 = arith.constant 0 : index
    %c0_94 = arith.constant 0 : index
    %184 = vector.load %arg17[%c1_92, %c0_93, %c0_94] : memref<4x1x128xf32, #tpu.memory_space<vmem>>, vector<1x1x128xf32>
    %185 = vector.shape_cast %184 : vector<1x1x128xf32> to vector<1x128xf32>
    %c1_95 = arith.constant 1 : index
    %c0_96 = arith.constant 0 : index
    %c0_97 = arith.constant 0 : index
    %186 = vector.load %arg18[%c1_95, %c0_96, %c0_97] : memref<4x1x128xf32, #tpu.memory_space<vmem>>, vector<1x1x128xf32>
    %187 = vector.shape_cast %186 : vector<1x1x128xf32> to vector<1x128xf32>
    %c1_98 = arith.constant 1 : index
    %c0_99 = arith.constant 0 : index
    %c0_100 = arith.constant 0 : index
    %188 = vector.load %arg19[%c1_98, %c0_99, %c0_100] : memref<4x1x128xf32, #tpu.memory_space<vmem>>, vector<1x1x128xf32>
    %189 = vector.shape_cast %188 : vector<1x1x128xf32> to vector<1x128xf32>
    %c1_101 = arith.constant 1 : index
    %c0_102 = arith.constant 0 : index
    %c0_103 = arith.constant 0 : index
    %190 = vector.load %arg20[%c1_101, %c0_102, %c0_103] : memref<4x1x128xf32, #tpu.memory_space<vmem>>, vector<1x1x128xf32>
    %191 = vector.shape_cast %190 : vector<1x1x128xf32> to vector<1x128xf32>
    %192 = arith.truncf %167 : vector<16x128xf32> to vector<16x128xbf16>
    %cst_104 = arith.constant dense<0.000000e+00> : vector<16x384xf32>
    %193 = tpu.matmul %192, %169, %cst_104 {dimension_numbers = #tpu.dot_dimension_numbers<[1], [0], [0], [1], [0, 0, 1, 1], [], []>} : vector<16x128xbf16>, vector<128x384xbf16>, vector<16x384xf32> -> vector<16x384xf32>
    %194 = vector.broadcast %171 : vector<1x384xf32> to vector<16x384xf32>
    %195 = arith.addf %193, %194 : vector<16x384xf32>
    %196 = vector.extract_strided_slice %195 {offsets = [0, 0], sizes = [16, 128], strides = [1, 1]} : vector<16x384xf32> to vector<16x128xf32>
    %197 = vector.extract_strided_slice %195 {offsets = [0, 128], sizes = [16, 128], strides = [1, 1]} : vector<16x384xf32> to vector<16x128xf32>
    %198 = vector.extract_strided_slice %195 {offsets = [0, 256], sizes = [16, 128], strides = [1, 1]} : vector<16x384xf32> to vector<16x128xf32>
    %199 = vector.extract_strided_slice %196 {offsets = [0, 0], sizes = [8, 128], strides = [1, 1]} : vector<16x128xf32> to vector<8x128xf32>
    %200 = vector.extract_strided_slice %197 {offsets = [0, 0], sizes = [8, 128], strides = [1, 1]} : vector<16x128xf32> to vector<8x128xf32>
    %201 = arith.mulf %199, %200 : vector<8x128xf32>
    %202 = vector.extract_strided_slice %196 {offsets = [0, 0], sizes = [8, 128], strides = [1, 1]} : vector<16x128xf32> to vector<8x128xf32>
    %203 = vector.extract_strided_slice %197 {offsets = [8, 0], sizes = [8, 128], strides = [1, 1]} : vector<16x128xf32> to vector<8x128xf32>
    %204 = arith.mulf %202, %203 : vector<8x128xf32>
    %205 = vector.extract_strided_slice %196 {offsets = [8, 0], sizes = [8, 128], strides = [1, 1]} : vector<16x128xf32> to vector<8x128xf32>
    %206 = vector.extract_strided_slice %197 {offsets = [0, 0], sizes = [8, 128], strides = [1, 1]} : vector<16x128xf32> to vector<8x128xf32>
    %207 = arith.mulf %205, %206 : vector<8x128xf32>
    %208 = vector.extract_strided_slice %196 {offsets = [8, 0], sizes = [8, 128], strides = [1, 1]} : vector<16x128xf32> to vector<8x128xf32>
    %209 = vector.extract_strided_slice %197 {offsets = [8, 0], sizes = [8, 128], strides = [1, 1]} : vector<16x128xf32> to vector<8x128xf32>
    %210 = arith.mulf %208, %209 : vector<8x128xf32>
    %211 = tpu.concatenate %201, %204, %207, %210 in 0 : vector<8x128xf32>, vector<8x128xf32>, vector<8x128xf32>, vector<8x128xf32> -> vector<32x128xf32>
    %212 = arith.truncf %211 : vector<32x128xf32> to vector<32x128xbf16>
    %cst_105 = arith.constant dense<0.000000e+00> : vector<32x8xf32>
    %213 = tpu.matmul %212, %30, %cst_105 {dimension_numbers = #tpu.dot_dimension_numbers<[1], [0], [0], [1], [0, 0, 1, 1], [], []>} : vector<32x128xbf16>, vector<128x8xbf16>, vector<32x8xf32> -> vector<32x8xf32>
    %214 = vector.extract_strided_slice %213 {offsets = [0, 0], sizes = [8, 8], strides = [1, 1]} : vector<32x8xf32> to vector<8x8xf32>
    %215 = vector.extract_strided_slice %213 {offsets = [8, 0], sizes = [8, 8], strides = [1, 1]} : vector<32x8xf32> to vector<8x8xf32>
    %216 = arith.maximumf %214, %215 : vector<8x8xf32>
    %217 = arith.subf %214, %216 : vector<8x8xf32>
    %218 = math.exp %217 : vector<8x8xf32>
    %219 = arith.subf %215, %216 : vector<8x8xf32>
    %220 = math.exp %219 : vector<8x8xf32>
    %221 = arith.addf %218, %220 : vector<8x8xf32>
    %222 = tpu.reciprocal %221 {approx = true} : vector<8x8xf32> -> vector<8x8xf32>
    %223 = arith.mulf %218, %222 : vector<8x8xf32>
    %224 = arith.mulf %220, %222 : vector<8x8xf32>
    %225 = vector.extract_strided_slice %213 {offsets = [16, 0], sizes = [8, 8], strides = [1, 1]} : vector<32x8xf32> to vector<8x8xf32>
    %226 = vector.extract_strided_slice %213 {offsets = [24, 0], sizes = [8, 8], strides = [1, 1]} : vector<32x8xf32> to vector<8x8xf32>
    %227 = arith.maximumf %225, %226 : vector<8x8xf32>
    %228 = arith.subf %225, %227 : vector<8x8xf32>
    %229 = math.exp %228 : vector<8x8xf32>
    %230 = arith.subf %226, %227 : vector<8x8xf32>
    %231 = math.exp %230 : vector<8x8xf32>
    %232 = arith.addf %229, %231 : vector<8x8xf32>
    %233 = tpu.reciprocal %232 {approx = true} : vector<8x8xf32> -> vector<8x8xf32>
    %234 = arith.mulf %229, %233 : vector<8x8xf32>
    %235 = arith.mulf %231, %233 : vector<8x8xf32>
    %236 = tpu.concatenate %223, %224, %234, %235 in 0 : vector<8x8xf32>, vector<8x8xf32>, vector<8x8xf32>, vector<8x8xf32> -> vector<32x8xf32>
    %237 = arith.truncf %236 : vector<32x8xf32> to vector<32x8xbf16>
    %cst_106 = arith.constant dense<0.000000e+00> : vector<32x128xf32>
    %238 = tpu.matmul %237, %31, %cst_106 {dimension_numbers = #tpu.dot_dimension_numbers<[1], [0], [0], [1], [0, 0, 1, 1], [], []>} : vector<32x8xbf16>, vector<8x128xbf16>, vector<32x128xf32> -> vector<32x128xf32>
    %239 = tpu.concatenate %198, %198 in 0 : vector<16x128xf32>, vector<16x128xf32> -> vector<32x128xf32>
    %240 = arith.mulf %238, %239 : vector<32x128xf32>
    %241 = vector.extract_strided_slice %240 {offsets = [0, 0], sizes = [8, 128], strides = [1, 1]} : vector<32x128xf32> to vector<8x128xf32>
    %242 = vector.extract_strided_slice %240 {offsets = [8, 0], sizes = [8, 128], strides = [1, 1]} : vector<32x128xf32> to vector<8x128xf32>
    %243 = arith.addf %241, %242 : vector<8x128xf32>
    %244 = vector.extract_strided_slice %240 {offsets = [16, 0], sizes = [8, 128], strides = [1, 1]} : vector<32x128xf32> to vector<8x128xf32>
    %245 = vector.extract_strided_slice %240 {offsets = [24, 0], sizes = [8, 128], strides = [1, 1]} : vector<32x128xf32> to vector<8x128xf32>
    %246 = arith.addf %244, %245 : vector<8x128xf32>
    %247 = tpu.concatenate %243, %246 in 0 : vector<8x128xf32>, vector<8x128xf32> -> vector<16x128xf32>
    %248 = arith.truncf %247 : vector<16x128xf32> to vector<16x128xbf16>
    %cst_107 = arith.constant dense<0.000000e+00> : vector<16x128xf32>
    %249 = tpu.matmul %248, %173, %cst_107 {dimension_numbers = #tpu.dot_dimension_numbers<[1], [0], [0], [1], [0, 0, 1, 1], [], []>} : vector<16x128xbf16>, vector<128x128xbf16>, vector<16x128xf32> -> vector<16x128xf32>
    %250 = vector.broadcast %175 : vector<1x128xf32> to vector<16x128xf32>
    %251 = arith.addf %249, %250 : vector<16x128xf32>
    %252 = arith.addf %167, %251 : vector<16x128xf32>
    %cst_108 = arith.constant dense<0.000000e+00> : vector<16xf32>
    %253 = vector.multi_reduction <add>, %252, %cst_108 [1] : vector<16x128xf32> to vector<16xf32>
    %254 = vector.shape_cast %253 : vector<16xf32> to vector<16x1xf32>
    %cst_109 = arith.constant 1.280000e+02 : f32
    %255 = vector.broadcast %cst_109 : f32 to vector<16x1xf32>
    %256 = arith.divf %254, %255 : vector<16x1xf32>
    %257 = vector.broadcast %256 : vector<16x1xf32> to vector<16x128xf32>
    %258 = arith.subf %252, %257 : vector<16x128xf32>
    %259 = arith.mulf %258, %258 : vector<16x128xf32>
    %cst_110 = arith.constant dense<0.000000e+00> : vector<16xf32>
    %260 = vector.multi_reduction <add>, %259, %cst_110 [1] : vector<16x128xf32> to vector<16xf32>
    %261 = vector.shape_cast %260 : vector<16xf32> to vector<16x1xf32>
    %cst_111 = arith.constant 1.280000e+02 : f32
    %262 = vector.broadcast %cst_111 : f32 to vector<16x1xf32>
    %263 = arith.divf %261, %262 : vector<16x1xf32>
    %cst_112 = arith.constant 9.99999974E-6 : f32
    %264 = vector.broadcast %cst_112 : f32 to vector<16x1xf32>
    %265 = arith.addf %263, %264 : vector<16x1xf32>
    %266 = math.rsqrt %265 : vector<16x1xf32>
    %267 = vector.broadcast %266 : vector<16x1xf32> to vector<16x128xf32>
    %268 = arith.mulf %258, %267 : vector<16x128xf32>
    %269 = vector.broadcast %185 : vector<1x128xf32> to vector<16x128xf32>
    %270 = arith.mulf %268, %269 : vector<16x128xf32>
    %271 = vector.broadcast %187 : vector<1x128xf32> to vector<16x128xf32>
    %272 = arith.addf %270, %271 : vector<16x128xf32>
    %273 = arith.truncf %272 : vector<16x128xf32> to vector<16x128xbf16>
    %cst_113 = arith.constant dense<0.000000e+00> : vector<16x512xf32>
    %274 = tpu.matmul %273, %177, %cst_113 {dimension_numbers = #tpu.dot_dimension_numbers<[1], [0], [0], [1], [0, 0, 1, 1], [], []>} : vector<16x128xbf16>, vector<128x512xbf16>, vector<16x512xf32> -> vector<16x512xf32>
    %275 = vector.broadcast %179 : vector<1x512xf32> to vector<16x512xf32>
    %276 = arith.addf %274, %275 : vector<16x512xf32>
    %cst_114 = arith.constant 0.000000e+00 : f32
    %277 = vector.broadcast %cst_114 : f32 to vector<16x512xf32>
    %278 = arith.maximumf %276, %277 : vector<16x512xf32>
    %279 = arith.truncf %278 : vector<16x512xf32> to vector<16x512xbf16>
    %cst_115 = arith.constant dense<0.000000e+00> : vector<16x128xf32>
    %280 = tpu.matmul %279, %181, %cst_115 {dimension_numbers = #tpu.dot_dimension_numbers<[1], [0], [0], [1], [0, 0, 1, 1], [], []>} : vector<16x512xbf16>, vector<512x128xbf16>, vector<16x128xf32> -> vector<16x128xf32>
    %281 = vector.broadcast %183 : vector<1x128xf32> to vector<16x128xf32>
    %282 = arith.addf %280, %281 : vector<16x128xf32>
    %283 = arith.addf %272, %282 : vector<16x128xf32>
    %cst_116 = arith.constant dense<0.000000e+00> : vector<16xf32>
    %284 = vector.multi_reduction <add>, %283, %cst_116 [1] : vector<16x128xf32> to vector<16xf32>
    %285 = vector.shape_cast %284 : vector<16xf32> to vector<16x1xf32>
    %cst_117 = arith.constant 1.280000e+02 : f32
    %286 = vector.broadcast %cst_117 : f32 to vector<16x1xf32>
    %287 = arith.divf %285, %286 : vector<16x1xf32>
    %288 = vector.broadcast %287 : vector<16x1xf32> to vector<16x128xf32>
    %289 = arith.subf %283, %288 : vector<16x128xf32>
    %290 = arith.mulf %289, %289 : vector<16x128xf32>
    %cst_118 = arith.constant dense<0.000000e+00> : vector<16xf32>
    %291 = vector.multi_reduction <add>, %290, %cst_118 [1] : vector<16x128xf32> to vector<16xf32>
    %292 = vector.shape_cast %291 : vector<16xf32> to vector<16x1xf32>
    %cst_119 = arith.constant 1.280000e+02 : f32
    %293 = vector.broadcast %cst_119 : f32 to vector<16x1xf32>
    %294 = arith.divf %292, %293 : vector<16x1xf32>
    %cst_120 = arith.constant 9.99999974E-6 : f32
    %295 = vector.broadcast %cst_120 : f32 to vector<16x1xf32>
    %296 = arith.addf %294, %295 : vector<16x1xf32>
    %297 = math.rsqrt %296 : vector<16x1xf32>
    %298 = vector.broadcast %297 : vector<16x1xf32> to vector<16x128xf32>
    %299 = arith.mulf %289, %298 : vector<16x128xf32>
    %300 = vector.broadcast %189 : vector<1x128xf32> to vector<16x128xf32>
    %301 = arith.mulf %299, %300 : vector<16x128xf32>
    %302 = vector.broadcast %191 : vector<1x128xf32> to vector<16x128xf32>
    %303 = arith.addf %301, %302 : vector<16x128xf32>
    %c2 = arith.constant 2 : index
    %c0_121 = arith.constant 0 : index
    %c0_122 = arith.constant 0 : index
    %304 = vector.load %arg9[%c2, %c0_121, %c0_122] : memref<4x128x384xbf16, #tpu.memory_space<vmem>>, vector<1x128x384xbf16>
    %305 = vector.shape_cast %304 : vector<1x128x384xbf16> to vector<128x384xbf16>
    %c2_123 = arith.constant 2 : index
    %c0_124 = arith.constant 0 : index
    %c0_125 = arith.constant 0 : index
    %306 = vector.load %arg10[%c2_123, %c0_124, %c0_125] : memref<4x1x384xf32, #tpu.memory_space<vmem>>, vector<1x1x384xf32>
    %307 = vector.shape_cast %306 : vector<1x1x384xf32> to vector<1x384xf32>
    %c2_126 = arith.constant 2 : index
    %c0_127 = arith.constant 0 : index
    %c0_128 = arith.constant 0 : index
    %308 = vector.load %arg11[%c2_126, %c0_127, %c0_128] : memref<4x128x128xbf16, #tpu.memory_space<vmem>>, vector<1x128x128xbf16>
    %309 = vector.shape_cast %308 : vector<1x128x128xbf16> to vector<128x128xbf16>
    %c2_129 = arith.constant 2 : index
    %c0_130 = arith.constant 0 : index
    %c0_131 = arith.constant 0 : index
    %310 = vector.load %arg12[%c2_129, %c0_130, %c0_131] : memref<4x1x128xf32, #tpu.memory_space<vmem>>, vector<1x1x128xf32>
    %311 = vector.shape_cast %310 : vector<1x1x128xf32> to vector<1x128xf32>
    %c2_132 = arith.constant 2 : index
    %c0_133 = arith.constant 0 : index
    %c0_134 = arith.constant 0 : index
    %312 = vector.load %arg13[%c2_132, %c0_133, %c0_134] : memref<4x128x512xbf16, #tpu.memory_space<vmem>>, vector<1x128x512xbf16>
    %313 = vector.shape_cast %312 : vector<1x128x512xbf16> to vector<128x512xbf16>
    %c2_135 = arith.constant 2 : index
    %c0_136 = arith.constant 0 : index
    %c0_137 = arith.constant 0 : index
    %314 = vector.load %arg14[%c2_135, %c0_136, %c0_137] : memref<4x1x512xf32, #tpu.memory_space<vmem>>, vector<1x1x512xf32>
    %315 = vector.shape_cast %314 : vector<1x1x512xf32> to vector<1x512xf32>
    %c2_138 = arith.constant 2 : index
    %c0_139 = arith.constant 0 : index
    %c0_140 = arith.constant 0 : index
    %316 = vector.load %arg15[%c2_138, %c0_139, %c0_140] : memref<4x512x128xbf16, #tpu.memory_space<vmem>>, vector<1x512x128xbf16>
    %317 = vector.shape_cast %316 : vector<1x512x128xbf16> to vector<512x128xbf16>
    %c2_141 = arith.constant 2 : index
    %c0_142 = arith.constant 0 : index
    %c0_143 = arith.constant 0 : index
    %318 = vector.load %arg16[%c2_141, %c0_142, %c0_143] : memref<4x1x128xf32, #tpu.memory_space<vmem>>, vector<1x1x128xf32>
    %319 = vector.shape_cast %318 : vector<1x1x128xf32> to vector<1x128xf32>
    %c2_144 = arith.constant 2 : index
    %c0_145 = arith.constant 0 : index
    %c0_146 = arith.constant 0 : index
    %320 = vector.load %arg17[%c2_144, %c0_145, %c0_146] : memref<4x1x128xf32, #tpu.memory_space<vmem>>, vector<1x1x128xf32>
    %321 = vector.shape_cast %320 : vector<1x1x128xf32> to vector<1x128xf32>
    %c2_147 = arith.constant 2 : index
    %c0_148 = arith.constant 0 : index
    %c0_149 = arith.constant 0 : index
    %322 = vector.load %arg18[%c2_147, %c0_148, %c0_149] : memref<4x1x128xf32, #tpu.memory_space<vmem>>, vector<1x1x128xf32>
    %323 = vector.shape_cast %322 : vector<1x1x128xf32> to vector<1x128xf32>
    %c2_150 = arith.constant 2 : index
    %c0_151 = arith.constant 0 : index
    %c0_152 = arith.constant 0 : index
    %324 = vector.load %arg19[%c2_150, %c0_151, %c0_152] : memref<4x1x128xf32, #tpu.memory_space<vmem>>, vector<1x1x128xf32>
    %325 = vector.shape_cast %324 : vector<1x1x128xf32> to vector<1x128xf32>
    %c2_153 = arith.constant 2 : index
    %c0_154 = arith.constant 0 : index
    %c0_155 = arith.constant 0 : index
    %326 = vector.load %arg20[%c2_153, %c0_154, %c0_155] : memref<4x1x128xf32, #tpu.memory_space<vmem>>, vector<1x1x128xf32>
    %327 = vector.shape_cast %326 : vector<1x1x128xf32> to vector<1x128xf32>
    %328 = arith.truncf %303 : vector<16x128xf32> to vector<16x128xbf16>
    %cst_156 = arith.constant dense<0.000000e+00> : vector<16x384xf32>
    %329 = tpu.matmul %328, %305, %cst_156 {dimension_numbers = #tpu.dot_dimension_numbers<[1], [0], [0], [1], [0, 0, 1, 1], [], []>} : vector<16x128xbf16>, vector<128x384xbf16>, vector<16x384xf32> -> vector<16x384xf32>
    %330 = vector.broadcast %307 : vector<1x384xf32> to vector<16x384xf32>
    %331 = arith.addf %329, %330 : vector<16x384xf32>
    %332 = vector.extract_strided_slice %331 {offsets = [0, 0], sizes = [16, 128], strides = [1, 1]} : vector<16x384xf32> to vector<16x128xf32>
    %333 = vector.extract_strided_slice %331 {offsets = [0, 128], sizes = [16, 128], strides = [1, 1]} : vector<16x384xf32> to vector<16x128xf32>
    %334 = vector.extract_strided_slice %331 {offsets = [0, 256], sizes = [16, 128], strides = [1, 1]} : vector<16x384xf32> to vector<16x128xf32>
    %335 = vector.extract_strided_slice %332 {offsets = [0, 0], sizes = [8, 128], strides = [1, 1]} : vector<16x128xf32> to vector<8x128xf32>
    %336 = vector.extract_strided_slice %333 {offsets = [0, 0], sizes = [8, 128], strides = [1, 1]} : vector<16x128xf32> to vector<8x128xf32>
    %337 = arith.mulf %335, %336 : vector<8x128xf32>
    %338 = vector.extract_strided_slice %332 {offsets = [0, 0], sizes = [8, 128], strides = [1, 1]} : vector<16x128xf32> to vector<8x128xf32>
    %339 = vector.extract_strided_slice %333 {offsets = [8, 0], sizes = [8, 128], strides = [1, 1]} : vector<16x128xf32> to vector<8x128xf32>
    %340 = arith.mulf %338, %339 : vector<8x128xf32>
    %341 = vector.extract_strided_slice %332 {offsets = [8, 0], sizes = [8, 128], strides = [1, 1]} : vector<16x128xf32> to vector<8x128xf32>
    %342 = vector.extract_strided_slice %333 {offsets = [0, 0], sizes = [8, 128], strides = [1, 1]} : vector<16x128xf32> to vector<8x128xf32>
    %343 = arith.mulf %341, %342 : vector<8x128xf32>
    %344 = vector.extract_strided_slice %332 {offsets = [8, 0], sizes = [8, 128], strides = [1, 1]} : vector<16x128xf32> to vector<8x128xf32>
    %345 = vector.extract_strided_slice %333 {offsets = [8, 0], sizes = [8, 128], strides = [1, 1]} : vector<16x128xf32> to vector<8x128xf32>
    %346 = arith.mulf %344, %345 : vector<8x128xf32>
    %347 = tpu.concatenate %337, %340, %343, %346 in 0 : vector<8x128xf32>, vector<8x128xf32>, vector<8x128xf32>, vector<8x128xf32> -> vector<32x128xf32>
    %348 = arith.truncf %347 : vector<32x128xf32> to vector<32x128xbf16>
    %cst_157 = arith.constant dense<0.000000e+00> : vector<32x8xf32>
    %349 = tpu.matmul %348, %30, %cst_157 {dimension_numbers = #tpu.dot_dimension_numbers<[1], [0], [0], [1], [0, 0, 1, 1], [], []>} : vector<32x128xbf16>, vector<128x8xbf16>, vector<32x8xf32> -> vector<32x8xf32>
    %350 = vector.extract_strided_slice %349 {offsets = [0, 0], sizes = [8, 8], strides = [1, 1]} : vector<32x8xf32> to vector<8x8xf32>
    %351 = vector.extract_strided_slice %349 {offsets = [8, 0], sizes = [8, 8], strides = [1, 1]} : vector<32x8xf32> to vector<8x8xf32>
    %352 = arith.maximumf %350, %351 : vector<8x8xf32>
    %353 = arith.subf %350, %352 : vector<8x8xf32>
    %354 = math.exp %353 : vector<8x8xf32>
    %355 = arith.subf %351, %352 : vector<8x8xf32>
    %356 = math.exp %355 : vector<8x8xf32>
    %357 = arith.addf %354, %356 : vector<8x8xf32>
    %358 = tpu.reciprocal %357 {approx = true} : vector<8x8xf32> -> vector<8x8xf32>
    %359 = arith.mulf %354, %358 : vector<8x8xf32>
    %360 = arith.mulf %356, %358 : vector<8x8xf32>
    %361 = vector.extract_strided_slice %349 {offsets = [16, 0], sizes = [8, 8], strides = [1, 1]} : vector<32x8xf32> to vector<8x8xf32>
    %362 = vector.extract_strided_slice %349 {offsets = [24, 0], sizes = [8, 8], strides = [1, 1]} : vector<32x8xf32> to vector<8x8xf32>
    %363 = arith.maximumf %361, %362 : vector<8x8xf32>
    %364 = arith.subf %361, %363 : vector<8x8xf32>
    %365 = math.exp %364 : vector<8x8xf32>
    %366 = arith.subf %362, %363 : vector<8x8xf32>
    %367 = math.exp %366 : vector<8x8xf32>
    %368 = arith.addf %365, %367 : vector<8x8xf32>
    %369 = tpu.reciprocal %368 {approx = true} : vector<8x8xf32> -> vector<8x8xf32>
    %370 = arith.mulf %365, %369 : vector<8x8xf32>
    %371 = arith.mulf %367, %369 : vector<8x8xf32>
    %372 = tpu.concatenate %359, %360, %370, %371 in 0 : vector<8x8xf32>, vector<8x8xf32>, vector<8x8xf32>, vector<8x8xf32> -> vector<32x8xf32>
    %373 = arith.truncf %372 : vector<32x8xf32> to vector<32x8xbf16>
    %cst_158 = arith.constant dense<0.000000e+00> : vector<32x128xf32>
    %374 = tpu.matmul %373, %31, %cst_158 {dimension_numbers = #tpu.dot_dimension_numbers<[1], [0], [0], [1], [0, 0, 1, 1], [], []>} : vector<32x8xbf16>, vector<8x128xbf16>, vector<32x128xf32> -> vector<32x128xf32>
    %375 = tpu.concatenate %334, %334 in 0 : vector<16x128xf32>, vector<16x128xf32> -> vector<32x128xf32>
    %376 = arith.mulf %374, %375 : vector<32x128xf32>
    %377 = vector.extract_strided_slice %376 {offsets = [0, 0], sizes = [8, 128], strides = [1, 1]} : vector<32x128xf32> to vector<8x128xf32>
    %378 = vector.extract_strided_slice %376 {offsets = [8, 0], sizes = [8, 128], strides = [1, 1]} : vector<32x128xf32> to vector<8x128xf32>
    %379 = arith.addf %377, %378 : vector<8x128xf32>
    %380 = vector.extract_strided_slice %376 {offsets = [16, 0], sizes = [8, 128], strides = [1, 1]} : vector<32x128xf32> to vector<8x128xf32>
    %381 = vector.extract_strided_slice %376 {offsets = [24, 0], sizes = [8, 128], strides = [1, 1]} : vector<32x128xf32> to vector<8x128xf32>
    %382 = arith.addf %380, %381 : vector<8x128xf32>
    %383 = tpu.concatenate %379, %382 in 0 : vector<8x128xf32>, vector<8x128xf32> -> vector<16x128xf32>
    %384 = arith.truncf %383 : vector<16x128xf32> to vector<16x128xbf16>
    %cst_159 = arith.constant dense<0.000000e+00> : vector<16x128xf32>
    %385 = tpu.matmul %384, %309, %cst_159 {dimension_numbers = #tpu.dot_dimension_numbers<[1], [0], [0], [1], [0, 0, 1, 1], [], []>} : vector<16x128xbf16>, vector<128x128xbf16>, vector<16x128xf32> -> vector<16x128xf32>
    %386 = vector.broadcast %311 : vector<1x128xf32> to vector<16x128xf32>
    %387 = arith.addf %385, %386 : vector<16x128xf32>
    %388 = arith.addf %303, %387 : vector<16x128xf32>
    %cst_160 = arith.constant dense<0.000000e+00> : vector<16xf32>
    %389 = vector.multi_reduction <add>, %388, %cst_160 [1] : vector<16x128xf32> to vector<16xf32>
    %390 = vector.shape_cast %389 : vector<16xf32> to vector<16x1xf32>
    %cst_161 = arith.constant 1.280000e+02 : f32
    %391 = vector.broadcast %cst_161 : f32 to vector<16x1xf32>
    %392 = arith.divf %390, %391 : vector<16x1xf32>
    %393 = vector.broadcast %392 : vector<16x1xf32> to vector<16x128xf32>
    %394 = arith.subf %388, %393 : vector<16x128xf32>
    %395 = arith.mulf %394, %394 : vector<16x128xf32>
    %cst_162 = arith.constant dense<0.000000e+00> : vector<16xf32>
    %396 = vector.multi_reduction <add>, %395, %cst_162 [1] : vector<16x128xf32> to vector<16xf32>
    %397 = vector.shape_cast %396 : vector<16xf32> to vector<16x1xf32>
    %cst_163 = arith.constant 1.280000e+02 : f32
    %398 = vector.broadcast %cst_163 : f32 to vector<16x1xf32>
    %399 = arith.divf %397, %398 : vector<16x1xf32>
    %cst_164 = arith.constant 9.99999974E-6 : f32
    %400 = vector.broadcast %cst_164 : f32 to vector<16x1xf32>
    %401 = arith.addf %399, %400 : vector<16x1xf32>
    %402 = math.rsqrt %401 : vector<16x1xf32>
    %403 = vector.broadcast %402 : vector<16x1xf32> to vector<16x128xf32>
    %404 = arith.mulf %394, %403 : vector<16x128xf32>
    %405 = vector.broadcast %321 : vector<1x128xf32> to vector<16x128xf32>
    %406 = arith.mulf %404, %405 : vector<16x128xf32>
    %407 = vector.broadcast %323 : vector<1x128xf32> to vector<16x128xf32>
    %408 = arith.addf %406, %407 : vector<16x128xf32>
    %409 = arith.truncf %408 : vector<16x128xf32> to vector<16x128xbf16>
    %cst_165 = arith.constant dense<0.000000e+00> : vector<16x512xf32>
    %410 = tpu.matmul %409, %313, %cst_165 {dimension_numbers = #tpu.dot_dimension_numbers<[1], [0], [0], [1], [0, 0, 1, 1], [], []>} : vector<16x128xbf16>, vector<128x512xbf16>, vector<16x512xf32> -> vector<16x512xf32>
    %411 = vector.broadcast %315 : vector<1x512xf32> to vector<16x512xf32>
    %412 = arith.addf %410, %411 : vector<16x512xf32>
    %cst_166 = arith.constant 0.000000e+00 : f32
    %413 = vector.broadcast %cst_166 : f32 to vector<16x512xf32>
    %414 = arith.maximumf %412, %413 : vector<16x512xf32>
    %415 = arith.truncf %414 : vector<16x512xf32> to vector<16x512xbf16>
    %cst_167 = arith.constant dense<0.000000e+00> : vector<16x128xf32>
    %416 = tpu.matmul %415, %317, %cst_167 {dimension_numbers = #tpu.dot_dimension_numbers<[1], [0], [0], [1], [0, 0, 1, 1], [], []>} : vector<16x512xbf16>, vector<512x128xbf16>, vector<16x128xf32> -> vector<16x128xf32>
    %417 = vector.broadcast %319 : vector<1x128xf32> to vector<16x128xf32>
    %418 = arith.addf %416, %417 : vector<16x128xf32>
    %419 = arith.addf %408, %418 : vector<16x128xf32>
    %cst_168 = arith.constant dense<0.000000e+00> : vector<16xf32>
    %420 = vector.multi_reduction <add>, %419, %cst_168 [1] : vector<16x128xf32> to vector<16xf32>
    %421 = vector.shape_cast %420 : vector<16xf32> to vector<16x1xf32>
    %cst_169 = arith.constant 1.280000e+02 : f32
    %422 = vector.broadcast %cst_169 : f32 to vector<16x1xf32>
    %423 = arith.divf %421, %422 : vector<16x1xf32>
    %424 = vector.broadcast %423 : vector<16x1xf32> to vector<16x128xf32>
    %425 = arith.subf %419, %424 : vector<16x128xf32>
    %426 = arith.mulf %425, %425 : vector<16x128xf32>
    %cst_170 = arith.constant dense<0.000000e+00> : vector<16xf32>
    %427 = vector.multi_reduction <add>, %426, %cst_170 [1] : vector<16x128xf32> to vector<16xf32>
    %428 = vector.shape_cast %427 : vector<16xf32> to vector<16x1xf32>
    %cst_171 = arith.constant 1.280000e+02 : f32
    %429 = vector.broadcast %cst_171 : f32 to vector<16x1xf32>
    %430 = arith.divf %428, %429 : vector<16x1xf32>
    %cst_172 = arith.constant 9.99999974E-6 : f32
    %431 = vector.broadcast %cst_172 : f32 to vector<16x1xf32>
    %432 = arith.addf %430, %431 : vector<16x1xf32>
    %433 = math.rsqrt %432 : vector<16x1xf32>
    %434 = vector.broadcast %433 : vector<16x1xf32> to vector<16x128xf32>
    %435 = arith.mulf %425, %434 : vector<16x128xf32>
    %436 = vector.broadcast %325 : vector<1x128xf32> to vector<16x128xf32>
    %437 = arith.mulf %435, %436 : vector<16x128xf32>
    %438 = vector.broadcast %327 : vector<1x128xf32> to vector<16x128xf32>
    %439 = arith.addf %437, %438 : vector<16x128xf32>
    %c3 = arith.constant 3 : index
    %c0_173 = arith.constant 0 : index
    %c0_174 = arith.constant 0 : index
    %440 = vector.load %arg9[%c3, %c0_173, %c0_174] : memref<4x128x384xbf16, #tpu.memory_space<vmem>>, vector<1x128x384xbf16>
    %441 = vector.shape_cast %440 : vector<1x128x384xbf16> to vector<128x384xbf16>
    %c3_175 = arith.constant 3 : index
    %c0_176 = arith.constant 0 : index
    %c0_177 = arith.constant 0 : index
    %442 = vector.load %arg10[%c3_175, %c0_176, %c0_177] : memref<4x1x384xf32, #tpu.memory_space<vmem>>, vector<1x1x384xf32>
    %443 = vector.shape_cast %442 : vector<1x1x384xf32> to vector<1x384xf32>
    %c3_178 = arith.constant 3 : index
    %c0_179 = arith.constant 0 : index
    %c0_180 = arith.constant 0 : index
    %444 = vector.load %arg11[%c3_178, %c0_179, %c0_180] : memref<4x128x128xbf16, #tpu.memory_space<vmem>>, vector<1x128x128xbf16>
    %445 = vector.shape_cast %444 : vector<1x128x128xbf16> to vector<128x128xbf16>
    %c3_181 = arith.constant 3 : index
    %c0_182 = arith.constant 0 : index
    %c0_183 = arith.constant 0 : index
    %446 = vector.load %arg12[%c3_181, %c0_182, %c0_183] : memref<4x1x128xf32, #tpu.memory_space<vmem>>, vector<1x1x128xf32>
    %447 = vector.shape_cast %446 : vector<1x1x128xf32> to vector<1x128xf32>
    %c3_184 = arith.constant 3 : index
    %c0_185 = arith.constant 0 : index
    %c0_186 = arith.constant 0 : index
    %448 = vector.load %arg13[%c3_184, %c0_185, %c0_186] : memref<4x128x512xbf16, #tpu.memory_space<vmem>>, vector<1x128x512xbf16>
    %449 = vector.shape_cast %448 : vector<1x128x512xbf16> to vector<128x512xbf16>
    %c3_187 = arith.constant 3 : index
    %c0_188 = arith.constant 0 : index
    %c0_189 = arith.constant 0 : index
    %450 = vector.load %arg14[%c3_187, %c0_188, %c0_189] : memref<4x1x512xf32, #tpu.memory_space<vmem>>, vector<1x1x512xf32>
    %451 = vector.shape_cast %450 : vector<1x1x512xf32> to vector<1x512xf32>
    %c3_190 = arith.constant 3 : index
    %c0_191 = arith.constant 0 : index
    %c0_192 = arith.constant 0 : index
    %452 = vector.load %arg15[%c3_190, %c0_191, %c0_192] : memref<4x512x128xbf16, #tpu.memory_space<vmem>>, vector<1x512x128xbf16>
    %453 = vector.shape_cast %452 : vector<1x512x128xbf16> to vector<512x128xbf16>
    %c3_193 = arith.constant 3 : index
    %c0_194 = arith.constant 0 : index
    %c0_195 = arith.constant 0 : index
    %454 = vector.load %arg16[%c3_193, %c0_194, %c0_195] : memref<4x1x128xf32, #tpu.memory_space<vmem>>, vector<1x1x128xf32>
    %455 = vector.shape_cast %454 : vector<1x1x128xf32> to vector<1x128xf32>
    %c3_196 = arith.constant 3 : index
    %c0_197 = arith.constant 0 : index
    %c0_198 = arith.constant 0 : index
    %456 = vector.load %arg17[%c3_196, %c0_197, %c0_198] : memref<4x1x128xf32, #tpu.memory_space<vmem>>, vector<1x1x128xf32>
    %457 = vector.shape_cast %456 : vector<1x1x128xf32> to vector<1x128xf32>
    %c3_199 = arith.constant 3 : index
    %c0_200 = arith.constant 0 : index
    %c0_201 = arith.constant 0 : index
    %458 = vector.load %arg18[%c3_199, %c0_200, %c0_201] : memref<4x1x128xf32, #tpu.memory_space<vmem>>, vector<1x1x128xf32>
    %459 = vector.shape_cast %458 : vector<1x1x128xf32> to vector<1x128xf32>
    %c3_202 = arith.constant 3 : index
    %c0_203 = arith.constant 0 : index
    %c0_204 = arith.constant 0 : index
    %460 = vector.load %arg19[%c3_202, %c0_203, %c0_204] : memref<4x1x128xf32, #tpu.memory_space<vmem>>, vector<1x1x128xf32>
    %461 = vector.shape_cast %460 : vector<1x1x128xf32> to vector<1x128xf32>
    %c3_205 = arith.constant 3 : index
    %c0_206 = arith.constant 0 : index
    %c0_207 = arith.constant 0 : index
    %462 = vector.load %arg20[%c3_205, %c0_206, %c0_207] : memref<4x1x128xf32, #tpu.memory_space<vmem>>, vector<1x1x128xf32>
    %463 = vector.shape_cast %462 : vector<1x1x128xf32> to vector<1x128xf32>
    %464 = arith.truncf %439 : vector<16x128xf32> to vector<16x128xbf16>
    %cst_208 = arith.constant dense<0.000000e+00> : vector<16x384xf32>
    %465 = tpu.matmul %464, %441, %cst_208 {dimension_numbers = #tpu.dot_dimension_numbers<[1], [0], [0], [1], [0, 0, 1, 1], [], []>} : vector<16x128xbf16>, vector<128x384xbf16>, vector<16x384xf32> -> vector<16x384xf32>
    %466 = vector.broadcast %443 : vector<1x384xf32> to vector<16x384xf32>
    %467 = arith.addf %465, %466 : vector<16x384xf32>
    %468 = vector.extract_strided_slice %467 {offsets = [0, 0], sizes = [16, 128], strides = [1, 1]} : vector<16x384xf32> to vector<16x128xf32>
    %469 = vector.extract_strided_slice %467 {offsets = [0, 128], sizes = [16, 128], strides = [1, 1]} : vector<16x384xf32> to vector<16x128xf32>
    %470 = vector.extract_strided_slice %467 {offsets = [0, 256], sizes = [16, 128], strides = [1, 1]} : vector<16x384xf32> to vector<16x128xf32>
    %471 = vector.extract_strided_slice %468 {offsets = [0, 0], sizes = [8, 128], strides = [1, 1]} : vector<16x128xf32> to vector<8x128xf32>
    %472 = vector.extract_strided_slice %469 {offsets = [0, 0], sizes = [8, 128], strides = [1, 1]} : vector<16x128xf32> to vector<8x128xf32>
    %473 = arith.mulf %471, %472 : vector<8x128xf32>
    %474 = vector.extract_strided_slice %468 {offsets = [0, 0], sizes = [8, 128], strides = [1, 1]} : vector<16x128xf32> to vector<8x128xf32>
    %475 = vector.extract_strided_slice %469 {offsets = [8, 0], sizes = [8, 128], strides = [1, 1]} : vector<16x128xf32> to vector<8x128xf32>
    %476 = arith.mulf %474, %475 : vector<8x128xf32>
    %477 = vector.extract_strided_slice %468 {offsets = [8, 0], sizes = [8, 128], strides = [1, 1]} : vector<16x128xf32> to vector<8x128xf32>
    %478 = vector.extract_strided_slice %469 {offsets = [0, 0], sizes = [8, 128], strides = [1, 1]} : vector<16x128xf32> to vector<8x128xf32>
    %479 = arith.mulf %477, %478 : vector<8x128xf32>
    %480 = vector.extract_strided_slice %468 {offsets = [8, 0], sizes = [8, 128], strides = [1, 1]} : vector<16x128xf32> to vector<8x128xf32>
    %481 = vector.extract_strided_slice %469 {offsets = [8, 0], sizes = [8, 128], strides = [1, 1]} : vector<16x128xf32> to vector<8x128xf32>
    %482 = arith.mulf %480, %481 : vector<8x128xf32>
    %483 = tpu.concatenate %473, %476, %479, %482 in 0 : vector<8x128xf32>, vector<8x128xf32>, vector<8x128xf32>, vector<8x128xf32> -> vector<32x128xf32>
    %484 = arith.truncf %483 : vector<32x128xf32> to vector<32x128xbf16>
    %cst_209 = arith.constant dense<0.000000e+00> : vector<32x8xf32>
    %485 = tpu.matmul %484, %30, %cst_209 {dimension_numbers = #tpu.dot_dimension_numbers<[1], [0], [0], [1], [0, 0, 1, 1], [], []>} : vector<32x128xbf16>, vector<128x8xbf16>, vector<32x8xf32> -> vector<32x8xf32>
    %486 = vector.extract_strided_slice %485 {offsets = [0, 0], sizes = [8, 8], strides = [1, 1]} : vector<32x8xf32> to vector<8x8xf32>
    %487 = vector.extract_strided_slice %485 {offsets = [8, 0], sizes = [8, 8], strides = [1, 1]} : vector<32x8xf32> to vector<8x8xf32>
    %488 = arith.maximumf %486, %487 : vector<8x8xf32>
    %489 = arith.subf %486, %488 : vector<8x8xf32>
    %490 = math.exp %489 : vector<8x8xf32>
    %491 = arith.subf %487, %488 : vector<8x8xf32>
    %492 = math.exp %491 : vector<8x8xf32>
    %493 = arith.addf %490, %492 : vector<8x8xf32>
    %494 = tpu.reciprocal %493 {approx = true} : vector<8x8xf32> -> vector<8x8xf32>
    %495 = arith.mulf %490, %494 : vector<8x8xf32>
    %496 = arith.mulf %492, %494 : vector<8x8xf32>
    %497 = vector.extract_strided_slice %485 {offsets = [16, 0], sizes = [8, 8], strides = [1, 1]} : vector<32x8xf32> to vector<8x8xf32>
    %498 = vector.extract_strided_slice %485 {offsets = [24, 0], sizes = [8, 8], strides = [1, 1]} : vector<32x8xf32> to vector<8x8xf32>
    %499 = arith.maximumf %497, %498 : vector<8x8xf32>
    %500 = arith.subf %497, %499 : vector<8x8xf32>
    %501 = math.exp %500 : vector<8x8xf32>
    %502 = arith.subf %498, %499 : vector<8x8xf32>
    %503 = math.exp %502 : vector<8x8xf32>
    %504 = arith.addf %501, %503 : vector<8x8xf32>
    %505 = tpu.reciprocal %504 {approx = true} : vector<8x8xf32> -> vector<8x8xf32>
    %506 = arith.mulf %501, %505 : vector<8x8xf32>
    %507 = arith.mulf %503, %505 : vector<8x8xf32>
    %508 = tpu.concatenate %495, %496, %506, %507 in 0 : vector<8x8xf32>, vector<8x8xf32>, vector<8x8xf32>, vector<8x8xf32> -> vector<32x8xf32>
    %509 = arith.truncf %508 : vector<32x8xf32> to vector<32x8xbf16>
    %cst_210 = arith.constant dense<0.000000e+00> : vector<32x128xf32>
    %510 = tpu.matmul %509, %31, %cst_210 {dimension_numbers = #tpu.dot_dimension_numbers<[1], [0], [0], [1], [0, 0, 1, 1], [], []>} : vector<32x8xbf16>, vector<8x128xbf16>, vector<32x128xf32> -> vector<32x128xf32>
    %511 = tpu.concatenate %470, %470 in 0 : vector<16x128xf32>, vector<16x128xf32> -> vector<32x128xf32>
    %512 = arith.mulf %510, %511 : vector<32x128xf32>
    %513 = vector.extract_strided_slice %512 {offsets = [0, 0], sizes = [8, 128], strides = [1, 1]} : vector<32x128xf32> to vector<8x128xf32>
    %514 = vector.extract_strided_slice %512 {offsets = [8, 0], sizes = [8, 128], strides = [1, 1]} : vector<32x128xf32> to vector<8x128xf32>
    %515 = arith.addf %513, %514 : vector<8x128xf32>
    %516 = vector.extract_strided_slice %512 {offsets = [16, 0], sizes = [8, 128], strides = [1, 1]} : vector<32x128xf32> to vector<8x128xf32>
    %517 = vector.extract_strided_slice %512 {offsets = [24, 0], sizes = [8, 128], strides = [1, 1]} : vector<32x128xf32> to vector<8x128xf32>
    %518 = arith.addf %516, %517 : vector<8x128xf32>
    %519 = tpu.concatenate %515, %518 in 0 : vector<8x128xf32>, vector<8x128xf32> -> vector<16x128xf32>
    %520 = arith.truncf %519 : vector<16x128xf32> to vector<16x128xbf16>
    %cst_211 = arith.constant dense<0.000000e+00> : vector<16x128xf32>
    %521 = tpu.matmul %520, %445, %cst_211 {dimension_numbers = #tpu.dot_dimension_numbers<[1], [0], [0], [1], [0, 0, 1, 1], [], []>} : vector<16x128xbf16>, vector<128x128xbf16>, vector<16x128xf32> -> vector<16x128xf32>
    %522 = vector.broadcast %447 : vector<1x128xf32> to vector<16x128xf32>
    %523 = arith.addf %521, %522 : vector<16x128xf32>
    %524 = arith.addf %439, %523 : vector<16x128xf32>
    %cst_212 = arith.constant dense<0.000000e+00> : vector<16xf32>
    %525 = vector.multi_reduction <add>, %524, %cst_212 [1] : vector<16x128xf32> to vector<16xf32>
    %526 = vector.shape_cast %525 : vector<16xf32> to vector<16x1xf32>
    %cst_213 = arith.constant 1.280000e+02 : f32
    %527 = vector.broadcast %cst_213 : f32 to vector<16x1xf32>
    %528 = arith.divf %526, %527 : vector<16x1xf32>
    %529 = vector.broadcast %528 : vector<16x1xf32> to vector<16x128xf32>
    %530 = arith.subf %524, %529 : vector<16x128xf32>
    %531 = arith.mulf %530, %530 : vector<16x128xf32>
    %cst_214 = arith.constant dense<0.000000e+00> : vector<16xf32>
    %532 = vector.multi_reduction <add>, %531, %cst_214 [1] : vector<16x128xf32> to vector<16xf32>
    %533 = vector.shape_cast %532 : vector<16xf32> to vector<16x1xf32>
    %cst_215 = arith.constant 1.280000e+02 : f32
    %534 = vector.broadcast %cst_215 : f32 to vector<16x1xf32>
    %535 = arith.divf %533, %534 : vector<16x1xf32>
    %cst_216 = arith.constant 9.99999974E-6 : f32
    %536 = vector.broadcast %cst_216 : f32 to vector<16x1xf32>
    %537 = arith.addf %535, %536 : vector<16x1xf32>
    %538 = math.rsqrt %537 : vector<16x1xf32>
    %539 = vector.broadcast %538 : vector<16x1xf32> to vector<16x128xf32>
    %540 = arith.mulf %530, %539 : vector<16x128xf32>
    %541 = vector.broadcast %457 : vector<1x128xf32> to vector<16x128xf32>
    %542 = arith.mulf %540, %541 : vector<16x128xf32>
    %543 = vector.broadcast %459 : vector<1x128xf32> to vector<16x128xf32>
    %544 = arith.addf %542, %543 : vector<16x128xf32>
    %545 = arith.truncf %544 : vector<16x128xf32> to vector<16x128xbf16>
    %cst_217 = arith.constant dense<0.000000e+00> : vector<16x512xf32>
    %546 = tpu.matmul %545, %449, %cst_217 {dimension_numbers = #tpu.dot_dimension_numbers<[1], [0], [0], [1], [0, 0, 1, 1], [], []>} : vector<16x128xbf16>, vector<128x512xbf16>, vector<16x512xf32> -> vector<16x512xf32>
    %547 = vector.broadcast %451 : vector<1x512xf32> to vector<16x512xf32>
    %548 = arith.addf %546, %547 : vector<16x512xf32>
    %cst_218 = arith.constant 0.000000e+00 : f32
    %549 = vector.broadcast %cst_218 : f32 to vector<16x512xf32>
    %550 = arith.maximumf %548, %549 : vector<16x512xf32>
    %551 = arith.truncf %550 : vector<16x512xf32> to vector<16x512xbf16>
    %cst_219 = arith.constant dense<0.000000e+00> : vector<16x128xf32>
    %552 = tpu.matmul %551, %453, %cst_219 {dimension_numbers = #tpu.dot_dimension_numbers<[1], [0], [0], [1], [0, 0, 1, 1], [], []>} : vector<16x512xbf16>, vector<512x128xbf16>, vector<16x128xf32> -> vector<16x128xf32>
    %553 = vector.broadcast %455 : vector<1x128xf32> to vector<16x128xf32>
    %554 = arith.addf %552, %553 : vector<16x128xf32>
    %555 = arith.addf %544, %554 : vector<16x128xf32>
    %cst_220 = arith.constant dense<0.000000e+00> : vector<16xf32>
    %556 = vector.multi_reduction <add>, %555, %cst_220 [1] : vector<16x128xf32> to vector<16xf32>
    %557 = vector.shape_cast %556 : vector<16xf32> to vector<16x1xf32>
    %cst_221 = arith.constant 1.280000e+02 : f32
    %558 = vector.broadcast %cst_221 : f32 to vector<16x1xf32>
    %559 = arith.divf %557, %558 : vector<16x1xf32>
    %560 = vector.broadcast %559 : vector<16x1xf32> to vector<16x128xf32>
    %561 = arith.subf %555, %560 : vector<16x128xf32>
    %562 = arith.mulf %561, %561 : vector<16x128xf32>
    %cst_222 = arith.constant dense<0.000000e+00> : vector<16xf32>
    %563 = vector.multi_reduction <add>, %562, %cst_222 [1] : vector<16x128xf32> to vector<16xf32>
    %564 = vector.shape_cast %563 : vector<16xf32> to vector<16x1xf32>
    %cst_223 = arith.constant 1.280000e+02 : f32
    %565 = vector.broadcast %cst_223 : f32 to vector<16x1xf32>
    %566 = arith.divf %564, %565 : vector<16x1xf32>
    %cst_224 = arith.constant 9.99999974E-6 : f32
    %567 = vector.broadcast %cst_224 : f32 to vector<16x1xf32>
    %568 = arith.addf %566, %567 : vector<16x1xf32>
    %569 = math.rsqrt %568 : vector<16x1xf32>
    %570 = vector.broadcast %569 : vector<16x1xf32> to vector<16x128xf32>
    %571 = arith.mulf %561, %570 : vector<16x128xf32>
    %572 = vector.broadcast %461 : vector<1x128xf32> to vector<16x128xf32>
    %573 = arith.mulf %571, %572 : vector<16x128xf32>
    %574 = vector.broadcast %463 : vector<1x128xf32> to vector<16x128xf32>
    %575 = arith.addf %573, %574 : vector<16x128xf32>
    %576 = arith.truncf %575 : vector<16x128xf32> to vector<16x128xbf16>
    %c0_225 = arith.constant 0 : index
    %c0_226 = arith.constant 0 : index
    %577 = vector.load %arg7[%c0_225, %c0_226] : memref<128x128xbf16, #tpu.memory_space<vmem>>, vector<128x128xbf16>
    %cst_227 = arith.constant dense<0.000000e+00> : vector<16x128xf32>
    %578 = tpu.matmul %576, %577, %cst_227 {dimension_numbers = #tpu.dot_dimension_numbers<[1], [0], [0], [1], [0, 0, 1, 1], [], []>} : vector<16x128xbf16>, vector<128x128xbf16>, vector<16x128xf32> -> vector<16x128xf32>
    %c0_228 = arith.constant 0 : index
    %c0_229 = arith.constant 0 : index
    %579 = vector.load %arg8[%c0_228, %c0_229] : memref<1x128xf32, #tpu.memory_space<vmem>>, vector<1x128xf32>
    %580 = vector.broadcast %579 : vector<1x128xf32> to vector<16x128xf32>
    %581 = arith.addf %578, %580 : vector<16x128xf32>
    %c0_230 = arith.constant 0 : index
    %c0_231 = arith.constant 0 : index
    %582 = vector.load %arg21[%c0_230, %c0_231] : memref<16x128xf32, #tpu.memory_space<vmem>>, vector<16x128xf32>
    tpu.vector_store %arg21[%c0_230, %c0_231], %581 {strides = array<i32>} : memref<16x128xf32, #tpu.memory_space<vmem>>, vector<16x128xf32>,
    return
  }
}

</mosaic_0001>

<bundles_post_ra>
// kernel: transformer_cnn_forward.1
= control target key start
LH: loop header
LB: loop body
LE: loop exit
PB: predicated region body
PF: predicated region fallthrough
CT: control target
= control target key end

     0   :  { %s8663_s0 = inlined_call_operand.vmem [shape: f32[16,128], index: 0, kind: input, shape index: {}]   ;;  %s8664_s1 = inlined_call_operand.vmem [shape: bf16[128,128], index: 1, kind: input, shape index: {}]   ;;  %s8665_s2 = inlined_call_operand.vmem [shape: f32[1,128], index: 2, kind: input, shape index: {}]   ;;  %s8666_s3 = inlined_call_operand.hbm [shape: bf16[128,384], index: 3, kind: input, shape index: {}]   ;;  %s8667_s4 = inlined_call_operand.hbm [shape: f32[1,128], index: 4, kind: input, shape index: {}]   ;;  %s8668_s5 = inlined_call_operand.vmem [shape: bf16[128,8], index: 5, kind: input, shape index: {}]   ;;  %s8669_s6 = inlined_call_operand.vmem [shape: bf16[8,128], index: 6, kind: input, shape index: {}]   ;;  %s8670_s7 = inlined_call_operand.vmem [shape: bf16[128,128], index: 7, kind: input, shape index: {}]   ;;  %s8671_s8 = inlined_call_operand.vmem [shape: f32[1,128], index: 8, kind: input, shape index: {}]   ;;  %s8672_s9 = inlined_call_operand.hbm [shape: bf16[4,128,384], index: 9, kind: input, shape index: {}]   ;;  %s8673_s10 = inlined_call_operand.vmem [shape: f32[4,1,384], index: 10, kind: input, shape index: {}]   ;;  %s8674_s11 = inlined_call_operand.hbm [shape: bf16[4,128,128], index: 11, kind: input, shape index: {}]   ;;  %s8675_s12 = inlined_call_operand.hbm [shape: f32[4,1,128], index: 12, kind: input, shape index: {}]   ;;  %s8676_s13 = inlined_call_operand.hbm [shape: bf16[4,128,512], index: 13, kind: input, shape index: {}]   ;;  %s8677_s14 = inlined_call_operand.vmem [shape: f32[4,1,512], index: 14, kind: input, shape index: {}]   ;;  %s8678_s15 = inlined_call_operand.hbm [shape: bf16[4,512,128], index: 15, kind: input, shape index: {}]   ;;  %s8679_s16 = inlined_call_operand.hbm [shape: f32[4,1,128], index: 16, kind: input, shape index: {}]   ;;  %s8680_s17 = inlined_call_operand.vmem [shape: f32[4,1,128], index: 17, kind: input, shape index: {}]   ;;  %s8681_s18 = inlined_call_operand.hbm [shape: f32[4,1,128], index: 18, kind: input, shape index: {}]   ;;  %s8682_s19 = inlined_call_operand.vmem [shape: f32[4,1,128], index: 19, kind: input, shape index: {}]   ;;  %s8683_s20 = inlined_call_operand.hbm [shape: f32[4,1,128], index: 20, kind: input, shape index: {}]   ;;  %s8684_s21 = inlined_call_operand.vmem [shape: f32[16,128], index: 21, kind: output, shape index: {}]  }
   0x1   :  { %8689 = sst [smem:[#allocation24_spill]] %s8663_s0 }
   0x2   :  { %8690 = sst [smem:[#allocation25_spill]] %s8664_s1 }
   0x3   :  { %8691 = sst [smem:[#allocation26_spill]] %s8665_s2 }
   0x4   :  { %8692 = sst [smem:[#allocation27_spill]] %s8666_s3 }
   0x5   :  { %8693 = sst [smem:[#allocation28_spill]] %s8667_s4 }
   0x6   :  { %8694 = sst [smem:[#allocation29_spill]] %s8668_s5 }
   0x7   :  { %26 = vsyncpa [#allocation3], 0 }
   0x8   :  { %27 = vsyncpa [#allocation5], 0 }
   0x9   :  { %28 = vsyncpa [#allocation8], 0 }
   0xa   :  { %29 = vsyncpa [#allocation11], 0 }
   0xb   :  { %30 = vsyncpa [#allocation14], 0 }
   0xc   :  { %31 = vsyncpa [#allocation17], 0  ;;  %s7845_s2 = smov [#allocation4]   ;;  %s7846_s26 = smov [#allocation7]  }
   0xd   :  { %s56_s25 = sshll.u32 %s7845_s2, 4  ;;  %s87_s27 = sshll.u32 %s7846_s26, 4  ;;  %s57_s25 = int_to_ptr.vmem [resolvable:$true] %s56_s25  ;;  %s88_s27 = int_to_ptr.vmem [resolvable:$true] %s87_s27 }
   0xe   :  { %s7641_s3 = scalar_lea.vmem %s57_s25, 16  ;;  %s7645_s28 = scalar_lea.vmem %s57_s25, 32 }
   0xf   :  { %p7642_p0 = scmp.ne.s32.totalorder %s57_s25, %s7641_s3  ;;  %p7646_p1 = scmp.lt.s32.totalorder %s57_s25, %s57_s25 }
  0x10   :  { %p7647_p2 = scmp.lt.s32.totalorder %s7645_s28, %s7641_s3 }
  0x12   :  { %p7648_p3 = por %p7647_p2, %p7646_p1 }
  0x14   :  { %p7649_p4 = pnand %p7648_p3, %p7642_p0 }
  0x16   :  { %7652 = shalt.err (!%p7649_p4)
}
  0x17   :  { %s8695_s4 = sld [smem:[#allocation28_spill]]  ;;  %s7661_s30 = scalar_lea.vmem %s88_s27, 4096 }
  0x18   :  { %p7662_p5 = scmp.ne.s32.totalorder %s88_s27, %s7661_s30  ;;  %p7666_p6 = scmp.lt.s32.totalorder %s88_s27, %s88_s27 }
  0x19   :  { %p7667_p7 = scmp.lt.s32.totalorder %s7661_s30, %s7661_s30 }
  0x1b   :  { %p7668_p8 = por %p7667_p7, %p7666_p6 }
  0x1d   :  { %59 = dma.hbm_to_vmem [thread:$0]  %s8695_s4, 16, %s57_s25, [#allocation5]  }
  0x1e   :  { %p7669_p9 = pnand %p7668_p8, %p7662_p5 }
  0x20   :  { %7672 = shalt.err (!%p7669_p9)
}
  0x21   :  { %s8688_s5 = smov 64   ;;  %s7848_s22 = smov 4  }
  0x22   :  { %93 = dma.hbm_to_vmem [thread:$0]  %s8674_s11, 4096, %s88_s27, [#allocation8], %s8688_s5, %s8688_s5, %s7848_s22  }
  0x23   :  { %s7849_s24 = smov [#allocation10]  }
  0x24   :  { %s111_s2 = sshll.u32 %s7849_s24, 4  ;;  %s112_s2 = int_to_ptr.vmem [resolvable:$true] %s111_s2 }
  0x25   :  { %s7681_s25 = scalar_lea.vmem %s112_s2, 16384  ;;  %p7686_p11 = scmp.lt.s32.totalorder %s112_s2, %s112_s2 }
  0x26   :  { %p7682_p10 = scmp.ne.s32.totalorder %s112_s2, %s7681_s25  ;;  %p7687_p12 = scmp.lt.s32.totalorder %s7681_s25, %s7681_s25 }
  0x28   :  { %p7688_p13 = por %p7687_p12, %p7686_p11 }
  0x2a   :  { %p7689_p0 = pnand %p7688_p13, %p7682_p10 }
  0x2c   :  { %7692 = shalt.err (!%p7689_p0)
}
  0x2d   :  { %s7850_s26 = smov 256   ;;  %s7851_s3 = smov 16  }
  0x2e   :  { %117 = dma.hbm_to_vmem [thread:$0]  %s8676_s13, 16384, %s112_s2, [#allocation11], %s7850_s26, %s7850_s26, %s7851_s3  }
  0x2f   :  { %s7852_s0 = smov [#allocation13]   ;;  %s7853_s11 = smov [#allocation2]  }
  0x30   :  { %s137_s4 = sshll.u32 %s7852_s0, 4  ;;  %s43_s27 = sshll.u32 %s7853_s11, 4  ;;  %s138_s4 = int_to_ptr.vmem [resolvable:$true] %s137_s4  ;;  %s44_s27 = int_to_ptr.vmem [resolvable:$true] %s43_s27 }
  0x31   :  { %s7701_s30 = scalar_lea.vmem %s138_s4, 64  ;;  %p7706_p2 = scmp.lt.s32.totalorder %s138_s4, %s138_s4 }
  0x32   :  { %p7702_p1 = scmp.ne.s32.totalorder %s138_s4, %s7701_s30  ;;  %p7707_p3 = scmp.lt.s32.totalorder %s7701_s30, %s7701_s30 }
  0x34   :  { %p7708_p4 = por %p7707_p3, %p7706_p2 }
  0x36   :  { %p7709_p5 = pnand %p7708_p4, %p7702_p1 }
  0x38   :  { %7712 = shalt.err (!%p7709_p5)
}
  0x39   :  { %s7854_s23 = smov 1   ;;  %s7721_s13 = scalar_lea.vmem %s44_s27, 3072 }
  0x3a   :  { %143 = dma.hbm_to_vmem [thread:$0]  %s8679_s16, 64, %s138_s4, [#allocation14], %s7851_s3, %s7851_s3, %s7854_s23  }
  0x3b   :  { %p7722_p6 = scmp.ne.s32.totalorder %s44_s27, %s7721_s13  ;;  %p7726_p7 = scmp.lt.s32.totalorder %s44_s27, %s44_s27 }
  0x3c   :  { %p7727_p8 = scmp.lt.s32.totalorder %s7721_s13, %s7721_s13 }
  0x3e   :  { %p7728_p9 = por %p7727_p8, %p7726_p7 }
  0x40   :  { %p7729_p10 = pnand %p7728_p9, %p7722_p6 }
  0x42   :  { %7732 = shalt.err (!%p7729_p10)
}
  0x43   :  { %s7855_s2 = smov 192   ;;  %s7856_s25 = smov 12  }
  0x44   :  { %s8696_s29 = sld [smem:[#allocation27_spill]]  ;;  %s7857_s0 = smov [#allocation6]  }
  0x45   :  { %s73_s11 = sshll.u32 %s7857_s0, 4  ;;  %s7858_s30 = smov [#allocation9]   ;;  %s74_s11 = int_to_ptr.vmem [resolvable:$true] %s73_s11 }
  0x46   :  { %s99_s5 = sshll.u32 %s7858_s30, 4  ;;  %s7741_s16 = scalar_lea.vmem %s74_s11, 12288  ;;  %s100_s5 = int_to_ptr.vmem [resolvable:$true] %s99_s5 }
  0x47   :  { %p7742_p11 = scmp.ne.s32.totalorder %s74_s11, %s7741_s16  ;;  %p7746_p12 = scmp.lt.s32.totalorder %s74_s11, %s74_s11 }
  0x48   :  { %p7747_p13 = scmp.lt.s32.totalorder %s7741_s16, %s7741_s16 }
  0x4a   :  { %49 = dma.hbm_to_vmem [thread:$0]  %s8696_s29, 3072, %s44_s27, [#allocation3], %s7855_s2, %s7855_s2, %s7856_s25  }
  0x4b   :  { %p7748_p0 = por %p7747_p13, %p7746_p12 }
  0x4d   :  { %p7749_p1 = pnand %p7748_p0, %p7742_p11 }
  0x4f   :  { %7752 = shalt.err (!%p7749_p1)
}
  0x50   :  { %79 = dma.hbm_to_vmem [thread:$0]  %s8672_s9, 12288, %s74_s11, [#allocation5], %s7855_s2, %s7855_s2, %s7856_s25  }
  0x51   :  { %s7761_s24 = scalar_lea.vmem %s100_s5, 64  ;;  %p7766_p3 = scmp.lt.s32.totalorder %s100_s5, %s100_s5 }
  0x52   :  { %p7762_p2 = scmp.ne.s32.totalorder %s100_s5, %s7761_s24  ;;  %p7767_p4 = scmp.lt.s32.totalorder %s7761_s24, %s7761_s24 }
  0x54   :  { %p7768_p5 = por %p7767_p4, %p7766_p3 }
  0x56   :  { %p7769_p6 = pnand %p7768_p5, %p7762_p2 }
  0x58   :  { %7772 = shalt.err (!%p7769_p6)
}
  0x59   :  { %105 = dma.hbm_to_vmem [thread:$0]  %s8675_s12, 64, %s100_s5, [#allocation8], %s7851_s3, %s7851_s3, %s7854_s23  }
  0x5a   :  { %s7859_s26 = smov [#allocation12]   ;;  %s7860_s29 = smov [#allocation15]  }
  0x5b   :  { %s125_s28 = sshll.u32 %s7859_s26, 4  ;;  %s151_s0 = sshll.u32 %s7860_s29, 4  ;;  %s126_s28 = int_to_ptr.vmem [resolvable:$true] %s125_s28  ;;  %s152_s0 = int_to_ptr.vmem [resolvable:$true] %s151_s0 }
  0x5c   :  { %s7781_s9 = scalar_lea.vmem %s126_s28, 16384  ;;  %p7786_p8 = scmp.lt.s32.totalorder %s126_s28, %s126_s28 }
  0x5d   :  { %p7782_p7 = scmp.ne.s32.totalorder %s126_s28, %s7781_s9  ;;  %p7787_p9 = scmp.lt.s32.totalorder %s7781_s9, %s7781_s9 }
  0x5f   :  { %p7788_p10 = por %p7787_p9, %p7786_p8 }
  0x61   :  { %p7789_p11 = pnand %p7788_p10, %p7782_p7 }
  0x63   :  { %7792 = shalt.err (!%p7789_p11)
}
  0x64   :  { %s8697_s2 = smov 64   ;;  %s7801_s12 = scalar_lea.vmem %s152_s0, 64 }
  0x65   :  { %131 = dma.hbm_to_vmem [thread:$0]  %s8678_s15, 16384, %s126_s28, [#allocation11], %s8697_s2, %s8697_s2, %s7848_s22  }
  0x66   :  { %p7802_p12 = scmp.ne.s32.totalorder %s152_s0, %s7801_s12  ;;  %p7806_p13 = scmp.lt.s32.totalorder %s152_s0, %s152_s0 }
  0x67   :  { %p7807_p0 = scmp.lt.s32.totalorder %s7801_s12, %s7801_s12 }
  0x69   :  { %p7808_p1 = por %p7807_p0, %p7806_p13 }
  0x6b   :  { %p7809_p2 = pnand %p7808_p1, %p7802_p12 }
  0x6d   :  { %7812 = shalt.err (!%p7809_p2)
}
  0x6e   :  { %157 = dma.hbm_to_vmem [thread:$0]  %s8681_s18, 64, %s152_s0, [#allocation14], %s7851_s3, %s7851_s3, %s7854_s23  }
  0x6f   :  { %s7861_s16 = smov [#allocation16]  }
  0x70   :  { %s165_s4 = sshll.u32 %s7861_s16, 4  ;;  %s166_s4 = int_to_ptr.vmem [resolvable:$true] %s165_s4 }
  0x71   :  { %s7821_s1 = scalar_lea.vmem %s166_s4, 64  ;;  %p7826_p4 = scmp.lt.s32.totalorder %s166_s4, %s166_s4 }
  0x72   :  { %p7822_p3 = scmp.ne.s32.totalorder %s166_s4, %s7821_s1  ;;  %p7827_p5 = scmp.lt.s32.totalorder %s7821_s1, %s7821_s1 }
  0x74   :  { %p7828_p6 = por %p7827_p5, %p7826_p4 }
  0x76   :  { %p7829_p7 = pnand %p7828_p6, %p7822_p3 }
  0x78   :  { %7832 = shalt.err (!%p7829_p7)
}
  0x79   :  { %171 = dma.hbm_to_vmem [thread:$0]  %s8683_s20, 64, %s166_s4, [#allocation17], %s7851_s3, %s7851_s3, %s7854_s23  }
  0x7a   :  { %7833 = dma.done.wait [#allocation3], 3072  }
  0x7b   :  { %7834 = vsyncadd [#allocation3], 4294964224 }
  0x7c   :  { %7835 = dma.done.wait [#allocation5], 12304  }
  0x7d   :  { %7836 = vsyncadd [#allocation5], 4294954992 }
  0x7e   :  { %7837 = dma.done.wait [#allocation8], 4160  }
  0x7f   :  { %7838 = vsyncadd [#allocation8], 4294963136 }
  0x80   :  { %7839 = dma.done.wait [#allocation11], 32768  }
  0x81   :  { %7840 = vsyncadd [#allocation11], 4294934528 }
  0x82   :  { %7841 = dma.done.wait [#allocation14], 128  }
  0x83   :  { %7842 = vsyncadd [#allocation14], 4294967168 }
  0x84   :  { %7843 = dma.done.wait [#allocation17], 64  }
  0x85   :  { %7844 = vsyncadd [#allocation17], 4294967232  ;;  %v7862_v0 = vmov 0.0   ;;  %vm7863_vm0 = vmmov 0   ;;  %s8698_s3 = sld [smem:[#allocation25_spill]]  ;;  %v7864_v36 = vmov 0  }
  0x86   :  { %6660 = vmatprep.subr.bf16.mxu0 %v7862_v0  ;;  %6676 = vmatprep.mubr.msk.bf16.mxu0 %vm7863_vm0, %v7862_v0  ;;  %v7016_v4 = vld [vmem:[#allocation2 + $0xac] ss:$12 sps:$4 sm:$0xff]   ;;  %v7018_v5 = vld [vmem:[#allocation2 + $0xa8] ss:$12 sps:$4 sm:$0xff]   ;;  %v7022_v8 = vld [vmem:[#allocation2 + $0x90] ss:$12 sps:$4 sm:$0xff]  }
  0x87   :  { %479 = vmatprep.subr.bf16.mxu1 %v7016_v4  ;;  %v7020_v7 = vld [vmem:[#allocation2 + $0x94] ss:$12 sps:$4 sm:$0xff]   ;;  %v7024_v10 = vld [vmem:[#allocation2 + $0x7c] ss:$12 sps:$4 sm:$0xff]   ;;  %v7026_v11 = vld [vmem:[#allocation2 + $0x78] ss:$12 sps:$4 sm:$0xff]   ;;  %511 = vmatprep.mubr.bf16.mxu1 %v7864_v36 }
  0x88   :  { %480 = vmatpush1.bf16.msra.mxu1 %v7018_v5  ;;  %v7028_v12 = vld [vmem:[#allocation2 + $0x64] ss:$12 sps:$4 sm:$0xff]   ;;  %v7030_v14 = vld [vmem:[#allocation2 + $0x60] ss:$12 sps:$4 sm:$0xff]   ;;  %v7034_v17 = vld [vmem:[#allocation2 + $0x48] ss:$12 sps:$4 sm:$0xff]  }
  0x89   :  { %481 = vmatprep.subr.bf16.mxu1 %v7020_v7  ;;  %v7032_v15 = vld [vmem:[#allocation2 + $0x4c] ss:$12 sps:$4 sm:$0xff]   ;;  %v7036_v18 = vld [vmem:[#allocation2 + $0x34] ss:$12 sps:$4 sm:$0xff]   ;;  %s8699_s4 = sld [smem:[#allocation24_spill]]  ;;  %v563_v7 = vlaneseq  ;;  %vm1126_vm5 = vcmask 1043456  }
  0x8a   :  { %v7038_v22 = vld [vmem:[#allocation2 + $0x30] ss:$12 sps:$4 sm:$0xff]   ;;  %v7023_v25 = vld [vmem:[#allocation2 + $0x98] ss:$12 sps:$4 sm:$0xff]   ;;  %v7027_v26 = vld [vmem:[#allocation2 + $0x80] ss:$12 sps:$4 sm:$0xff]  }
  0x8b   :  { %v7008_v1 = vld [vmem:[%s8698_s3 + $0x38] sm:$0xff]   ;;  %v7009_v2 = vld [vmem:[%s8698_s3 + $0x30] sm:$0xff]   ;;  %v7010_v3 = vld [vmem:[%s8698_s3 + $0x28] sm:$0xff]   ;;  %s8700_s20 = sld [smem:[#allocation26_spill]]  ;;  %vm1119_vm6 = vcmask 64512  }
  0x8c   :  { %6661 = vmatpush3.bf16.msra.mxu0 %v7008_v1  ;;  %v7011_v6 = vld [vmem:[%s8698_s3 + $0x20] sm:$0xff]   ;;  %v7012_v9 = vld [vmem:[%s8698_s3 + $0x18] sm:$0xff]   ;;  %482 = vmatpush1.bf16.msra.mxu1 %v7022_v8  ;;  %v7013_v13 = vld [vmem:[%s8698_s3 + $0x10] sm:$0xff]   ;;  %s8701_s24 = sld [smem:[#allocation29_spill]] }
  0x8d   :  { %6662 = vmatprep.subr.bf16.mxu0 %v7862_v0  ;;  %483 = vmatprep.subr.bf16.mxu1 %v7024_v10  ;;  %v7014_v16 = vld [vmem:[%s8698_s3 + $0x8] sm:$0xff]   ;;  %v7015_v19 = vld [vmem:[%s8698_s3] sm:$0xff]   ;;  %v7019_v23 = vld [vmem:[#allocation2 + $0xb0] ss:$12 sps:$4 sm:$0xff]   ;;  %v8095_v10 = vshrl.u32 %v563_v7, 7 }
  0x8e   :  { %v7031_v27 = vld [vmem:[#allocation2 + $0x68] ss:$12 sps:$4 sm:$0xff]   ;;  %v7035_v28 = vld [vmem:[#allocation2 + $0x50] ss:$12 sps:$4 sm:$0xff]   ;;  %v7039_v29 = vld [vmem:[#allocation2 + $0x38] ss:$12 sps:$4 sm:$0xff]  }
  0x8f   :  { %v203_v20 = vld [vmem:[%s8699_s4] sm:$0xff]  ;;  %v204_v21 = vld [vmem:[%s8699_s4 + $0x8] sm:$0xff]  ;;  %vm576_vm1 = vcmp.lt.s32.totalorder %v8095_v10, 7  ;;  %vm565_vm2 = vcmp.ne.s32.totalorder %v8095_v10, 0  ;;  %vm568_vm3 = vcmp.lt.s32.totalorder %v8095_v10, 1  ;;  %vm573_vm4 = vcmp.ne.s32.totalorder %v8095_v10, 7 }
  0x90   :  { %6663 = vmatpush3.bf16.msra.mxu0 %v7009_v2  ;;  %484 = vmatpush1.bf16.msra.mxu1 %v7026_v11  ;;  %v205_v24 = vpack.c.bf16 %v204_v21, %v203_v20  ;;  %v7040_v30 = vld [vmem:[#allocation2 + $0x1c] ss:$12 sps:$4 sm:$0xff]   ;;  %v7042_v31 = vld [vmem:[#allocation2 + $0x18] ss:$12 sps:$4 sm:$0xff]   ;;  %v7043_v32 = vld [vmem:[#allocation2 + $0x20] ss:$12 sps:$4 sm:$0xff]  }
  0x91   :  { %6664 = vmatprep.subr.bf16.mxu0 %v7862_v0  ;;  %485 = vmatprep.subr.bf16.mxu1 %v7028_v12  ;;  %v7044_v33 = vld [vmem:[#allocation2 + $0x4] ss:$12 sps:$4 sm:$0xff]   ;;  %v7046_v34 = vld [vmem:[#allocation2] ss:$12 sps:$4 sm:$0xff]   ;;  %v7047_v35 = vld [vmem:[#allocation2 + $0x8] ss:$12 sps:$4 sm:$0xff]  }
  0x92   :  { %v7050_v37 = vld [vmem:[#allocation6 + $0xac] ss:$12 sps:$4 sm:$0xff]   ;;  %v5854_v38 = vld [vmem:[%s8700_s20] ss:$0 sm:$0xff]  ;;  %v7048_v42 = vld [vmem:[#allocation6 + $0xa8] ss:$12 sps:$4 sm:$0xff]  }
  0x93   :  { %v7051_v43 = vld [vmem:[#allocation6 + $0xb0] ss:$12 sps:$4 sm:$0xff]   ;;  %v7054_v46 = vld [vmem:[#allocation6 + $0x94] ss:$12 sps:$4 sm:$0xff]   ;;  %v7055_v50 = vld [vmem:[#allocation6 + $0x98] ss:$12 sps:$4 sm:$0xff]  }
  0x94   :  { %6665 = vmatpush3.bf16.msra.mxu0 %v7010_v3  ;;  %486 = vmatpush1.bf16.msra.mxu1 %v7030_v14  ;;  %v7052_v49 = vld [vmem:[#allocation6 + $0x90] ss:$12 sps:$4 sm:$0xff]   ;;  %v7056_v52 = vld [vmem:[#allocation6 + $0x78] ss:$12 sps:$4 sm:$0xff]   ;;  %v7059_v53 = vld [vmem:[#allocation6 + $0x80] ss:$12 sps:$4 sm:$0xff]  }
  0x95   :  { %6666 = vmatprep.subr.bf16.mxu0 %v7862_v0  ;;  %487 = vmatprep.subr.bf16.mxu1 %v7032_v15  ;;  %v7058_v51 = vld [vmem:[#allocation6 + $0x7c] ss:$12 sps:$4 sm:$0xff]   ;;  %v7062_v54 = vld [vmem:[#allocation6 + $0x64] ss:$12 sps:$4 sm:$0xff]   ;;  %v7060_v55 = vld [vmem:[#allocation6 + $0x60] ss:$12 sps:$4 sm:$0xff]  }
  0x96   :  { %v7063_v56 = vld [vmem:[#allocation6 + $0x68] ss:$12 sps:$4 sm:$0xff]   ;;  %v7066_v57 = vld [vmem:[#allocation6 + $0x4c] ss:$12 sps:$4 sm:$0xff]   ;;  %v7067_v59 = vld [vmem:[#allocation6 + $0x50] ss:$12 sps:$4 sm:$0xff]  }
  0x97   :  { %v7064_v58 = vld [vmem:[#allocation6 + $0x48] ss:$12 sps:$4 sm:$0xff]   ;;  %v7068_v61 = vld [vmem:[#allocation6 + $0x30] ss:$12 sps:$4 sm:$0xff]   ;;  %v7071_v62 = vld [vmem:[#allocation6 + $0x38] ss:$12 sps:$4 sm:$0xff]  }
  0x98   :  { %6667 = vmatpush3.bf16.msra.mxu0 %v7011_v6  ;;  %488 = vmatpush1.bf16.msra.mxu1 %v7034_v17  ;;  %v7070_v60 = vld [vmem:[#allocation6 + $0x34] ss:$12 sps:$4 sm:$0xff]   ;;  %v7074_v63 = vld [vmem:[#allocation6 + $0x1c] ss:$12 sps:$4 sm:$0xff]   ;;  %v7072_v1 = vld [vmem:[#allocation6 + $0x18] ss:$12 sps:$4 sm:$0xff]  }
  0x99   :  { %6668 = vmatprep.subr.bf16.mxu0 %v7862_v0  ;;  %489 = vmatprep.subr.bf16.mxu1 %v7036_v18  ;;  %v7075_v2 = vld [vmem:[#allocation6 + $0x20] ss:$12 sps:$4 sm:$0xff]   ;;  %v7078_v3 = vld [vmem:[#allocation6 + $0x4] ss:$12 sps:$4 sm:$0xff]   ;;  %v7079_v5 = vld [vmem:[#allocation6 + $0x8] ss:$12 sps:$4 sm:$0xff]  }
  0x9a   :  { %v7076_v4 = vld [vmem:[#allocation6] ss:$12 sps:$4 sm:$0xff]   ;;  %v8092_v6 = vld [vmem:[%s8701_s24 + $0x38] sm:$0xff]  }
  0x9c   :  { %6669 = vmatpush3.bf16.msra.mxu0 %v7012_v9  ;;  %490 = vmatpush1.bf16.msra.mxu1 %v7038_v22 }
  0x9d   :  { %6670 = vmatprep.subr.bf16.mxu0 %v7862_v0  ;;  %491 = vmatprep.subr.bf16.mxu1 %v7040_v30 }
  0xa0   :  { %6671 = vmatpush3.bf16.msra.mxu0 %v7013_v13  ;;  %492 = vmatpush1.bf16.msra.mxu1 %v7042_v31  ;;  %v5887_v31 = vld [vmem:[#allocation4] ss:$0 sm:$0xff] }
  0xa1   :  { %6672 = vmatprep.subr.bf16.mxu0 %v7862_v0  ;;  %493 = vmatprep.subr.bf16.mxu1 %v7044_v33 }
  0xa4   :  { %6673 = vmatpush3.bf16.msra.mxu0 %v7014_v16  ;;  %494 = vmatpush1.bf16.msra.mxu1 %v7046_v34 }
  0xa5   :  { %6674 = vmatprep.subr.bf16.mxu0 %v7862_v0  ;;  %908 = vmatprep.subr.bf16.mxu1 %v7050_v37 }
  0xa8   :  { %6675 = vmatpush3.bf16.msra.mxu0 %v7015_v19 }
  0xa9   :  { %6680 = vmatprep.subr.bf16.mxu0 %v7862_v0 }
  0xab   :  { %6677 = vmatmul.mubr.bf16.vlgmr.msra.gmra.mxu0 %v205_v24 }
  0xac   :  { %6681 = vmatpush3.bf16.msra.mxu0 %v7019_v23  ;;  %6696 = vmatprep.mubr.msk.bf16.mxu0 %vm7863_vm0, %v7862_v0 }
  0xad   :  { %6682 = vmatprep.subr.bf16.mxu0 %v7862_v0 }
  0xb0   :  { %6683 = vmatpush3.bf16.msra.mxu0 %v7023_v25 }
  0xb1   :  { %6684 = vmatprep.subr.bf16.mxu0 %v7862_v0 }
  0xb4   :  { %6685 = vmatpush3.bf16.msra.mxu0 %v7027_v26 }
  0xb5   :  { %6686 = vmatprep.subr.bf16.mxu0 %v7862_v0 }
  0xb8   :  { %6687 = vmatpush3.bf16.msra.mxu0 %v7031_v27 }
  0xb9   :  { %6688 = vmatprep.subr.bf16.mxu0 %v7862_v0 }
  0xbc   :  { %6689 = vmatpush3.bf16.msra.mxu0 %v7035_v28 }
  0xbd   :  { %6690 = vmatprep.subr.bf16.mxu0 %v7862_v0 }
  0xc0   :  { %6691 = vmatpush3.bf16.msra.mxu0 %v7039_v29 }
  0xc1   :  { %6692 = vmatprep.subr.bf16.mxu0 %v7862_v0 }
  0xc4   :  { %6693 = vmatpush3.bf16.msra.mxu0 %v7043_v32 }
  0xc5   :  { %6694 = vmatprep.subr.bf16.mxu0 %v7862_v0 }
  0xc8   :  { %6695 = vmatpush3.bf16.msra.mxu0 %v7047_v35 }
  0xc9   :  { %6700 = vmatprep.subr.bf16.mxu0 %v7862_v0 }
 0x16b   :  { %v311_v39 = vpop.f32.mrf.mxu0 }
 0x16c   :  { %v312_v44 = vadd.f32 %v5854_v38, %v311_v39  ;;  %v8117_v39 = vld [vmem:[%s8701_s24 + $0x28] sm:$0xff]  }
 0x16d   :  { %v6678_v40 = vpop.f32.mrf.mxu0 }
 0x16e   :  { %v8124_v40 = vld [vmem:[%s8701_s24 + $0x20] sm:$0xff]  }
 0x16f   :  { %v314_v41 = vpop.f32.mrf.mxu0 }
 0x170   :  { %v315_v45 = vadd.f32 %v5854_v38, %v314_v41  ;;  %v8110_v38 = vld [vmem:[%s8701_s24 + $0x30] sm:$0xff]   ;;  %v8131_v41 = vld [vmem:[%s8701_s24 + $0x18] sm:$0xff]  }
 0x171   :  { %v6679_v47 = vpop.f32.mrf.mxu0 }
 0x172   :  { %v318_v48 = vpack.c.bf16 %v315_v45, %v312_v44  ;;  %v8153_v44 = vld [vmem:[%s8701_s24] sm:$0xff]   ;;  %v8159_v45 = vsub.s32 1, %v8095_v10 }
 0x173   :  { %v8167_v47 = vld [vmem:[%s8673_s10] sm:$0x7] }
 0x174   :  { %512 = vmatmul.mubr.bf16.vlgmr.msra.gmra.mxu1 %v318_v48  ;;  %6697 = vmatmul.mubr.bf16.vlgmr.msra.gmra.mxu0 %v318_v48 }
 0x175   :  { %909 = vmatpush1.bf16.msra.mxu1 %v7048_v42  ;;  %6701 = vmatpush3.bf16.msra.mxu0 %v7051_v43  ;;  %v8139_v42 = vld [vmem:[%s8701_s24 + $0x10] sm:$0xff]   ;;  %v8146_v43 = vld [vmem:[%s8701_s24 + $0x8] sm:$0xff]  }
 0x176   :  { %910 = vmatprep.subr.bf16.mxu1 %v7054_v46  ;;  %6702 = vmatprep.subr.bf16.mxu0 %v7862_v0  ;;  %v8162_v46 = vsub.s32 0, %v8095_v10 }
 0x177   :  { %940 = vmatprep.mubr.bf16.mxu1 %v7864_v36  ;;  %6716 = vmatprep.mubr.msk.bf16.mxu0 %vm7863_vm0, %v7862_v0 }
 0x179   :  { %911 = vmatpush1.bf16.msra.mxu1 %v7052_v49  ;;  %6703 = vmatpush3.bf16.msra.mxu0 %v7055_v50  ;;  %v772_v50 = vrot.slane %v8167_v47, %v8159_v45 }
 0x17a   :  { %912 = vmatprep.subr.bf16.mxu1 %v7058_v51  ;;  %6704 = vmatprep.subr.bf16.mxu0 %v7862_v0 }
 0x17d   :  { %913 = vmatpush1.bf16.msra.mxu1 %v7056_v52  ;;  %6705 = vmatpush3.bf16.msra.mxu0 %v7059_v53  ;;  %v768_v53 = vrot.slane %v8167_v47, %v8162_v46 }
 0x17e   :  { %914 = vmatprep.subr.bf16.mxu1 %v7062_v54  ;;  %6706 = vmatprep.subr.bf16.mxu0 %v7862_v0 }
 0x181   :  { %915 = vmatpush1.bf16.msra.mxu1 %v7060_v55  ;;  %6707 = vmatpush3.bf16.msra.mxu0 %v7063_v56 }
 0x182   :  { %6708 = vmatprep.subr.bf16.mxu0 %v7862_v0  ;;  %916 = vmatprep.subr.bf16.mxu1 %v7066_v57 }
 0x185   :  { %917 = vmatpush1.bf16.msra.mxu1 %v7064_v58  ;;  %6709 = vmatpush3.bf16.msra.mxu0 %v7067_v59 }
 0x186   :  { %6710 = vmatprep.subr.bf16.mxu0 %v7862_v0  ;;  %918 = vmatprep.subr.bf16.mxu1 %v7070_v60 }
 0x189   :  { %919 = vmatpush1.bf16.msra.mxu1 %v7068_v61  ;;  %6711 = vmatpush3.bf16.msra.mxu0 %v7071_v62 }
 0x18a   :  { %6712 = vmatprep.subr.bf16.mxu0 %v7862_v0  ;;  %920 = vmatprep.subr.bf16.mxu1 %v7074_v63 }
 0x18d   :  { %921 = vmatpush1.bf16.msra.mxu1 %v7072_v1  ;;  %6713 = vmatpush3.bf16.msra.mxu0 %v7075_v2 }
 0x18e   :  { %6714 = vmatprep.subr.bf16.mxu0 %v7862_v0  ;;  %922 = vmatprep.subr.bf16.mxu1 %v7078_v3 }
 0x191   :  { %923 = vmatpush1.bf16.msra.mxu1 %v7076_v4  ;;  %6715 = vmatpush3.bf16.msra.mxu0 %v7079_v5  ;;  %v8182_v5 = vld [vmem:[%s8669_s6] sm:$0xf] }
 0x192   :  { %6720 = vmatprep.subr.bf16.mxu1 %v8092_v6  ;;  %6984 = vmatprep.subr.msk.bf16.mxu0 %vm1126_vm5, %v8182_v5  ;;  %v8188_v7 = vsel %vm1126_vm5, %v8182_v5, 0 }
 0x234   :  { %v513_v8 = vpop.f32.mrf.mxu1  ;;  %v556_v9 = vpop.f32.mrf.mxu0 }
 0x235   :  { %v566_v15 = vrot.slane %v513_v8, 7  ;;  %v574_v16 = vrot.slane %v556_v9, 1  ;;  %v7088_v8 = vld [vmem:[#allocation7 + $0x38] sm:$0xff]   ;;  %v7089_v9 = vld [vmem:[#allocation7 + $0x30] sm:$0xff]  }
 0x236   :  { %v515_v11 = vpop.f32.mrf.mxu1  ;;  %v6698_v12 = vpop.f32.mrf.mxu0 }
 0x237   :  { %v7091_v12 = vld [vmem:[#allocation7 + $0x20] sm:$0xff]  }
 0x238   :  { %v517_v13 = vpop.f32.mrf.mxu1  ;;  %v559_v14 = vpop.f32.mrf.mxu0 }
 0x239   :  { %v567_v17 = vrot.slane %v517_v13, 7  ;;  %v575_v18 = vrot.slane %v559_v14, 1  ;;  %v7092_v13 = vld [vmem:[#allocation7 + $0x18] sm:$0xff]  }
 0x23a   :  { %v6699_v19 = vpop.f32.mrf.mxu0  ;;  %v519_v24 = vpop.f32.mrf.mxu1 }
 0x23b   :  { %v577_v20 = vsel %vm576_vm1, %v574_v16, %v575_v18  ;;  %v569_v21 = vsel %vm568_vm3, %v566_v15, %v567_v17  ;;  %v570_v22 = vsel %vm568_vm3, %v567_v17, %v566_v15  ;;  %v578_v23 = vsel %vm576_vm1, %v575_v18, %v574_v16 }
 0x23c   :  { %v571_v25 = vsel %vm565_vm2, %v570_v22, 0.0  ;;  %v572_v26 = vsel %vm565_vm2, %v569_v21, 0.0  ;;  %v579_v29 = vsel %vm573_vm4, %v577_v20, 0.0  ;;  %v580_v30 = vsel %vm573_vm4, %v578_v23, 0.0 }
 0x23d   :  { %v581_v27 = vadd.f32 %v571_v25, %v515_v11  ;;  %v582_v28 = vadd.f32 %v572_v26, %v519_v24  ;;  %v7090_v11 = vld [vmem:[#allocation7 + $0x28] sm:$0xff]  }
 0x23f   :  { %v583_v32 = vadd.f32 %v581_v27, %v579_v29  ;;  %v584_v33 = vadd.f32 %v582_v28, %v580_v30 }
 0x241   :  { %v8101_v34 = vadd.f32 %v5887_v31, %v583_v32  ;;  %v8103_v35 = vadd.f32 %v5887_v31, %v584_v33 }
 0x243   :  { %v763_v37 = vpack.c.bf16 %v8103_v35, %v8101_v34 }
 0x245   :  { %941 = vmatmul.mubr.bf16.vlgmr.msra.gmra.mxu1 %v763_v37  ;;  %6717 = vmatmul.mubr.bf16.vlgmr.msra.gmra.mxu0 %v763_v37 }
 0x246   :  { %6721 = vmatpush3.bf16.msra.mxu1 %v8092_v6  ;;  %6741 = vmatpush3.bf16.msra.mxu0 %v8188_v7 }
 0x247   :  { %6722 = vmatprep.subr.bf16.mxu1 %v8110_v38 }
 0x24a   :  { %6723 = vmatpush3.bf16.msra.mxu1 %v8110_v38 }
 0x24b   :  { %6724 = vmatprep.subr.bf16.mxu1 %v8117_v39 }
 0x24e   :  { %6725 = vmatpush3.bf16.msra.mxu1 %v8117_v39 }
 0x24f   :  { %6726 = vmatprep.subr.bf16.mxu1 %v8124_v40 }
 0x252   :  { %6727 = vmatpush3.bf16.msra.mxu1 %v8124_v40 }
 0x253   :  { %6728 = vmatprep.subr.bf16.mxu1 %v8131_v41 }
 0x256   :  { %6729 = vmatpush3.bf16.msra.mxu1 %v8131_v41 }
 0x257   :  { %6730 = vmatprep.subr.bf16.mxu1 %v8139_v42 }
 0x25a   :  { %6731 = vmatpush3.bf16.msra.mxu1 %v8139_v42 }
 0x25b   :  { %6732 = vmatprep.subr.bf16.mxu1 %v8146_v43 }
 0x25e   :  { %6733 = vmatpush3.bf16.msra.mxu1 %v8146_v43 }
 0x25f   :  { %6734 = vmatprep.subr.bf16.mxu1 %v8153_v44 }
 0x262   :  { %6735 = vmatpush3.bf16.msra.mxu1 %v8153_v44 }
 0x263   :  { %6746 = vmatprep.subr.bf16.mxu1 %v7862_v0 }
 0x305   :  { %v942_v48 = vpop.f32.mrf.mxu1  ;;  %v8169_v49 = vpop.f32.mrf.mxu0 }
 0x306   :  { %v943_v60 = vadd.f32 %v942_v48, %v768_v53 }
 0x307   :  { %v944_v51 = vpop.f32.mrf.mxu1  ;;  %v6718_v52 = vpop.f32.mrf.mxu0 }
 0x308   :  { %v945_v56 = vadd.f32 %v944_v51, %v772_v50 }
 0x309   :  { %v946_v54 = vpop.f32.mrf.mxu1  ;;  %v8175_v55 = vpop.f32.mrf.mxu0 }
 0x30a   :  { %v947_v57 = vadd.f32 %v946_v54, %v768_v53  ;;  %v992_v62 = vmul.f32 %v945_v56, %v943_v60 }
 0x30b   :  { %v948_v58 = vpop.f32.mrf.mxu1  ;;  %v6719_v59 = vpop.f32.mrf.mxu0 }
 0x30c   :  { %v949_v61 = vadd.f32 %v948_v58, %v772_v50  ;;  %v994_v63 = vmul.f32 %v947_v57, %v945_v56  ;;  %v7094_v58 = vld [vmem:[#allocation7 + $0x8] sm:$0xff]   ;;  %v7095_v59 = vld [vmem:[#allocation7] sm:$0xff]  }
 0x30e   :  { %v993_v1 = vmul.f32 %v949_v61, %v943_v60  ;;  %v995_v2 = vmul.f32 %v949_v61, %v947_v57  ;;  %v7093_v57 = vld [vmem:[#allocation7 + $0x10] sm:$0xff]   ;;  %v8202_v60 = vsub.s32 2, %v8095_v10 }
 0x310   :  { %v997_v3 = vpack.c.bf16 %v995_v2, %v994_v63  ;;  %v996_v4 = vpack.c.bf16 %v993_v1, %v992_v62  ;;  %v776_v61 = vrot.slane %v8167_v47, %v8202_v60 }
 0x312   :  { %6736 = vmatprep.mubr.bf16.mxu1 %v996_v4  ;;  %v986_v1 = vadd.f32 %v8169_v49, %v776_v61  ;;  %v989_v2 = vadd.f32 %v8175_v55, %v776_v61  ;;  %v7125_v61 = vld [vmem:[#allocation10 + $0x6c] ss:$16 sps:$4 sm:$0xff]  }
 0x313   :  { %6737 = vmatmul.mubr.bf16.vlgmr.msra.gmra.mxu1 %v997_v3 }
 0x314   :  { %6762 = vmatprep.mubr.msk.bf16.mxu1 %vm7863_vm0, %v7862_v0  ;;  %6747 = vmatpush3.bf16.msra.mxu1 %v7088_v8 }
 0x315   :  { %6748 = vmatprep.subr.bf16.mxu1 %v7862_v0 }
 0x318   :  { %6749 = vmatpush3.bf16.msra.mxu1 %v7089_v9 }
 0x319   :  { %6750 = vmatprep.subr.bf16.mxu1 %v7862_v0 }
 0x31c   :  { %6751 = vmatpush3.bf16.msra.mxu1 %v7090_v11 }
 0x31d   :  { %6752 = vmatprep.subr.bf16.mxu1 %v7862_v0 }
 0x320   :  { %6753 = vmatpush3.bf16.msra.mxu1 %v7091_v12 }
 0x321   :  { %6754 = vmatprep.subr.bf16.mxu1 %v7862_v0 }
 0x324   :  { %6755 = vmatpush3.bf16.msra.mxu1 %v7092_v13 }
 0x325   :  { %6756 = vmatprep.subr.bf16.mxu1 %v7862_v0 }
 0x328   :  { %6757 = vmatpush3.bf16.msra.mxu1 %v7093_v57  ;;  %v7117_v57 = vld [vmem:[#allocation10 + $0x88] ss:$16 sps:$4 sm:$0xff]  }
 0x329   :  { %6758 = vmatprep.subr.bf16.mxu1 %v7862_v0 }
 0x32c   :  { %6759 = vmatpush3.bf16.msra.mxu1 %v7094_v58  ;;  %v7119_v58 = vld [vmem:[#allocation10 + $0x8c] ss:$16 sps:$4 sm:$0xff]  }
 0x32d   :  { %6760 = vmatprep.subr.bf16.mxu1 %v7862_v0 }
 0x330   :  { %6761 = vmatpush3.bf16.msra.mxu1 %v7095_v59  ;;  %v7122_v59 = vld [vmem:[#allocation10 + $0x64] ss:$16 sps:$4 sm:$0xff]  }
 0x3d3   :  { %v6738_v14 = vpop.f32.mrf.mxu1 }
 0x3d5   :  { %v1080_v15 = vpop.f32.mrf.mxu1 }
 0x3d7   :  { %v6739_v16 = vpop.f32.mrf.mxu1 }
 0x3d8   :  { %v1106_v17 = vmax.f32 %v6738_v14, %v6739_v16 }
 0x3d9   :  { %v1083_v18 = vpop.f32.mrf.mxu1 }
 0x3da   :  { %v1107_v19 = vsub.f32 %v6738_v14, %v1106_v17  ;;  %v1110_v20 = vsub.f32 %v6739_v16, %v1106_v17  ;;  %v1095_v21 = vmax.f32 %v1080_v15, %v1083_v18  ;;  %v5922_v16 = vld [vmem:[#allocation9] ss:$0 sm:$0xff] }
 0x3dc   :  { %v1108_v22 = vmul.f32 1.442695, %v1107_v19  ;;  %v1111_v23 = vmul.f32 1.442695, %v1110_v20  ;;  %v1096_v24 = vsub.f32 %v1080_v15, %v1095_v21  ;;  %v1099_v25 = vsub.f32 %v1083_v18, %v1095_v21 }
 0x3de   :  { %7544 = vpow2.f32 %v1108_v22  ;;  %v1097_v26 = vmul.f32 1.442695, %v1096_v24  ;;  %v1100_v27 = vmul.f32 1.442695, %v1099_v25  ;;  %v7096_v22 = vld [vmem:[#allocation10 + $0xe0] ss:$16 sps:$4 sm:$0xff]  }
 0x3df   :  { %7546 = vpow2.f32 %v1111_v23  ;;  %v7098_v23 = vld [vmem:[#allocation10 + $0xe4] ss:$16 sps:$4 sm:$0xff]   ;;  %v7099_v24 = vld [vmem:[#allocation10 + $0xe8] ss:$16 sps:$4 sm:$0xff]   ;;  %v7101_v25 = vld [vmem:[#allocation10 + $0xec] ss:$16 sps:$4 sm:$0xff]  }
 0x3e0   :  { %7548 = vpow2.f32 %v1097_v26  ;;  %1504 = vmatprep.subr.bf16.mxu0 %v7098_v23  ;;  %1547 = vmatprep.subr.bf16.mxu1 %v7101_v25 }
 0x3e1   :  { %7550 = vpow2.f32 %v1100_v27 }
 0x3eb   :  { %v7545_v28 = vpop.eup %7544 }
 0x3ec   :  { %v7547_v29 = vpop.eup %7546 }
 0x3ed   :  { %v7549_v30 = vpop.eup %7548  ;;  %v1113_v31 = vadd.f32 %v7547_v29, %v7545_v28 }
 0x3ee   :  { %v7551_v32 = vpop.eup %7550 }
 0x3ef   :  { %7552 = vrcp.f32 %v1113_v31  ;;  %v1102_v33 = vadd.f32 %v7551_v32, %v7549_v30 }
 0x3f1   :  { %7554 = vrcp.f32 %v1102_v33  ;;  %v7107_v33 = vld [vmem:[#allocation10 + $0xcc] ss:$16 sps:$4 sm:$0xff]  }
 0x3fc   :  { %v7553_v37 = vpop.eup %7552 }
 0x3fd   :  { %v1115_v50 = vmul.f32 %v7553_v37, %v7545_v28  ;;  %v1116_v51 = vmul.f32 %v7553_v37, %v7547_v29  ;;  %v7102_v37 = vld [vmem:[#allocation10 + $0xc0] ss:$16 sps:$4 sm:$0xff]  }
 0x3fe   :  { %v7555_v48 = vpop.eup %7554 }
 0x3ff   :  { %v1104_v52 = vmul.f32 %v7555_v48, %v7549_v30  ;;  %v1105_v53 = vmul.f32 %v7555_v48, %v7551_v32  ;;  %v1118_v56 = vpack.c.bf16 %v1116_v51, %v1115_v50  ;;  %v7104_v32 = vld [vmem:[#allocation10 + $0xc4] ss:$16 sps:$4 sm:$0xff]   ;;  %v7105_v48 = vld [vmem:[#allocation10 + $0xc8] ss:$16 sps:$4 sm:$0xff]   ;;  %v7113_v51 = vld [vmem:[#allocation10 + $0xac] ss:$16 sps:$4 sm:$0xff]  }
 0x400   :  { %v7110_v50 = vld [vmem:[#allocation10 + $0xa4] ss:$16 sps:$4 sm:$0xff]  }
 0x401   :  { %v1117_v54 = vpack.c.bf16 %v1105_v53, %v1104_v52  ;;  %v7108_v52 = vld [vmem:[#allocation10 + $0xa0] ss:$16 sps:$4 sm:$0xff]   ;;  %v7111_v53 = vld [vmem:[#allocation10 + $0xa8] ss:$16 sps:$4 sm:$0xff]  }
 0x403   :  { %6742 = vmatprep.mubr.msk.bf16.mxu0 %vm1119_vm6, %v1117_v54  ;;  %v7114_v54 = vld [vmem:[#allocation10 + $0x80] ss:$16 sps:$4 sm:$0xff]  }
 0x404   :  { %6743 = vmatmul.mubr.msk.bf16.vlgmr.msra.gmra.mxu0 %vm1119_vm6, %v1118_v56  ;;  %v7116_v56 = vld [vmem:[#allocation10 + $0x84] ss:$16 sps:$4 sm:$0xff]  }
 0x405   :  { %1536 = vmatprep.mubr.bf16.mxu0 %v7864_v36  ;;  %1505 = vmatpush1.bf16.msra.mxu0 %v7096_v22 }
 0x406   :  { %1506 = vmatprep.subr.bf16.mxu0 %v7104_v32  ;;  %v7146_v32 = vld [vmem:[#allocation12 + $0x38] sm:$0xff]  }
 0x409   :  { %1507 = vmatpush1.bf16.msra.mxu0 %v7102_v37 }
 0x40a   :  { %1508 = vmatprep.subr.bf16.mxu0 %v7110_v50  ;;  %v7150_v50 = vld [vmem:[#allocation12 + $0x30] sm:$0xff]  }
 0x40d   :  { %1509 = vmatpush1.bf16.msra.mxu0 %v7108_v52  ;;  %v7153_v52 = vld [vmem:[#allocation12 + $0xe8] sm:$0xff]  }
 0x40e   :  { %1510 = vmatprep.subr.bf16.mxu0 %v7116_v56  ;;  %v7156_v56 = vld [vmem:[#allocation12 + $0x60] sm:$0xff]  }
 0x411   :  { %1511 = vmatpush1.bf16.msra.mxu0 %v7114_v54  ;;  %v7155_v54 = vld [vmem:[#allocation12 + $0xa8] sm:$0xff]  }
 0x412   :  { %1512 = vmatprep.subr.bf16.mxu0 %v7122_v59  ;;  %v7159_v59 = vld [vmem:[#allocation12 + $0xa0] sm:$0xff]  }
 0x4c4   :  { %v6744_v62 = vpop.f32.mrf.mxu0 }
 0x4c5   :  { %v1181_v4 = vmul.f32 %v6744_v62, %v986_v1  ;;  %v7120_v62 = vld [vmem:[#allocation10 + $0x60] ss:$16 sps:$4 sm:$0xff]  }
 0x4c6   :  { %v1164_v63 = vpop.f32.mrf.mxu0  ;;  %1513 = vmatpush1.bf16.msra.mxu0 %v7120_v62  ;;  %v7161_v62 = vld [vmem:[#allocation12 + $0xd8] sm:$0xff]  }
 0x4c7   :  { %v1179_v11 = vmul.f32 %v1164_v63, %v986_v1  ;;  %v7123_v63 = vld [vmem:[#allocation10 + $0x68] ss:$16 sps:$4 sm:$0xff]   ;;  %v7128_v1 = vld [vmem:[#allocation10 + $0x44] ss:$16 sps:$4 sm:$0xff]  }
 0x4c8   :  { %v6745_v3 = vpop.f32.mrf.mxu0  ;;  %1514 = vmatprep.subr.bf16.mxu0 %v7128_v1  ;;  %v7163_v1 = vld [vmem:[#allocation12 + $0x98] sm:$0xff]  }
 0x4c9   :  { %v1182_v8 = vmul.f32 %v6745_v3, %v989_v2  ;;  %v7126_v3 = vld [vmem:[#allocation10 + $0x40] ss:$16 sps:$4 sm:$0xff]  }
 0x4ca   :  { %v1167_v9 = vpop.f32.mrf.mxu0  ;;  %1515 = vmatpush1.bf16.msra.mxu0 %v7126_v3  ;;  %v7165_v3 = vld [vmem:[#allocation12 + $0xd0] sm:$0xff]  }
 0x4cb   :  { %v1184_v12 = vadd.f32 %v1182_v8, %v1181_v4  ;;  %v1180_v13 = vmul.f32 %v1167_v9, %v989_v2  ;;  %v7131_v2 = vld [vmem:[#allocation10 + $0x4c] ss:$16 sps:$4 sm:$0xff]   ;;  %v7129_v4 = vld [vmem:[#allocation10 + $0x48] ss:$16 sps:$4 sm:$0xff]   ;;  %v7134_v8 = vld [vmem:[#allocation10 + $0x24] ss:$16 sps:$4 sm:$0xff]  }
 0x4cc   :  { %v7137_v9 = vld [vmem:[#allocation10 + $0x2c] ss:$16 sps:$4 sm:$0xff]   ;;  %1516 = vmatprep.subr.bf16.mxu0 %v7134_v8  ;;  %v7167_v8 = vld [vmem:[#allocation12 + $0x90] sm:$0xff]  }
 0x4cd   :  { %v1183_v14 = vadd.f32 %v1180_v13, %v1179_v11  ;;  %v7132_v11 = vld [vmem:[#allocation10 + $0x20] ss:$16 sps:$4 sm:$0xff]   ;;  %v7140_v13 = vld [vmem:[#allocation10 + $0x4] ss:$16 sps:$4 sm:$0xff]  }
 0x4ce   :  { %1517 = vmatpush1.bf16.msra.mxu0 %v7132_v11  ;;  %v7169_v11 = vld [vmem:[#allocation12 + $0xc8] sm:$0xff]  }
 0x4cf   :  { %v1185_v15 = vpack.c.bf16 %v1184_v12, %v1183_v14  ;;  %v7135_v12 = vld [vmem:[#allocation10 + $0x28] ss:$16 sps:$4 sm:$0xff]   ;;  %v7143_v14 = vld [vmem:[#allocation10 + $0xc] ss:$16 sps:$4 sm:$0xff]   ;;  %1518 = vmatprep.subr.bf16.mxu0 %v7140_v13 }
 0x4d0   :  { %v7171_v13 = vld [vmem:[#allocation12 + $0x88] sm:$0xff]  }
 0x4d1   :  { %6763 = vmatmul.mubr.bf16.vlgmr.msra.gmra.mxu1 %v1185_v15  ;;  %v7138_v15 = vld [vmem:[#allocation10] ss:$16 sps:$4 sm:$0xff]  }
 0x4d2   :  { %1579 = vmatprep.mubr.bf16.mxu1 %v7864_v36  ;;  %1548 = vmatpush1.bf16.msra.mxu1 %v7099_v24  ;;  %v5931_v24 = vld [vmem:[%s8680_s17] ss:$0 sm:$0xff] }
 0x4d3   :  { %1549 = vmatprep.subr.bf16.mxu1 %v7107_v33  ;;  %1519 = vmatpush1.bf16.msra.mxu0 %v7138_v15  ;;  %v7147_v33 = vld [vmem:[#allocation12 + $0xb8] sm:$0xff]   ;;  %v7173_v15 = vld [vmem:[#allocation12 + $0xc0] sm:$0xff]  }
 0x4d6   :  { %1550 = vmatpush1.bf16.msra.mxu1 %v7105_v48  ;;  %v7149_v48 = vld [vmem:[#allocation12 + $0xf0] sm:$0xff]  }
 0x4d7   :  { %1551 = vmatprep.subr.bf16.mxu1 %v7113_v51  ;;  %v7152_v51 = vld [vmem:[#allocation12 + $0x68] sm:$0xff]  }
 0x4da   :  { %1552 = vmatpush1.bf16.msra.mxu1 %v7111_v53  ;;  %v7154_v53 = vld [vmem:[#allocation12 + $0x28] sm:$0xff]  }
 0x4db   :  { %1553 = vmatprep.subr.bf16.mxu1 %v7119_v58  ;;  %v7158_v58 = vld [vmem:[#allocation12 + $0x20] sm:$0xff]  }
 0x4de   :  { %1554 = vmatpush1.bf16.msra.mxu1 %v7117_v57  ;;  %v7157_v57 = vld [vmem:[#allocation12 + $0xe0] sm:$0xff]  }
 0x4df   :  { %1555 = vmatprep.subr.bf16.mxu1 %v7125_v61  ;;  %v7160_v61 = vld [vmem:[#allocation12 + $0x58] sm:$0xff]  }
 0x4e2   :  { %1556 = vmatpush1.bf16.msra.mxu1 %v7123_v63  ;;  %v7162_v63 = vld [vmem:[#allocation12 + $0x18] sm:$0xff]  }
 0x4e3   :  { %1557 = vmatprep.subr.bf16.mxu1 %v7131_v2  ;;  %v7164_v2 = vld [vmem:[#allocation12 + $0x50] sm:$0xff]  }
 0x4e6   :  { %1558 = vmatpush1.bf16.msra.mxu1 %v7129_v4  ;;  %v7166_v4 = vld [vmem:[#allocation12 + $0x10] sm:$0xff]  }
 0x4e7   :  { %1559 = vmatprep.subr.bf16.mxu1 %v7137_v9  ;;  %v7168_v9 = vld [vmem:[#allocation12 + $0x48] sm:$0xff]  }
 0x4ea   :  { %1560 = vmatpush1.bf16.msra.mxu1 %v7135_v12  ;;  %v7170_v12 = vld [vmem:[#allocation12 + $0x8] sm:$0xff]  }
 0x4eb   :  { %1561 = vmatprep.subr.bf16.mxu1 %v7143_v14  ;;  %v7172_v14 = vld [vmem:[#allocation12 + $0x40] sm:$0xff]  }
 0x591   :  { %v1274_v47 = vpop.f32.mrf.mxu1 }
 0x592   :  { %v1275_v17 = vadd.f32 %v5922_v16, %v1274_v47  ;;  %v7144_v47 = vld [vmem:[#allocation12 + $0x78] sm:$0xff]  }
 0x593   :  { %v6764_v18 = vpop.f32.mrf.mxu1  ;;  %6382 = vmatprep.subr.bf16.mxu0 %v7144_v47  ;;  %v7175_v47 = vld [vmem:[#allocation12 + $0x80] sm:$0xff]  }
 0x594   :  { %v1281_v49 = vadd.f32 %v1275_v17, %v8101_v34  ;;  %v7145_v17 = vld [vmem:[#allocation12 + $0xf8] sm:$0xff]  }
 0x595   :  { %v1277_v19 = vpop.f32.mrf.mxu1 }
 0x596   :  { %v1278_v55 = vadd.f32 %v5922_v16, %v1277_v19  ;;  %1283 = vadd.xlane.f32.xlu0 %v1281_v49  ;;  %v7141_v16 = vld [vmem:[#allocation10 + $0x8] ss:$16 sps:$4 sm:$0xff]  }
 0x597   :  { %v6765_v20 = vpop.f32.mrf.mxu1  ;;  %1562 = vmatpush1.bf16.msra.mxu1 %v7141_v16  ;;  %v7174_v16 = vld [vmem:[#allocation12] sm:$0xff]  }
 0x598   :  { %v1282_v21 = vadd.f32 %v1278_v55, %v8103_v35  ;;  %6404 = vmatprep.subr.bf16.mxu1 %v7145_v17  ;;  %v8232_v17 = vsub.s32 3, %v8095_v10 }
 0x59a   :  { %1285 = vadd.xlane.f32.xlu0 %v1282_v21 }
 0x61f   :  { %v1284_v26 = vpop.xlane.xlu0 %1283 }
 0x620   :  { %v1288_v27 = vmul.f32 0.0078125, %v1284_v26 }
 0x622   :  { %v8211_v28 = vsub.f32 %v1281_v49, %v1288_v27 }
 0x623   :  { %v1286_v34 = vpop.xlane.xlu0 %1285 }
 0x624   :  { %v1289_v29 = vmul.f32 0.0078125, %v1286_v34  ;;  %v1292_v30 = vmul.f32 %v8211_v28, %v8211_v28  ;;  %v5932_v34 = vld [vmem:[#allocation15] ss:$0 sm:$0xff] }
 0x626   :  { %v8215_v31 = vsub.f32 %v1282_v21, %v1289_v29  ;;  %1294 = vadd.xlane.f32.xlu1 %v1292_v30 }
 0x628   :  { %v1293_v35 = vmul.f32 %v8215_v31, %v8215_v31 }
 0x62a   :  { %1296 = vadd.xlane.f32.xlu1 %v1293_v35 }
 0x6af   :  { %v1295_v18 = vpop.xlane.xlu1 %1294 }
 0x6b0   :  { %v1298_v49 = vmul.f32 0.0078125, %v1295_v18  ;;  %v693_v18 = vld [vmem:[%s8677_s14] sm:$0xf] }
 0x6b2   :  { %v1300_v19 = vadd.f32 1e-05, %v1298_v49 }
 0x6b3   :  { %v1297_v55 = vpop.xlane.xlu1 %1296 }
 0x6b4   :  { %7556 = vrsqrt.f32 %v1300_v19  ;;  %v1299_v20 = vmul.f32 0.0078125, %v1297_v55  ;;  %v1331_v55 = vrot.slane %v693_v18, %v8159_v45 }
 0x6b6   :  { %v1301_v21 = vadd.f32 1e-05, %v1299_v20  ;;  %v1339_v20 = vrot.slane %v693_v18, %v8232_v17 }
 0x6b8   :  { %7558 = vrsqrt.f32 %v1301_v21  ;;  %v1327_v21 = vrot.slane %v693_v18, %v8162_v46 }
 0x6c1   :  { %v7557_v22 = vpop.eup %7556 }
 0x6c2   :  { %v1304_v23 = vmul.f32 %v7557_v22, %v8211_v28  ;;  %v7148_v28 = vld [vmem:[#allocation12 + $0x70] sm:$0xff]   ;;  %v1335_v22 = vrot.slane %v693_v18, %v8202_v60 }
 0x6c4   :  { %v1312_v27 = vmul.f32 %v5931_v24, %v1304_v23 }
 0x6c5   :  { %v7559_v25 = vpop.eup %7558 }
 0x6c6   :  { %v1305_v26 = vmul.f32 %v7559_v25, %v8215_v31  ;;  %v8224_v30 = vadd.f32 %v5932_v34, %v1312_v27  ;;  %v7151_v31 = vld [vmem:[#allocation12 + $0xb0] sm:$0xff]  }
 0x6c8   :  { %v1313_v29 = vmul.f32 %v5931_v24, %v1305_v26 }
 0x6ca   :  { %v8226_v35 = vadd.f32 %v5932_v34, %v1313_v29 }
 0x6cc   :  { %v1322_v37 = vpack.c.bf16 %v8226_v35, %v8224_v30 }
 0x6ce   :  { %1537 = vmatmul.mubr.bf16.vlgmr.msra.gmra.mxu0 %v1322_v37  ;;  %1580 = vmatmul.mubr.bf16.vlgmr.msra.gmra.mxu1 %v1322_v37 }
 0x6cf   :  { %6383 = vmatpush3.bf16.msra.mxu0 %v7146_v32  ;;  %6405 = vmatpush3.bf16.msra.mxu1 %v7147_v33 }
 0x6d0   :  { %6384 = vmatprep.subr.bf16.mxu0 %v7148_v28  ;;  %6406 = vmatprep.subr.bf16.mxu1 %v7149_v48 }
 0x6d3   :  { %6385 = vmatpush3.bf16.msra.mxu0 %v7150_v50  ;;  %6407 = vmatpush3.bf16.msra.mxu1 %v7151_v31 }
 0x6d4   :  { %6386 = vmatprep.subr.bf16.mxu0 %v7152_v51  ;;  %6408 = vmatprep.subr.bf16.mxu1 %v7153_v52 }
 0x6d7   :  { %6387 = vmatpush3.bf16.msra.mxu0 %v7154_v53  ;;  %6409 = vmatpush3.bf16.msra.mxu1 %v7155_v54 }
 0x6d8   :  { %6388 = vmatprep.subr.bf16.mxu0 %v7156_v56  ;;  %6410 = vmatprep.subr.bf16.mxu1 %v7157_v57 }
 0x6db   :  { %6389 = vmatpush3.bf16.msra.mxu0 %v7158_v58  ;;  %6411 = vmatpush3.bf16.msra.mxu1 %v7159_v59 }
 0x6dc   :  { %6390 = vmatprep.subr.bf16.mxu0 %v7160_v61  ;;  %6412 = vmatprep.subr.bf16.mxu1 %v7161_v62 }
 0x6df   :  { %6391 = vmatpush3.bf16.msra.mxu0 %v7162_v63  ;;  %6413 = vmatpush3.bf16.msra.mxu1 %v7163_v1 }
 0x6e0   :  { %6392 = vmatprep.subr.bf16.mxu0 %v7164_v2  ;;  %6414 = vmatprep.subr.bf16.mxu1 %v7165_v3  ;;  %v5965_v3 = vld [vmem:[#allocation13] ss:$0 sm:$0xff] }
 0x6e3   :  { %6393 = vmatpush3.bf16.msra.mxu0 %v7166_v4  ;;  %6415 = vmatpush3.bf16.msra.mxu1 %v7167_v8 }
 0x6e4   :  { %6394 = vmatprep.subr.bf16.mxu0 %v7168_v9  ;;  %6416 = vmatprep.subr.bf16.mxu1 %v7169_v11 }
 0x6e7   :  { %6395 = vmatpush3.bf16.msra.mxu0 %v7170_v12  ;;  %6417 = vmatpush3.bf16.msra.mxu1 %v7171_v13 }
 0x6e8   :  { %6396 = vmatprep.subr.bf16.mxu0 %v7172_v14  ;;  %6418 = vmatprep.subr.bf16.mxu1 %v7173_v15 }
 0x6eb   :  { %6397 = vmatpush3.bf16.msra.mxu0 %v7174_v16  ;;  %6419 = vmatpush3.bf16.msra.mxu1 %v7175_v47 }
 0x6ec   :  { %6766 = vmatprep.subr.bf16.mxu1 %v7862_v0 }
 0x78e   :  { %v1538_v49 = vpop.f32.mrf.mxu0  ;;  %v1581_v19 = vpop.f32.mrf.mxu1 }
 0x78f   :  { %v1539_v32 = vadd.f32 %v1538_v49, %v1327_v21  ;;  %v1582_v33 = vadd.f32 %v1581_v19, %v1335_v22 }
 0x790   :  { %v1540_v23 = vpop.f32.mrf.mxu0  ;;  %v1583_v24 = vpop.f32.mrf.mxu1 }
 0x791   :  { %v1541_v10 = vadd.f32 %v1540_v23, %v1331_v55  ;;  %v1584_v27 = vadd.f32 %v1583_v24, %v1339_v20  ;;  %v1590_v57 = vmax.f32 %v1539_v32, 0.0  ;;  %v1592_v58 = vmax.f32 %v1582_v33, 0.0  ;;  %v7178_v23 = vld [vmem:[#allocation6 + $0x16c] ss:$12 sps:$4 sm:$0xff]   ;;  %v7179_v24 = vld [vmem:[#allocation6 + $0x170] ss:$12 sps:$4 sm:$0xff]  }
 0x792   :  { %v1542_v25 = vpop.f32.mrf.mxu0  ;;  %v1585_v26 = vpop.f32.mrf.mxu1  ;;  %2231 = vmatprep.subr.bf16.mxu0 %v7178_v23  ;;  %v7182_v32 = vld [vmem:[#allocation6 + $0x154] ss:$12 sps:$4 sm:$0xff]   ;;  %v7180_v33 = vld [vmem:[#allocation6 + $0x150] ss:$12 sps:$4 sm:$0xff]  }
 0x793   :  { %v1543_v34 = vadd.f32 %v1542_v25, %v1327_v21  ;;  %v1586_v29 = vadd.f32 %v1585_v26, %v1335_v22  ;;  %v1591_v52 = vmax.f32 %v1541_v10, 0.0  ;;  %v1593_v53 = vmax.f32 %v1584_v27, 0.0  ;;  %v7176_v22 = vld [vmem:[#allocation6 + $0x168] ss:$12 sps:$4 sm:$0xff]  }
 0x794   :  { %v1544_v37 = vpop.f32.mrf.mxu0  ;;  %v1587_v28 = vpop.f32.mrf.mxu1 }
 0x795   :  { %v1545_v48 = vadd.f32 %v1544_v37, %v1331_v55  ;;  %v1588_v50 = vadd.f32 %v1587_v28, %v1339_v20  ;;  %v1594_v31 = vmax.f32 %v1543_v34, 0.0  ;;  %v1596_v51 = vmax.f32 %v1586_v29, 0.0  ;;  %v7183_v37 = vld [vmem:[#allocation6 + $0x158] ss:$12 sps:$4 sm:$0xff]   ;;  %v7186_v28 = vld [vmem:[#allocation6 + $0x13c] ss:$12 sps:$4 sm:$0xff]  }
 0x797   :  { %v1595_v54 = vmax.f32 %v1545_v48, 0.0  ;;  %v1597_v56 = vmax.f32 %v1588_v50, 0.0  ;;  %v1598_v62 = vpack.c.bf16 %v1594_v31, %v1590_v57  ;;  %v1600_v63 = vpack.c.bf16 %v1596_v51, %v1592_v58  ;;  %v7184_v48 = vld [vmem:[#allocation6 + $0x138] ss:$12 sps:$4 sm:$0xff]   ;;  %v7187_v50 = vld [vmem:[#allocation6 + $0x140] ss:$12 sps:$4 sm:$0xff]  }
 0x798   :  { %v7188_v31 = vld [vmem:[#allocation6 + $0x120] ss:$12 sps:$4 sm:$0xff]   ;;  %v7190_v51 = vld [vmem:[#allocation6 + $0x124] ss:$12 sps:$4 sm:$0xff]  }
 0x799   :  { %v1599_v59 = vpack.c.bf16 %v1595_v54, %v1591_v52  ;;  %v1601_v61 = vpack.c.bf16 %v1597_v56, %v1593_v53  ;;  %v7191_v52 = vld [vmem:[#allocation6 + $0x128] ss:$12 sps:$4 sm:$0xff]   ;;  %v7194_v53 = vld [vmem:[#allocation6 + $0x10c] ss:$12 sps:$4 sm:$0xff]   ;;  %v7195_v56 = vld [vmem:[#allocation6 + $0x110] ss:$12 sps:$4 sm:$0xff]  }
 0x79a   :  { %v7192_v54 = vld [vmem:[#allocation6 + $0x108] ss:$12 sps:$4 sm:$0xff]   ;;  %v7196_v58 = vld [vmem:[#allocation6 + $0xf0] ss:$12 sps:$4 sm:$0xff]  }
 0x79b   :  { %1832 = vmatprep.mubr.bf16.mxu0 %v1599_v59  ;;  %1873 = vmatprep.mubr.bf16.mxu1 %v1601_v61  ;;  %v7198_v57 = vld [vmem:[#allocation6 + $0xf4] ss:$12 sps:$4 sm:$0xff]   ;;  %v7199_v59 = vld [vmem:[#allocation6 + $0xf8] ss:$12 sps:$4 sm:$0xff]   ;;  %v7202_v61 = vld [vmem:[#allocation6 + $0xdc] ss:$12 sps:$4 sm:$0xff]  }
 0x79c   :  { %1833 = vmatmul.mubr.bf16.vlgmr.msra.gmra.mxu0 %v1598_v62  ;;  %1874 = vmatmul.mubr.bf16.vlgmr.msra.gmra.mxu1 %v1600_v63  ;;  %v7200_v62 = vld [vmem:[#allocation6 + $0xd8] ss:$12 sps:$4 sm:$0xff]   ;;  %v7203_v63 = vld [vmem:[#allocation6 + $0xe0] ss:$12 sps:$4 sm:$0xff]  }
 0x79d   :  { %2263 = vmatprep.mubr.bf16.mxu0 %v7864_v36  ;;  %6782 = vmatprep.mubr.msk.bf16.mxu1 %vm7863_vm0, %v7862_v0 }
 0x79e   :  { %6767 = vmatpush3.bf16.msra.mxu1 %v7179_v24  ;;  %2232 = vmatpush1.bf16.msra.mxu0 %v7176_v22 }
 0x79f   :  { %6768 = vmatprep.subr.bf16.mxu1 %v7862_v0  ;;  %2233 = vmatprep.subr.bf16.mxu0 %v7182_v32 }
 0x7a2   :  { %2234 = vmatpush1.bf16.msra.mxu0 %v7180_v33  ;;  %6769 = vmatpush3.bf16.msra.mxu1 %v7183_v37  ;;  %v7208_v37 = vld [vmem:[#allocation7 + $0x78] sm:$0xff]  }
 0x7a3   :  { %6770 = vmatprep.subr.bf16.mxu1 %v7862_v0  ;;  %2235 = vmatprep.subr.bf16.mxu0 %v7186_v28  ;;  %v7209_v28 = vld [vmem:[#allocation7 + $0x70] sm:$0xff]  }
 0x7a6   :  { %2236 = vmatpush1.bf16.msra.mxu0 %v7184_v48  ;;  %6771 = vmatpush3.bf16.msra.mxu1 %v7187_v50  ;;  %v7210_v48 = vld [vmem:[#allocation7 + $0x68] sm:$0xff]   ;;  %v7211_v50 = vld [vmem:[#allocation7 + $0x60] sm:$0xff]  }
 0x7a7   :  { %6772 = vmatprep.subr.bf16.mxu1 %v7862_v0  ;;  %2237 = vmatprep.subr.bf16.mxu0 %v7190_v51 }
 0x7aa   :  { %2238 = vmatpush1.bf16.msra.mxu0 %v7188_v31  ;;  %6773 = vmatpush3.bf16.msra.mxu1 %v7191_v52  ;;  %v7212_v31 = vld [vmem:[#allocation7 + $0x58] sm:$0xff]  }
 0x7ab   :  { %2239 = vmatprep.subr.bf16.mxu0 %v7194_v53  ;;  %6774 = vmatprep.subr.bf16.mxu1 %v7862_v0 }
 0x7ae   :  { %2240 = vmatpush1.bf16.msra.mxu0 %v7192_v54  ;;  %6775 = vmatpush3.bf16.msra.mxu1 %v7195_v56 }
 0x7af   :  { %2241 = vmatprep.subr.bf16.mxu0 %v7198_v57  ;;  %6776 = vmatprep.subr.bf16.mxu1 %v7862_v0 }
 0x7b2   :  { %2242 = vmatpush1.bf16.msra.mxu0 %v7196_v58  ;;  %6777 = vmatpush3.bf16.msra.mxu1 %v7199_v59 }
 0x7b3   :  { %2243 = vmatprep.subr.bf16.mxu0 %v7202_v61  ;;  %6778 = vmatprep.subr.bf16.mxu1 %v7862_v0 }
 0x7b6   :  { %2244 = vmatpush1.bf16.msra.mxu0 %v7200_v62  ;;  %6779 = vmatpush3.bf16.msra.mxu1 %v7203_v63 }
 0x7b7   :  { %6780 = vmatprep.subr.bf16.mxu1 %v7862_v0 }
 0x85c   :  { %v6398_v1 = vpop.f32.mrf.mxu0  ;;  %v6420_v2 = vpop.f32.mrf.mxu1 }
 0x85e   :  { %v6399_v4 = vpop.f32.mrf.mxu0  ;;  %v6421_v8 = vpop.f32.mrf.mxu1 }
 0x85f   :  { %v6400_v9 = vadd.f32 %v6399_v4, %v6398_v1  ;;  %v6422_v14 = vadd.f32 %v6421_v8, %v6420_v2  ;;  %v7206_v1 = vld [vmem:[#allocation6 + $0xc4] ss:$12 sps:$4 sm:$0xff]   ;;  %v7204_v2 = vld [vmem:[#allocation6 + $0xc0] ss:$12 sps:$4 sm:$0xff]  }
 0x860   :  { %v6401_v11 = vpop.f32.mrf.mxu0  ;;  %v6423_v12 = vpop.f32.mrf.mxu1  ;;  %2245 = vmatprep.subr.bf16.mxu0 %v7206_v1 }
 0x861   :  { %v1835_v13 = vadd.f32 %v6400_v9, %v5965_v3  ;;  %2246 = vmatpush1.bf16.msra.mxu0 %v7204_v2 }
 0x862   :  { %v6402_v15 = vpop.f32.mrf.mxu0  ;;  %v6424_v16 = vpop.f32.mrf.mxu1  ;;  %6786 = vmatprep.subr.bf16.mxu0 %v8092_v6 }
 0x863   :  { %v1876_v47 = vadd.f32 %v6422_v14, %v1835_v13  ;;  %v6403_v18 = vadd.f32 %v6402_v15, %v6401_v11  ;;  %v6425_v19 = vadd.f32 %v6424_v16, %v6423_v12  ;;  %v5998_v16 = vld [vmem:[%s8682_s19] ss:$0 sm:$0xff] }
 0x865   :  { %v1838_v49 = vadd.f32 %v6403_v18, %v5965_v3  ;;  %v1882_v55 = vadd.f32 %v1876_v47, %v8224_v30  ;;  %v7207_v3 = vld [vmem:[#allocation6 + $0xc8] ss:$12 sps:$4 sm:$0xff]  }
 0x866   :  { %6781 = vmatpush3.bf16.msra.mxu1 %v7207_v3 }
 0x867   :  { %v1879_v20 = vadd.f32 %v6425_v19, %v1838_v49  ;;  %1884 = vadd.xlane.f32.xlu0 %v1882_v55  ;;  %6985 = vmatprep.subr.msk.bf16.mxu1 %vm1126_vm5, %v8182_v5  ;;  %v5999_v5 = vld [vmem:[#allocation16] ss:$0 sm:$0xff] }
 0x869   :  { %v1883_v21 = vadd.f32 %v1879_v20, %v8226_v35 }
 0x86b   :  { %1886 = vadd.xlane.f32.xlu1 %v1883_v21 }
 0x8f0   :  { %v1885_v25 = vpop.xlane.xlu0 %1884 }
 0x8f1   :  { %v1888_v26 = vmul.f32 0.0078125, %v1885_v25 }
 0x8f3   :  { %v8247_v10 = vsub.f32 %v1882_v55, %v1888_v26 }
 0x8f4   :  { %v1887_v27 = vpop.xlane.xlu1 %1886 }
 0x8f5   :  { %v1889_v34 = vmul.f32 0.0078125, %v1887_v27  ;;  %v1892_v30 = vmul.f32 %v8247_v10, %v8247_v10 }
 0x8f7   :  { %v8251_v29 = vsub.f32 %v1883_v21, %v1889_v34  ;;  %1894 = vadd.xlane.f32.xlu0 %v1892_v30 }
 0x8f9   :  { %v1893_v35 = vmul.f32 %v8251_v29, %v8251_v29 }
 0x8fb   :  { %1896 = vadd.xlane.f32.xlu1 %v1893_v35 }
 0x980   :  { %v1895_v4 = vpop.xlane.xlu0 %1894 }
 0x981   :  { %v1898_v8 = vmul.f32 0.0078125, %v1895_v4 }
 0x983   :  { %v1900_v9 = vadd.f32 1e-05, %v1898_v8 }
 0x984   :  { %v1897_v11 = vpop.xlane.xlu1 %1896 }
 0x985   :  { %7560 = vrsqrt.f32 %v1900_v9  ;;  %v1899_v12 = vmul.f32 0.0078125, %v1897_v11 }
 0x987   :  { %v1901_v13 = vadd.f32 1e-05, %v1899_v12 }
 0x989   :  { %7562 = vrsqrt.f32 %v1901_v13 }
 0x992   :  { %v7561_v14 = vpop.eup %7560 }
 0x993   :  { %v1904_v15 = vmul.f32 %v7561_v14, %v8247_v10 }
 0x995   :  { %v1912_v49 = vmul.f32 %v5998_v16, %v1904_v15 }
 0x996   :  { %v7563_v47 = vpop.eup %7562 }
 0x997   :  { %v1905_v18 = vmul.f32 %v7563_v47, %v8251_v29  ;;  %v8269_v55 = vadd.f32 %v5999_v5, %v1912_v49 }
 0x999   :  { %v1913_v19 = vmul.f32 %v5998_v16, %v1905_v18 }
 0x99b   :  { %v8271_v20 = vadd.f32 %v5999_v5, %v1913_v19 }
 0x99d   :  { %v2086_v21 = vpack.c.bf16 %v8271_v20, %v8269_v55 }
 0x99f   :  { %2264 = vmatmul.mubr.bf16.vlgmr.msra.gmra.mxu0 %v2086_v21  ;;  %6783 = vmatmul.mubr.bf16.vlgmr.msra.gmra.mxu1 %v2086_v21  ;;  %v7213_v21 = vld [vmem:[#allocation7 + $0x50] sm:$0xff]  }
 0x9a0   :  { %6787 = vmatpush3.bf16.msra.mxu0 %v8092_v6  ;;  %6807 = vmatpush3.bf16.msra.mxu1 %v8188_v7  ;;  %v8295_v6 = vld [vmem:[%s8673_s10 + $0x3] sm:$0x7] }
 0x9a1   :  { %6788 = vmatprep.subr.bf16.mxu0 %v8110_v38 }
 0x9a4   :  { %6789 = vmatpush3.bf16.msra.mxu0 %v8110_v38 }
 0x9a5   :  { %6790 = vmatprep.subr.bf16.mxu0 %v8117_v39 }
 0x9a8   :  { %6791 = vmatpush3.bf16.msra.mxu0 %v8117_v39 }
 0x9a9   :  { %6792 = vmatprep.subr.bf16.mxu0 %v8124_v40 }
 0x9ac   :  { %6793 = vmatpush3.bf16.msra.mxu0 %v8124_v40  ;;  %v2095_v40 = vrot.slane %v8295_v6, %v8159_v45 }
 0x9ad   :  { %6794 = vmatprep.subr.bf16.mxu0 %v8131_v41 }
 0x9b0   :  { %6795 = vmatpush3.bf16.msra.mxu0 %v8131_v41 }
 0x9b1   :  { %6796 = vmatprep.subr.bf16.mxu0 %v8139_v42 }
 0x9b4   :  { %6797 = vmatpush3.bf16.msra.mxu0 %v8139_v42 }
 0x9b5   :  { %6798 = vmatprep.subr.bf16.mxu0 %v8146_v43 }
 0x9b8   :  { %6799 = vmatpush3.bf16.msra.mxu0 %v8146_v43  ;;  %v2091_v43 = vrot.slane %v8295_v6, %v8162_v46 }
 0x9b9   :  { %6800 = vmatprep.subr.bf16.mxu0 %v8153_v44 }
 0x9bc   :  { %6801 = vmatpush3.bf16.msra.mxu0 %v8153_v44 }
 0x9bd   :  { %6812 = vmatprep.subr.bf16.mxu0 %v7862_v0 }
 0xa5f   :  { %v2265_v38 = vpop.f32.mrf.mxu0  ;;  %v8297_v39 = vpop.f32.mrf.mxu1 }
 0xa60   :  { %v2266_v10 = vadd.f32 %v2265_v38, %v2091_v43  ;;  %v7214_v38 = vld [vmem:[#allocation7 + $0x48] sm:$0xff]  }
 0xa61   :  { %v2267_v41 = vpop.f32.mrf.mxu0  ;;  %v6784_v42 = vpop.f32.mrf.mxu1 }
 0xa62   :  { %v2268_v23 = vadd.f32 %v2267_v41, %v2095_v40  ;;  %v2099_v41 = vrot.slane %v8295_v6, %v8202_v60 }
 0xa63   :  { %v2269_v22 = vpop.f32.mrf.mxu0  ;;  %v8303_v44 = vpop.f32.mrf.mxu1 }
 0xa64   :  { %v2270_v24 = vadd.f32 %v2269_v22, %v2091_v43  ;;  %v2315_v34 = vmul.f32 %v2268_v23, %v2266_v10  ;;  %v2309_v22 = vadd.f32 %v8297_v39, %v2099_v41 }
 0xa65   :  { %v2271_v25 = vpop.f32.mrf.mxu0  ;;  %v6785_v26 = vpop.f32.mrf.mxu1 }
 0xa66   :  { %v2272_v27 = vadd.f32 %v2271_v25, %v2095_v40  ;;  %v2317_v30 = vmul.f32 %v2270_v24, %v2268_v23  ;;  %v7215_v40 = vld [vmem:[#allocation7 + $0x40] sm:$0xff]   ;;  %v2312_v23 = vadd.f32 %v8303_v44, %v2099_v41 }
 0xa67   :  { %v7252_v41 = vld [vmem:[#allocation10 + $0x120] ss:$16 sps:$4 sm:$0xff]  }
 0xa68   :  { %v2316_v29 = vmul.f32 %v2272_v27, %v2266_v10  ;;  %v2318_v35 = vmul.f32 %v2272_v27, %v2270_v24 }
 0xa6a   :  { %v2320_v32 = vpack.c.bf16 %v2318_v35, %v2317_v30  ;;  %v2319_v33 = vpack.c.bf16 %v2316_v29, %v2315_v34 }
 0xa6c   :  { %6802 = vmatprep.mubr.bf16.mxu0 %v2319_v33 }
 0xa6d   :  { %6803 = vmatmul.mubr.bf16.vlgmr.msra.gmra.mxu0 %v2320_v32  ;;  %v6030_v32 = vld [vmem:[#allocation9 + $0x1] ss:$0 sm:$0xff] }
 0xa6e   :  { %6828 = vmatprep.mubr.msk.bf16.mxu0 %vm7863_vm0, %v7862_v0  ;;  %6813 = vmatpush3.bf16.msra.mxu0 %v7208_v37 }
 0xa6f   :  { %6814 = vmatprep.subr.bf16.mxu0 %v7862_v0 }
 0xa72   :  { %6815 = vmatpush3.bf16.msra.mxu0 %v7209_v28 }
 0xa73   :  { %6816 = vmatprep.subr.bf16.mxu0 %v7862_v0 }
 0xa76   :  { %6817 = vmatpush3.bf16.msra.mxu0 %v7210_v48 }
 0xa77   :  { %6818 = vmatprep.subr.bf16.mxu0 %v7862_v0 }
 0xa7a   :  { %6819 = vmatpush3.bf16.msra.mxu0 %v7211_v50 }
 0xa7b   :  { %6820 = vmatprep.subr.bf16.mxu0 %v7862_v0 }
 0xa7e   :  { %6821 = vmatpush3.bf16.msra.mxu0 %v7212_v31  ;;  %v7216_v31 = vld [vmem:[#allocation10 + $0x1e0] ss:$16 sps:$4 sm:$0xff]  }
 0xa7f   :  { %6822 = vmatprep.subr.bf16.mxu0 %v7862_v0 }
 0xa82   :  { %6823 = vmatpush3.bf16.msra.mxu0 %v7213_v21  ;;  %v7249_v21 = vld [vmem:[#allocation10 + $0x148] ss:$16 sps:$4 sm:$0xff]  }
 0xa83   :  { %6824 = vmatprep.subr.bf16.mxu0 %v7862_v0 }
 0xa86   :  { %6825 = vmatpush3.bf16.msra.mxu0 %v7214_v38  ;;  %v7254_v38 = vld [vmem:[#allocation10 + $0x124] ss:$16 sps:$4 sm:$0xff]  }
 0xa87   :  { %6826 = vmatprep.subr.bf16.mxu0 %v7862_v0 }
 0xa8a   :  { %6827 = vmatpush3.bf16.msra.mxu0 %v7215_v40  ;;  %v7257_v40 = vld [vmem:[#allocation10 + $0x12c] ss:$16 sps:$4 sm:$0xff]  }
 0xb2d   :  { %v6804_v51 = vpop.f32.mrf.mxu0 }
 0xb2f   :  { %v2355_v52 = vpop.f32.mrf.mxu0 }
 0xb31   :  { %v6805_v53 = vpop.f32.mrf.mxu0 }
 0xb32   :  { %v2381_v54 = vmax.f32 %v6804_v51, %v6805_v53 }
 0xb33   :  { %v2358_v56 = vpop.f32.mrf.mxu0 }
 0xb34   :  { %v2382_v57 = vsub.f32 %v6804_v51, %v2381_v54  ;;  %v2385_v58 = vsub.f32 %v6805_v53, %v2381_v54  ;;  %v2370_v59 = vmax.f32 %v2355_v52, %v2358_v56  ;;  %v7218_v51 = vld [vmem:[#allocation10 + $0x1e4] ss:$16 sps:$4 sm:$0xff]   ;;  %v7221_v53 = vld [vmem:[#allocation10 + $0x1ec] ss:$16 sps:$4 sm:$0xff]  }
 0xb35   :  { %2773 = vmatprep.subr.bf16.mxu1 %v7218_v51  ;;  %2816 = vmatprep.subr.bf16.mxu0 %v7221_v53  ;;  %v7266_v51 = vld [vmem:[#allocation12 + $0x138] sm:$0xff]  }
 0xb36   :  { %v2383_v61 = vmul.f32 1.442695, %v2382_v57  ;;  %v2386_v62 = vmul.f32 1.442695, %v2385_v58  ;;  %v2371_v63 = vsub.f32 %v2355_v52, %v2370_v59  ;;  %v2374_v1 = vsub.f32 %v2358_v56, %v2370_v59  ;;  %v7219_v52 = vld [vmem:[#allocation10 + $0x1e8] ss:$16 sps:$4 sm:$0xff]  }
 0xb38   :  { %7564 = vpow2.f32 %v2383_v61  ;;  %v2372_v2 = vmul.f32 1.442695, %v2371_v63  ;;  %v2375_v3 = vmul.f32 1.442695, %v2374_v1  ;;  %v7227_v63 = vld [vmem:[#allocation10 + $0x1cc] ss:$16 sps:$4 sm:$0xff]  }
 0xb39   :  { %7566 = vpow2.f32 %v2386_v62  ;;  %v7224_v62 = vld [vmem:[#allocation10 + $0x1c4] ss:$16 sps:$4 sm:$0xff]   ;;  %v7222_v1 = vld [vmem:[#allocation10 + $0x1c0] ss:$16 sps:$4 sm:$0xff]  }
 0xb3a   :  { %7568 = vpow2.f32 %v2372_v2  ;;  %v7225_v2 = vld [vmem:[#allocation10 + $0x1c8] ss:$16 sps:$4 sm:$0xff]  }
 0xb3b   :  { %7570 = vpow2.f32 %v2375_v3  ;;  %v7230_v3 = vld [vmem:[#allocation10 + $0x1a4] ss:$16 sps:$4 sm:$0xff]  }
 0xb45   :  { %v7565_v4 = vpop.eup %7564 }
 0xb46   :  { %v7567_v8 = vpop.eup %7566 }
 0xb47   :  { %v7569_v9 = vpop.eup %7568  ;;  %v2388_v11 = vadd.f32 %v7567_v8, %v7565_v4 }
 0xb48   :  { %v7571_v12 = vpop.eup %7570 }
 0xb49   :  { %7572 = vrcp.f32 %v2388_v11  ;;  %v2377_v13 = vadd.f32 %v7571_v12, %v7569_v9  ;;  %v7234_v11 = vld [vmem:[#allocation10 + $0x180] ss:$16 sps:$4 sm:$0xff]  }
 0xb4b   :  { %7574 = vrcp.f32 %v2377_v13  ;;  %v7237_v13 = vld [vmem:[#allocation10 + $0x188] ss:$16 sps:$4 sm:$0xff]  }
 0xb56   :  { %v7573_v14 = vpop.eup %7572 }
 0xb57   :  { %v2390_v16 = vmul.f32 %v7573_v14, %v7565_v4  ;;  %v2391_v47 = vmul.f32 %v7573_v14, %v7567_v8  ;;  %v7233_v4 = vld [vmem:[#allocation10 + $0x1ac] ss:$16 sps:$4 sm:$0xff]   ;;  %v7228_v8 = vld [vmem:[#allocation10 + $0x1a0] ss:$16 sps:$4 sm:$0xff]  }
 0xb58   :  { %v7575_v15 = vpop.eup %7574  ;;  %v7239_v14 = vld [vmem:[#allocation10 + $0x18c] ss:$16 sps:$4 sm:$0xff]  }
 0xb59   :  { %v2379_v18 = vmul.f32 %v7575_v15, %v7569_v9  ;;  %v2380_v49 = vmul.f32 %v7575_v15, %v7571_v12  ;;  %v2393_v19 = vpack.c.bf16 %v2391_v47, %v2390_v16  ;;  %v7231_v9 = vld [vmem:[#allocation10 + $0x1a8] ss:$16 sps:$4 sm:$0xff]   ;;  %v7236_v12 = vld [vmem:[#allocation10 + $0x184] ss:$16 sps:$4 sm:$0xff]   ;;  %v7245_v16 = vld [vmem:[#allocation10 + $0x16c] ss:$16 sps:$4 sm:$0xff]  }
 0xb5a   :  { %v7242_v15 = vld [vmem:[#allocation10 + $0x164] ss:$16 sps:$4 sm:$0xff]   ;;  %v7240_v47 = vld [vmem:[#allocation10 + $0x160] ss:$16 sps:$4 sm:$0xff]  }
 0xb5b   :  { %v2392_v5 = vpack.c.bf16 %v2380_v49, %v2379_v18  ;;  %v7243_v18 = vld [vmem:[#allocation10 + $0x168] ss:$16 sps:$4 sm:$0xff]   ;;  %v7248_v49 = vld [vmem:[#allocation10 + $0x144] ss:$16 sps:$4 sm:$0xff]  }
 0xb5d   :  { %6808 = vmatprep.mubr.msk.bf16.mxu1 %vm1119_vm6, %v2392_v5  ;;  %v7251_v5 = vld [vmem:[#allocation10 + $0x14c] ss:$16 sps:$4 sm:$0xff]  }
 0xb5e   :  { %6809 = vmatmul.mubr.msk.bf16.vlgmr.msra.gmra.mxu1 %vm1119_vm6, %v2393_v19  ;;  %v7246_v19 = vld [vmem:[#allocation10 + $0x140] ss:$16 sps:$4 sm:$0xff]  }
 0xb5f   :  { %2805 = vmatprep.mubr.bf16.mxu1 %v7864_v36  ;;  %2774 = vmatpush1.bf16.msra.mxu1 %v7216_v31 }
 0xb60   :  { %2775 = vmatprep.subr.bf16.mxu1 %v7224_v62  ;;  %v7276_v62 = vld [vmem:[#allocation12 + $0x160] sm:$0xff]  }
 0xb63   :  { %2776 = vmatpush1.bf16.msra.mxu1 %v7222_v1  ;;  %v7278_v1 = vld [vmem:[#allocation12 + $0x120] sm:$0xff]  }
 0xb64   :  { %2777 = vmatprep.subr.bf16.mxu1 %v7230_v3  ;;  %v7280_v3 = vld [vmem:[#allocation12 + $0x158] sm:$0xff]  }
 0xb67   :  { %2778 = vmatpush1.bf16.msra.mxu1 %v7228_v8  ;;  %v7282_v8 = vld [vmem:[#allocation12 + $0x118] sm:$0xff]  }
 0xb68   :  { %2779 = vmatprep.subr.bf16.mxu1 %v7236_v12  ;;  %v7285_v12 = vld [vmem:[#allocation12 + $0x1d0] sm:$0xff]  }
 0xb6b   :  { %2780 = vmatpush1.bf16.msra.mxu1 %v7234_v11  ;;  %v7284_v11 = vld [vmem:[#allocation12 + $0x150] sm:$0xff]  }
 0xb6c   :  { %2781 = vmatprep.subr.bf16.mxu1 %v7242_v15  ;;  %v7288_v15 = vld [vmem:[#allocation12 + $0x148] sm:$0xff]  }
 0xb6f   :  { %2782 = vmatpush1.bf16.msra.mxu1 %v7240_v47  ;;  %v7290_v47 = vld [vmem:[#allocation12 + $0x108] sm:$0xff]  }
 0xb70   :  { %2783 = vmatprep.subr.bf16.mxu1 %v7248_v49  ;;  %v7292_v49 = vld [vmem:[#allocation12 + $0x140] sm:$0xff]  }
 0xb73   :  { %2784 = vmatpush1.bf16.msra.mxu1 %v7246_v19  ;;  %v7294_v19 = vld [vmem:[#allocation12 + $0x100] sm:$0xff]  }
 0xb74   :  { %2785 = vmatprep.subr.bf16.mxu1 %v7254_v38  ;;  %v6001_v38 = vld [vmem:[%s8677_s14 + $0x4] sm:$0xf] }
 0xb77   :  { %2786 = vmatpush1.bf16.msra.mxu1 %v7252_v41 }
 0xc1e   :  { %v6810_v42 = vpop.f32.mrf.mxu1 }
 0xc1f   :  { %v2451_v25 = vmul.f32 %v6810_v42, %v2309_v22  ;;  %v7255_v42 = vld [vmem:[#allocation10 + $0x128] ss:$16 sps:$4 sm:$0xff]  }
 0xc20   :  { %v2434_v43 = vpop.f32.mrf.mxu1 }
 0xc21   :  { %v2449_v27 = vmul.f32 %v2434_v43, %v2309_v22  ;;  %v7260_v43 = vld [vmem:[#allocation10 + $0x104] ss:$16 sps:$4 sm:$0xff]   ;;  %v7263_v22 = vld [vmem:[#allocation10 + $0x10c] ss:$16 sps:$4 sm:$0xff]  }
 0xc22   :  { %v6811_v24 = vpop.f32.mrf.mxu1  ;;  %2787 = vmatprep.subr.bf16.mxu1 %v7260_v43  ;;  %v2608_v43 = vrot.slane %v6001_v38, %v8232_v17 }
 0xc23   :  { %v2452_v26 = vmul.f32 %v6811_v24, %v2312_v23  ;;  %v7261_v24 = vld [vmem:[#allocation10 + $0x108] ss:$16 sps:$4 sm:$0xff]  }
 0xc24   :  { %v2437_v10 = vpop.f32.mrf.mxu1 }
 0xc25   :  { %v2454_v34 = vadd.f32 %v2452_v26, %v2451_v25  ;;  %v2450_v30 = vmul.f32 %v2437_v10, %v2312_v23  ;;  %v7258_v23 = vld [vmem:[#allocation10 + $0x100] ss:$16 sps:$4 sm:$0xff]   ;;  %v7264_v25 = vld [vmem:[#allocation12 + $0x178] sm:$0xff]  }
 0xc26   :  { %2788 = vmatpush1.bf16.msra.mxu1 %v7258_v23  ;;  %v7265_v26 = vld [vmem:[#allocation12 + $0x1f8] sm:$0xff]   ;;  %v2604_v23 = vrot.slane %v6001_v38, %v8202_v60 }
 0xc27   :  { %v2453_v29 = vadd.f32 %v2450_v30, %v2449_v27  ;;  %6457 = vmatprep.subr.bf16.mxu1 %v7264_v25 }
 0xc29   :  { %v2455_v35 = vpack.c.bf16 %v2454_v34, %v2453_v29 }
 0xc2b   :  { %6829 = vmatmul.mubr.bf16.vlgmr.msra.gmra.mxu0 %v2455_v35 }
 0xc2c   :  { %2848 = vmatprep.mubr.bf16.mxu0 %v7864_v36  ;;  %2817 = vmatpush1.bf16.msra.mxu0 %v7219_v52  ;;  %v7267_v52 = vld [vmem:[#allocation12 + $0x1b8] sm:$0xff]  }
 0xc2d   :  { %2818 = vmatprep.subr.bf16.mxu0 %v7227_v63  ;;  %v7277_v63 = vld [vmem:[#allocation12 + $0x1e0] sm:$0xff]  }
 0xc30   :  { %2819 = vmatpush1.bf16.msra.mxu0 %v7225_v2  ;;  %v7279_v2 = vld [vmem:[#allocation12 + $0x1a0] sm:$0xff]  }
 0xc31   :  { %2820 = vmatprep.subr.bf16.mxu0 %v7233_v4  ;;  %v7281_v4 = vld [vmem:[#allocation12 + $0x1d8] sm:$0xff]  }
 0xc34   :  { %2821 = vmatpush1.bf16.msra.mxu0 %v7231_v9  ;;  %v7283_v9 = vld [vmem:[#allocation12 + $0x198] sm:$0xff]  }
 0xc35   :  { %2822 = vmatprep.subr.bf16.mxu0 %v7239_v14  ;;  %v7287_v14 = vld [vmem:[#allocation12 + $0x190] sm:$0xff]  }
 0xc38   :  { %2823 = vmatpush1.bf16.msra.mxu0 %v7237_v13  ;;  %v7286_v13 = vld [vmem:[#allocation12 + $0x110] sm:$0xff]  }
 0xc39   :  { %2824 = vmatprep.subr.bf16.mxu0 %v7245_v16  ;;  %v7289_v16 = vld [vmem:[#allocation12 + $0x1c8] sm:$0xff]  }
 0xc3c   :  { %2825 = vmatpush1.bf16.msra.mxu0 %v7243_v18  ;;  %v7291_v18 = vld [vmem:[#allocation12 + $0x188] sm:$0xff]  }
 0xc3d   :  { %2826 = vmatprep.subr.bf16.mxu0 %v7251_v5  ;;  %v7293_v5 = vld [vmem:[#allocation12 + $0x1c0] sm:$0xff]  }
 0xc40   :  { %2827 = vmatpush1.bf16.msra.mxu0 %v7249_v21  ;;  %v7295_v21 = vld [vmem:[#allocation12 + $0x180] sm:$0xff]  }
 0xc41   :  { %2828 = vmatprep.subr.bf16.mxu0 %v7257_v40 }
 0xc44   :  { %2829 = vmatpush1.bf16.msra.mxu0 %v7255_v42  ;;  %v2600_v42 = vrot.slane %v6001_v38, %v8159_v45 }
 0xc45   :  { %2830 = vmatprep.subr.bf16.mxu0 %v7263_v22  ;;  %v2596_v22 = vrot.slane %v6001_v38, %v8162_v46 }
 0xc48   :  { %2831 = vmatpush1.bf16.msra.mxu0 %v7261_v24 }
 0xc49   :  { %6479 = vmatprep.subr.bf16.mxu0 %v7265_v26 }
 0xceb   :  { %v2544_v6 = vpop.f32.mrf.mxu0 }
 0xcec   :  { %v2545_v33 = vadd.f32 %v6030_v32, %v2544_v6 }
 0xced   :  { %v6830_v37 = vpop.f32.mrf.mxu0 }
 0xcee   :  { %v2551_v39 = vadd.f32 %v2545_v33, %v8269_v55  ;;  %v6039_v33 = vld [vmem:[%s8680_s17 + $0x1] ss:$0 sm:$0xff] }
 0xcef   :  { %v2547_v28 = vpop.f32.mrf.mxu0 }
 0xcf0   :  { %v2548_v44 = vadd.f32 %v6030_v32, %v2547_v28  ;;  %2553 = vadd.xlane.f32.xlu0 %v2551_v39 }
 0xcf1   :  { %v6831_v48 = vpop.f32.mrf.mxu0 }
 0xcf2   :  { %v2552_v50 = vadd.f32 %v2548_v44, %v8271_v20  ;;  %v6040_v44 = vld [vmem:[#allocation15 + $0x1] ss:$0 sm:$0xff] }
 0xcf4   :  { %2555 = vadd.xlane.f32.xlu1 %v2552_v50 }
 0xd79   :  { %v2554_v54 = vpop.xlane.xlu0 %2553 }
 0xd7a   :  { %v2557_v56 = vmul.f32 0.0078125, %v2554_v54  ;;  %v7268_v54 = vld [vmem:[#allocation12 + $0x170] sm:$0xff]  }
 0xd7c   :  { %v8324_v57 = vsub.f32 %v2551_v39, %v2557_v56  ;;  %v7269_v56 = vld [vmem:[#allocation12 + $0x1f0] sm:$0xff]  }
 0xd7d   :  { %v2556_v55 = vpop.xlane.xlu1 %2555 }
 0xd7e   :  { %v2558_v58 = vmul.f32 0.0078125, %v2556_v55  ;;  %v2561_v59 = vmul.f32 %v8324_v57, %v8324_v57  ;;  %v7271_v55 = vld [vmem:[#allocation12 + $0x1b0] sm:$0xff]  }
 0xd80   :  { %v8328_v61 = vsub.f32 %v2552_v50, %v2558_v58  ;;  %2563 = vadd.xlane.f32.xlu0 %v2561_v59  ;;  %v7272_v58 = vld [vmem:[#allocation12 + $0x168] sm:$0xff]  }
 0xd81   :  { %v7273_v59 = vld [vmem:[#allocation12 + $0x1e8] sm:$0xff]  }
 0xd82   :  { %v2562_v20 = vmul.f32 %v8328_v61, %v8328_v61 }
 0xd84   :  { %2565 = vadd.xlane.f32.xlu1 %v2562_v20  ;;  %v7275_v20 = vld [vmem:[#allocation12 + $0x1a8] sm:$0xff]  }
 0xe09   :  { %v2564_v10 = vpop.xlane.xlu0 %2563 }
 0xe0a   :  { %v2567_v27 = vmul.f32 0.0078125, %v2564_v10 }
 0xe0c   :  { %v2569_v34 = vadd.f32 1e-05, %v2567_v27 }
 0xe0d   :  { %v2566_v30 = vpop.xlane.xlu1 %2565 }
 0xe0e   :  { %7576 = vrsqrt.f32 %v2569_v34  ;;  %v2568_v29 = vmul.f32 0.0078125, %v2566_v30 }
 0xe10   :  { %v2570_v35 = vadd.f32 1e-05, %v2568_v29 }
 0xe12   :  { %7578 = vrsqrt.f32 %v2570_v35 }
 0xe1b   :  { %v7577_v32 = vpop.eup %7576 }
 0xe1c   :  { %v2573_v6 = vmul.f32 %v7577_v32, %v8324_v57  ;;  %v7270_v57 = vld [vmem:[#allocation12 + $0x130] sm:$0xff]  }
 0xe1e   :  { %v2581_v28 = vmul.f32 %v6039_v33, %v2573_v6 }
 0xe1f   :  { %v7579_v37 = vpop.eup %7578 }
 0xe20   :  { %v2574_v39 = vmul.f32 %v7579_v37, %v8328_v61  ;;  %v8337_v50 = vadd.f32 %v6040_v44, %v2581_v28  ;;  %v7274_v61 = vld [vmem:[#allocation12 + $0x128] sm:$0xff]  }
 0xe22   :  { %v2582_v48 = vmul.f32 %v6039_v33, %v2574_v39 }
 0xe24   :  { %v8339_v31 = vadd.f32 %v6040_v44, %v2582_v48 }
 0xe26   :  { %v2591_v53 = vpack.c.bf16 %v8339_v31, %v8337_v50 }
 0xe28   :  { %2806 = vmatmul.mubr.bf16.vlgmr.msra.gmra.mxu1 %v2591_v53  ;;  %2849 = vmatmul.mubr.bf16.vlgmr.msra.gmra.mxu0 %v2591_v53 }
 0xe29   :  { %6458 = vmatpush3.bf16.msra.mxu1 %v7266_v51  ;;  %6480 = vmatpush3.bf16.msra.mxu0 %v7267_v52 }
 0xe2a   :  { %6459 = vmatprep.subr.bf16.mxu1 %v7268_v54  ;;  %6481 = vmatprep.subr.bf16.mxu0 %v7269_v56 }
 0xe2d   :  { %6460 = vmatpush3.bf16.msra.mxu1 %v7270_v57  ;;  %6482 = vmatpush3.bf16.msra.mxu0 %v7271_v55 }
 0xe2e   :  { %6461 = vmatprep.subr.bf16.mxu1 %v7272_v58  ;;  %6483 = vmatprep.subr.bf16.mxu0 %v7273_v59 }
 0xe31   :  { %6462 = vmatpush3.bf16.msra.mxu1 %v7274_v61  ;;  %6484 = vmatpush3.bf16.msra.mxu0 %v7275_v20 }
 0xe32   :  { %6463 = vmatprep.subr.bf16.mxu1 %v7276_v62  ;;  %6485 = vmatprep.subr.bf16.mxu0 %v7277_v63  ;;  %v6073_v62 = vld [vmem:[#allocation13 + $0x1] ss:$0 sm:$0xff] }
 0xe35   :  { %6464 = vmatpush3.bf16.msra.mxu1 %v7278_v1  ;;  %6486 = vmatpush3.bf16.msra.mxu0 %v7279_v2 }
 0xe36   :  { %6465 = vmatprep.subr.bf16.mxu1 %v7280_v3  ;;  %6487 = vmatprep.subr.bf16.mxu0 %v7281_v4 }
 0xe39   :  { %6466 = vmatpush3.bf16.msra.mxu1 %v7282_v8  ;;  %6488 = vmatpush3.bf16.msra.mxu0 %v7283_v9 }
 0xe3a   :  { %6467 = vmatprep.subr.bf16.mxu1 %v7284_v11  ;;  %6489 = vmatprep.subr.bf16.mxu0 %v7285_v12 }
 0xe3d   :  { %6468 = vmatpush3.bf16.msra.mxu1 %v7286_v13  ;;  %6490 = vmatpush3.bf16.msra.mxu0 %v7287_v14 }
 0xe3e   :  { %6469 = vmatprep.subr.bf16.mxu1 %v7288_v15  ;;  %6491 = vmatprep.subr.bf16.mxu0 %v7289_v16 }
 0xe41   :  { %6470 = vmatpush3.bf16.msra.mxu1 %v7290_v47  ;;  %6492 = vmatpush3.bf16.msra.mxu0 %v7291_v18 }
 0xe42   :  { %6471 = vmatprep.subr.bf16.mxu1 %v7292_v49  ;;  %6493 = vmatprep.subr.bf16.mxu0 %v7293_v5  ;;  %v7296_v5 = vld [vmem:[#allocation6 + $0x228] ss:$12 sps:$4 sm:$0xff]  }
 0xe45   :  { %6472 = vmatpush3.bf16.msra.mxu1 %v7294_v19  ;;  %6494 = vmatpush3.bf16.msra.mxu0 %v7295_v21  ;;  %v7298_v19 = vld [vmem:[#allocation6 + $0x22c] ss:$12 sps:$4 sm:$0xff]   ;;  %v7299_v21 = vld [vmem:[#allocation6 + $0x230] ss:$12 sps:$4 sm:$0xff]  }
 0xe46   :  { %6832 = vmatprep.subr.bf16.mxu0 %v7862_v0  ;;  %3500 = vmatprep.subr.bf16.mxu1 %v7298_v19  ;;  %v8450_v19 = vld [vmem:[%s8673_s10 + $0x6] sm:$0x7] }
 0xee8   :  { %v2807_v40 = vpop.f32.mrf.mxu1  ;;  %v2850_v41 = vpop.f32.mrf.mxu0 }
 0xee9   :  { %v2808_v35 = vadd.f32 %v2807_v40, %v2596_v22  ;;  %v2851_v32 = vadd.f32 %v2850_v41, %v2604_v23 }
 0xeea   :  { %v2809_v24 = vpop.f32.mrf.mxu1  ;;  %v2852_v25 = vpop.f32.mrf.mxu0 }
 0xeeb   :  { %v2810_v27 = vadd.f32 %v2809_v24, %v2600_v42  ;;  %v2853_v34 = vadd.f32 %v2852_v25, %v2608_v43  ;;  %v2859_v54 = vmax.f32 %v2808_v35, 0.0  ;;  %v2861_v56 = vmax.f32 %v2851_v32, 0.0  ;;  %v7300_v24 = vld [vmem:[#allocation6 + $0x210] ss:$12 sps:$4 sm:$0xff]   ;;  %v7303_v25 = vld [vmem:[#allocation6 + $0x218] ss:$12 sps:$4 sm:$0xff]  }
 0xeec   :  { %v2811_v26 = vpop.f32.mrf.mxu1  ;;  %v2854_v10 = vpop.f32.mrf.mxu0  ;;  %v7314_v35 = vld [vmem:[#allocation6 + $0x1cc] ss:$12 sps:$4 sm:$0xff]   ;;  %v7312_v32 = vld [vmem:[#allocation6 + $0x1c8] ss:$12 sps:$4 sm:$0xff]  }
 0xeed   :  { %v2812_v30 = vadd.f32 %v2811_v26, %v2596_v22  ;;  %v2855_v29 = vadd.f32 %v2854_v10, %v2604_v23  ;;  %v2860_v48 = vmax.f32 %v2810_v27, 0.0  ;;  %v2862_v51 = vmax.f32 %v2853_v34, 0.0  ;;  %v7302_v23 = vld [vmem:[#allocation6 + $0x214] ss:$12 sps:$4 sm:$0xff]   ;;  %v7306_v26 = vld [vmem:[#allocation6 + $0x1fc] ss:$12 sps:$4 sm:$0xff]  }
 0xeee   :  { %v2813_v6 = vpop.f32.mrf.mxu1  ;;  %v2856_v33 = vpop.f32.mrf.mxu0  ;;  %v7304_v10 = vld [vmem:[#allocation6 + $0x1f8] ss:$12 sps:$4 sm:$0xff]   ;;  %v7307_v27 = vld [vmem:[#allocation6 + $0x200] ss:$12 sps:$4 sm:$0xff]  }
 0xeef   :  { %v2814_v37 = vadd.f32 %v2813_v6, %v2600_v42  ;;  %v2857_v39 = vadd.f32 %v2856_v33, %v2608_v43  ;;  %v2863_v28 = vmax.f32 %v2812_v30, 0.0  ;;  %v2865_v44 = vmax.f32 %v2855_v29, 0.0  ;;  %v7308_v34 = vld [vmem:[#allocation6 + $0x1e0] ss:$12 sps:$4 sm:$0xff]   ;;  %v7310_v30 = vld [vmem:[#allocation6 + $0x1e4] ss:$12 sps:$4 sm:$0xff]  }
 0xef0   :  { %v7311_v29 = vld [vmem:[#allocation6 + $0x1e8] ss:$12 sps:$4 sm:$0xff]   ;;  %v7315_v6 = vld [vmem:[#allocation6 + $0x1d0] ss:$12 sps:$4 sm:$0xff]  }
 0xef1   :  { %v2864_v52 = vmax.f32 %v2814_v37, 0.0  ;;  %v2866_v53 = vmax.f32 %v2857_v39, 0.0  ;;  %v2867_v58 = vpack.c.bf16 %v2863_v28, %v2859_v54  ;;  %v2869_v59 = vpack.c.bf16 %v2865_v44, %v2861_v56  ;;  %v7318_v33 = vld [vmem:[#allocation6 + $0x1b4] ss:$12 sps:$4 sm:$0xff]   ;;  %v7316_v37 = vld [vmem:[#allocation6 + $0x1b0] ss:$12 sps:$4 sm:$0xff]  }
 0xef2   :  { %v7319_v39 = vld [vmem:[#allocation6 + $0x1b8] ss:$12 sps:$4 sm:$0xff]   ;;  %v7322_v28 = vld [vmem:[#allocation6 + $0x19c] ss:$12 sps:$4 sm:$0xff]  }
 0xef3   :  { %v2868_v57 = vpack.c.bf16 %v2864_v52, %v2860_v48  ;;  %v2870_v55 = vpack.c.bf16 %v2866_v53, %v2862_v51  ;;  %v7320_v44 = vld [vmem:[#allocation6 + $0x198] ss:$12 sps:$4 sm:$0xff]   ;;  %v7323_v48 = vld [vmem:[#allocation6 + $0x1a0] ss:$12 sps:$4 sm:$0xff]   ;;  %v7327_v53 = vld [vmem:[#allocation6 + $0x188] ss:$12 sps:$4 sm:$0xff]  }
 0xef4   :  { %v7326_v51 = vld [vmem:[#allocation6 + $0x184] ss:$12 sps:$4 sm:$0xff]   ;;  %v7324_v52 = vld [vmem:[#allocation6 + $0x180] ss:$12 sps:$4 sm:$0xff]   ;;  %v8374_v54 = vld [vmem:[%s8701_s24 + $0x38] sm:$0xff]  }
 0xef5   :  { %3101 = vmatprep.mubr.bf16.mxu1 %v2868_v57  ;;  %3142 = vmatprep.mubr.bf16.mxu0 %v2870_v55  ;;  %v8380_v56 = vld [vmem:[%s8669_s6] sm:$0xf] }
 0xef6   :  { %3102 = vmatmul.mubr.bf16.vlgmr.msra.gmra.mxu1 %v2867_v58  ;;  %3143 = vmatmul.mubr.bf16.vlgmr.msra.gmra.mxu0 %v2869_v59 }
 0xef7   :  { %3532 = vmatprep.mubr.bf16.mxu1 %v7864_v36  ;;  %6848 = vmatprep.mubr.msk.bf16.mxu0 %vm7863_vm0, %v7862_v0 }
 0xef8   :  { %6833 = vmatpush3.bf16.msra.mxu0 %v7299_v21  ;;  %3501 = vmatpush1.bf16.msra.mxu1 %v7296_v5  ;;  %v8442_v5 = vld [vmem:[%s8701_s24] sm:$0xff]  }
 0xef9   :  { %6834 = vmatprep.subr.bf16.mxu0 %v7862_v0  ;;  %3502 = vmatprep.subr.bf16.mxu1 %v7302_v23 }
 0xefc   :  { %3503 = vmatpush1.bf16.msra.mxu1 %v7300_v24  ;;  %6835 = vmatpush3.bf16.msra.mxu0 %v7303_v25 }
 0xefd   :  { %6836 = vmatprep.subr.bf16.mxu0 %v7862_v0  ;;  %3504 = vmatprep.subr.bf16.mxu1 %v7306_v26 }
 0xf00   :  { %3505 = vmatpush1.bf16.msra.mxu1 %v7304_v10  ;;  %6837 = vmatpush3.bf16.msra.mxu0 %v7307_v27 }
 0xf01   :  { %6838 = vmatprep.subr.bf16.mxu0 %v7862_v0  ;;  %3506 = vmatprep.subr.bf16.mxu1 %v7310_v30 }
 0xf04   :  { %3507 = vmatpush1.bf16.msra.mxu1 %v7308_v34  ;;  %6839 = vmatpush3.bf16.msra.mxu0 %v7311_v29 }
 0xf05   :  { %3508 = vmatprep.subr.bf16.mxu1 %v7314_v35  ;;  %6840 = vmatprep.subr.bf16.mxu0 %v7862_v0 }
 0xf08   :  { %3509 = vmatpush1.bf16.msra.mxu1 %v7312_v32  ;;  %6841 = vmatpush3.bf16.msra.mxu0 %v7315_v6  ;;  %v7328_v6 = vld [vmem:[#allocation7 + $0xb8] sm:$0xff]  }
 0xf09   :  { %3510 = vmatprep.subr.bf16.mxu1 %v7318_v33  ;;  %6842 = vmatprep.subr.bf16.mxu0 %v7862_v0  ;;  %v7329_v33 = vld [vmem:[#allocation7 + $0xb0] sm:$0xff]  }
 0xf0c   :  { %3511 = vmatpush1.bf16.msra.mxu1 %v7316_v37  ;;  %6843 = vmatpush3.bf16.msra.mxu0 %v7319_v39  ;;  %v7330_v37 = vld [vmem:[#allocation7 + $0xa8] sm:$0xff]   ;;  %v7331_v39 = vld [vmem:[#allocation7 + $0xa0] sm:$0xff]  }
 0xf0d   :  { %3512 = vmatprep.subr.bf16.mxu1 %v7322_v28  ;;  %6844 = vmatprep.subr.bf16.mxu0 %v7862_v0  ;;  %v7332_v28 = vld [vmem:[#allocation7 + $0x98] sm:$0xff]  }
 0xf10   :  { %3513 = vmatpush1.bf16.msra.mxu1 %v7320_v44  ;;  %6845 = vmatpush3.bf16.msra.mxu0 %v7323_v48 }
 0xf11   :  { %3514 = vmatprep.subr.bf16.mxu1 %v7326_v51  ;;  %6846 = vmatprep.subr.bf16.mxu0 %v7862_v0 }
 0xf14   :  { %3515 = vmatpush1.bf16.msra.mxu1 %v7324_v52  ;;  %6847 = vmatpush3.bf16.msra.mxu0 %v7327_v53 }
 0xf15   :  { %6852 = vmatprep.subr.bf16.mxu1 %v8374_v54  ;;  %6986 = vmatprep.subr.msk.bf16.mxu0 %vm1126_vm5, %v8380_v56 }
 0xfb6   :  { %v6473_v61 = vpop.f32.mrf.mxu1  ;;  %v6495_v20 = vpop.f32.mrf.mxu0 }
 0xfb8   :  { %v6474_v63 = vpop.f32.mrf.mxu1  ;;  %v6496_v1 = vpop.f32.mrf.mxu0 }
 0xfb9   :  { %v6475_v2 = vadd.f32 %v6474_v63, %v6473_v61  ;;  %v6497_v9 = vadd.f32 %v6496_v1, %v6495_v20  ;;  %v6106_v1 = vld [vmem:[%s8682_s19 + $0x1] ss:$0 sm:$0xff] }
 0xfba   :  { %v6476_v3 = vpop.f32.mrf.mxu1  ;;  %v6498_v4 = vpop.f32.mrf.mxu0 }
 0xfbb   :  { %v3104_v8 = vadd.f32 %v6475_v2, %v6073_v62 }
 0xfbc   :  { %v6477_v11 = vpop.f32.mrf.mxu1  ;;  %v6499_v12 = vpop.f32.mrf.mxu0 }
 0xfbd   :  { %v3145_v13 = vadd.f32 %v6497_v9, %v3104_v8  ;;  %v6478_v14 = vadd.f32 %v6477_v11, %v6476_v3  ;;  %v6500_v16 = vadd.f32 %v6499_v12, %v6498_v4  ;;  %v6107_v8 = vld [vmem:[#allocation16 + $0x1] ss:$0 sm:$0xff] }
 0xfbf   :  { %v3107_v15 = vadd.f32 %v6478_v14, %v6073_v62  ;;  %v3151_v47 = vadd.f32 %v3145_v13, %v8337_v50  ;;  %v8400_v14 = vld [vmem:[%s8701_s24 + $0x30] sm:$0xff]  }
 0xfc1   :  { %v3148_v18 = vadd.f32 %v6500_v16, %v3107_v15  ;;  %3153 = vadd.xlane.f32.xlu0 %v3151_v47  ;;  %v8407_v15 = vld [vmem:[%s8701_s24 + $0x28] sm:$0xff]   ;;  %v8414_v16 = vld [vmem:[%s8701_s24 + $0x20] sm:$0xff]  }
 0xfc3   :  { %v3152_v49 = vadd.f32 %v3148_v18, %v8339_v31  ;;  %v8428_v18 = vld [vmem:[%s8701_s24 + $0x10] sm:$0xff]  }
 0xfc5   :  { %3155 = vadd.xlane.f32.xlu1 %v3152_v49 }
0x104a   :  { %v3154_v38 = vpop.xlane.xlu0 %3153 }
0x104b   :  { %v3157_v40 = vmul.f32 0.0078125, %v3154_v38 }
0x104d   :  { %v8357_v41 = vsub.f32 %v3151_v47, %v3157_v40  ;;  %v8421_v47 = vld [vmem:[%s8701_s24 + $0x18] sm:$0xff]   ;;  %v3364_v40 = vrot.slane %v8450_v19, %v8159_v45 }
0x104e   :  { %v3156_v42 = vpop.xlane.xlu1 %3155 }
0x104f   :  { %v3158_v43 = vmul.f32 0.0078125, %v3156_v42  ;;  %v3161_v50 = vmul.f32 %v8357_v41, %v8357_v41 }
0x1051   :  { %v8361_v22 = vsub.f32 %v3152_v49, %v3158_v43  ;;  %3163 = vadd.xlane.f32.xlu0 %v3161_v50  ;;  %v8435_v49 = vld [vmem:[%s8701_s24 + $0x8] sm:$0xff]   ;;  %v3360_v43 = vrot.slane %v8450_v19, %v8162_v46 }
0x1053   :  { %v3162_v31 = vmul.f32 %v8361_v22, %v8361_v22 }
0x1055   :  { %3165 = vadd.xlane.f32.xlu1 %v3162_v31 }
0x10da   :  { %v3164_v57 = vpop.xlane.xlu0 %3163 }
0x10db   :  { %v3167_v55 = vmul.f32 0.0078125, %v3164_v57 }
0x10dd   :  { %v3169_v58 = vadd.f32 1e-05, %v3167_v55 }
0x10de   :  { %v3166_v59 = vpop.xlane.xlu1 %3165 }
0x10df   :  { %7580 = vrsqrt.f32 %v3169_v58  ;;  %v3168_v61 = vmul.f32 0.0078125, %v3166_v59 }
0x10e1   :  { %v3170_v20 = vadd.f32 1e-05, %v3168_v61 }
0x10e3   :  { %7582 = vrsqrt.f32 %v3170_v20 }
0x10ec   :  { %v7581_v62 = vpop.eup %7580 }
0x10ed   :  { %v3173_v63 = vmul.f32 %v7581_v62, %v8357_v41 }
0x10ef   :  { %v3181_v4 = vmul.f32 %v6106_v1, %v3173_v63 }
0x10f0   :  { %v7583_v2 = vpop.eup %7582 }
0x10f1   :  { %v3174_v3 = vmul.f32 %v7583_v2, %v8361_v22  ;;  %v8389_v11 = vadd.f32 %v6107_v8, %v3181_v4 }
0x10f3   :  { %v3182_v9 = vmul.f32 %v6106_v1, %v3174_v3 }
0x10f5   :  { %v8391_v12 = vadd.f32 %v6107_v8, %v3182_v9 }
0x10f7   :  { %v3355_v13 = vpack.c.bf16 %v8391_v12, %v8389_v11 }
0x10f9   :  { %3533 = vmatmul.mubr.bf16.vlgmr.msra.gmra.mxu1 %v3355_v13  ;;  %6849 = vmatmul.mubr.bf16.vlgmr.msra.gmra.mxu0 %v3355_v13 }
0x10fa   :  { %6853 = vmatpush3.bf16.msra.mxu1 %v8374_v54  ;;  %6873 = vmatpush3.bf16.msra.mxu0 %v8188_v7 }
0x10fb   :  { %6854 = vmatprep.subr.bf16.mxu1 %v8400_v14 }
0x10fe   :  { %6855 = vmatpush3.bf16.msra.mxu1 %v8400_v14 }
0x10ff   :  { %6856 = vmatprep.subr.bf16.mxu1 %v8407_v15 }
0x1102   :  { %6857 = vmatpush3.bf16.msra.mxu1 %v8407_v15 }
0x1103   :  { %6858 = vmatprep.subr.bf16.mxu1 %v8414_v16 }
0x1106   :  { %6859 = vmatpush3.bf16.msra.mxu1 %v8414_v16 }
0x1107   :  { %6860 = vmatprep.subr.bf16.mxu1 %v8421_v47 }
0x110a   :  { %6861 = vmatpush3.bf16.msra.mxu1 %v8421_v47 }
0x110b   :  { %6862 = vmatprep.subr.bf16.mxu1 %v8428_v18 }
0x110e   :  { %6863 = vmatpush3.bf16.msra.mxu1 %v8428_v18 }
0x110f   :  { %6864 = vmatprep.subr.bf16.mxu1 %v8435_v49 }
0x1112   :  { %6865 = vmatpush3.bf16.msra.mxu1 %v8435_v49 }
0x1113   :  { %6866 = vmatprep.subr.bf16.mxu1 %v8442_v5 }
0x1116   :  { %6867 = vmatpush3.bf16.msra.mxu1 %v8442_v5 }
0x1117   :  { %6878 = vmatprep.subr.bf16.mxu1 %v7862_v0 }
0x11b9   :  { %v3534_v21 = vpop.f32.mrf.mxu1  ;;  %v8452_v38 = vpop.f32.mrf.mxu0 }
0x11ba   :  { %v3535_v26 = vadd.f32 %v3534_v21, %v3360_v43 }
0x11bb   :  { %v3536_v41 = vpop.f32.mrf.mxu1  ;;  %v6850_v42 = vpop.f32.mrf.mxu0 }
0x11bc   :  { %v3537_v31 = vadd.f32 %v3536_v41, %v3364_v40 }
0x11bd   :  { %v3538_v50 = vpop.f32.mrf.mxu1  ;;  %v8458_v22 = vpop.f32.mrf.mxu0 }
0x11be   :  { %v3539_v23 = vadd.f32 %v3538_v50, %v3360_v43  ;;  %v3584_v27 = vmul.f32 %v3537_v31, %v3535_v26 }
0x11bf   :  { %v3540_v24 = vpop.f32.mrf.mxu1  ;;  %v6851_v25 = vpop.f32.mrf.mxu0 }
0x11c0   :  { %v3541_v10 = vadd.f32 %v3540_v24, %v3364_v40  ;;  %v3586_v34 = vmul.f32 %v3539_v23, %v3537_v31  ;;  %v7333_v24 = vld [vmem:[#allocation7 + $0x90] sm:$0xff]   ;;  %v7334_v25 = vld [vmem:[#allocation7 + $0x88] sm:$0xff]  }
0x11c2   :  { %v3585_v30 = vmul.f32 %v3541_v10, %v3535_v26  ;;  %v3587_v29 = vmul.f32 %v3541_v10, %v3539_v23  ;;  %v7335_v26 = vld [vmem:[#allocation7 + $0x80] sm:$0xff]   ;;  %v3368_v10 = vrot.slane %v8450_v19, %v8202_v60 }
0x11c4   :  { %v3589_v35 = vpack.c.bf16 %v3587_v29, %v3586_v34  ;;  %v3588_v32 = vpack.c.bf16 %v3585_v30, %v3584_v27  ;;  %v3578_v30 = vadd.f32 %v8452_v38, %v3368_v10  ;;  %v3581_v29 = vadd.f32 %v8458_v22, %v3368_v10  ;;  %v7365_v10 = vld [vmem:[#allocation10 + $0x26c] ss:$16 sps:$4 sm:$0xff]  }
0x11c6   :  { %6868 = vmatprep.mubr.bf16.mxu1 %v3588_v32 }
0x11c7   :  { %6869 = vmatmul.mubr.bf16.vlgmr.msra.gmra.mxu1 %v3589_v35 }
0x11c8   :  { %6894 = vmatprep.mubr.msk.bf16.mxu1 %vm7863_vm0, %v7862_v0  ;;  %6879 = vmatpush3.bf16.msra.mxu1 %v7328_v6 }
0x11c9   :  { %6880 = vmatprep.subr.bf16.mxu1 %v7862_v0 }
0x11cc   :  { %6881 = vmatpush3.bf16.msra.mxu1 %v7329_v33 }
0x11cd   :  { %6882 = vmatprep.subr.bf16.mxu1 %v7862_v0 }
0x11d0   :  { %6883 = vmatpush3.bf16.msra.mxu1 %v7330_v37 }
0x11d1   :  { %6884 = vmatprep.subr.bf16.mxu1 %v7862_v0 }
0x11d4   :  { %6885 = vmatpush3.bf16.msra.mxu1 %v7331_v39 }
0x11d5   :  { %6886 = vmatprep.subr.bf16.mxu1 %v7862_v0 }
0x11d8   :  { %6887 = vmatpush3.bf16.msra.mxu1 %v7332_v28 }
0x11d9   :  { %6888 = vmatprep.subr.bf16.mxu1 %v7862_v0 }
0x11dc   :  { %6889 = vmatpush3.bf16.msra.mxu1 %v7333_v24  ;;  %v7357_v24 = vld [vmem:[#allocation10 + $0x288] ss:$16 sps:$4 sm:$0xff]  }
0x11dd   :  { %6890 = vmatprep.subr.bf16.mxu1 %v7862_v0 }
0x11e0   :  { %6891 = vmatpush3.bf16.msra.mxu1 %v7334_v25  ;;  %v7359_v25 = vld [vmem:[#allocation10 + $0x28c] ss:$16 sps:$4 sm:$0xff]  }
0x11e1   :  { %6892 = vmatprep.subr.bf16.mxu1 %v7862_v0 }
0x11e4   :  { %6893 = vmatpush3.bf16.msra.mxu1 %v7335_v26  ;;  %v7362_v26 = vld [vmem:[#allocation10 + $0x264] ss:$16 sps:$4 sm:$0xff]  }
0x1287   :  { %v6870_v44 = vpop.f32.mrf.mxu1 }
0x1289   :  { %v3624_v48 = vpop.f32.mrf.mxu1 }
0x128b   :  { %v6871_v51 = vpop.f32.mrf.mxu1 }
0x128c   :  { %v3650_v52 = vmax.f32 %v6870_v44, %v6871_v51 }
0x128d   :  { %v3627_v53 = vpop.f32.mrf.mxu1 }
0x128e   :  { %v3651_v57 = vsub.f32 %v6870_v44, %v3650_v52  ;;  %v3654_v55 = vsub.f32 %v6871_v51, %v3650_v52  ;;  %v3639_v58 = vmax.f32 %v3624_v48, %v3627_v53  ;;  %v6138_v51 = vld [vmem:[#allocation9 + $0x2] ss:$0 sm:$0xff] }
0x1290   :  { %v3652_v59 = vmul.f32 1.442695, %v3651_v57  ;;  %v3655_v61 = vmul.f32 1.442695, %v3654_v55  ;;  %v3640_v20 = vsub.f32 %v3624_v48, %v3639_v58  ;;  %v3643_v62 = vsub.f32 %v3627_v53, %v3639_v58 }
0x1292   :  { %7584 = vpow2.f32 %v3652_v59  ;;  %v3641_v63 = vmul.f32 1.442695, %v3640_v20  ;;  %v3644_v1 = vmul.f32 1.442695, %v3643_v62  ;;  %v7336_v59 = vld [vmem:[#allocation10 + $0x2e0] ss:$16 sps:$4 sm:$0xff]  }
0x1293   :  { %7586 = vpow2.f32 %v3655_v61  ;;  %v7338_v61 = vld [vmem:[#allocation10 + $0x2e4] ss:$16 sps:$4 sm:$0xff]   ;;  %v7339_v20 = vld [vmem:[#allocation10 + $0x2e8] ss:$16 sps:$4 sm:$0xff]   ;;  %v7341_v62 = vld [vmem:[#allocation10 + $0x2ec] ss:$16 sps:$4 sm:$0xff]  }
0x1294   :  { %7588 = vpow2.f32 %v3641_v63  ;;  %4042 = vmatprep.subr.bf16.mxu0 %v7338_v61  ;;  %4085 = vmatprep.subr.bf16.mxu1 %v7341_v62 }
0x1295   :  { %7590 = vpow2.f32 %v3644_v1 }
0x129f   :  { %v7585_v2 = vpop.eup %7584 }
0x12a0   :  { %v7587_v3 = vpop.eup %7586 }
0x12a1   :  { %v7589_v4 = vpop.eup %7588  ;;  %v3657_v8 = vadd.f32 %v7587_v3, %v7585_v2 }
0x12a2   :  { %v7591_v9 = vpop.eup %7590 }
0x12a3   :  { %7592 = vrcp.f32 %v3657_v8  ;;  %v3646_v13 = vadd.f32 %v7591_v9, %v7589_v4 }
0x12a5   :  { %7594 = vrcp.f32 %v3646_v13  ;;  %v7347_v13 = vld [vmem:[#allocation10 + $0x2cc] ss:$16 sps:$4 sm:$0xff]  }
0x12b0   :  { %v7593_v21 = vpop.eup %7592 }
0x12b1   :  { %v3659_v41 = vmul.f32 %v7593_v21, %v7585_v2  ;;  %v3660_v42 = vmul.f32 %v7593_v21, %v7587_v3  ;;  %v7342_v21 = vld [vmem:[#allocation10 + $0x2c0] ss:$16 sps:$4 sm:$0xff]  }
0x12b2   :  { %v7595_v40 = vpop.eup %7594 }
0x12b3   :  { %v3648_v43 = vmul.f32 %v7595_v40, %v7589_v4  ;;  %v3649_v50 = vmul.f32 %v7595_v40, %v7591_v9  ;;  %v3662_v23 = vpack.c.bf16 %v3660_v42, %v3659_v41  ;;  %v7344_v9 = vld [vmem:[#allocation10 + $0x2c4] ss:$16 sps:$4 sm:$0xff]   ;;  %v7345_v40 = vld [vmem:[#allocation10 + $0x2c8] ss:$16 sps:$4 sm:$0xff]   ;;  %v7353_v42 = vld [vmem:[#allocation10 + $0x2ac] ss:$16 sps:$4 sm:$0xff]  }
0x12b4   :  { %v7350_v41 = vld [vmem:[#allocation10 + $0x2a4] ss:$16 sps:$4 sm:$0xff]  }
0x12b5   :  { %v3661_v31 = vpack.c.bf16 %v3649_v50, %v3648_v43  ;;  %v7348_v43 = vld [vmem:[#allocation10 + $0x2a0] ss:$16 sps:$4 sm:$0xff]   ;;  %v7351_v50 = vld [vmem:[#allocation10 + $0x2a8] ss:$16 sps:$4 sm:$0xff]  }
0x12b7   :  { %6874 = vmatprep.mubr.msk.bf16.mxu0 %vm1119_vm6, %v3661_v31  ;;  %v7354_v31 = vld [vmem:[#allocation10 + $0x280] ss:$16 sps:$4 sm:$0xff]  }
0x12b8   :  { %6875 = vmatmul.mubr.msk.bf16.vlgmr.msra.gmra.mxu0 %vm1119_vm6, %v3662_v23  ;;  %v7356_v23 = vld [vmem:[#allocation10 + $0x284] ss:$16 sps:$4 sm:$0xff]  }
0x12b9   :  { %4074 = vmatprep.mubr.bf16.mxu0 %v7864_v36  ;;  %4043 = vmatpush1.bf16.msra.mxu0 %v7336_v59 }
0x12ba   :  { %4044 = vmatprep.subr.bf16.mxu0 %v7344_v9  ;;  %v7386_v9 = vld [vmem:[#allocation12 + $0x238] sm:$0xff]  }
0x12bd   :  { %4045 = vmatpush1.bf16.msra.mxu0 %v7342_v21 }
0x12be   :  { %4046 = vmatprep.subr.bf16.mxu0 %v7350_v41  ;;  %v7390_v41 = vld [vmem:[#allocation12 + $0x230] sm:$0xff]  }
0x12c1   :  { %4047 = vmatpush1.bf16.msra.mxu0 %v7348_v43  ;;  %v7393_v43 = vld [vmem:[#allocation12 + $0x2e8] sm:$0xff]  }
0x12c2   :  { %4048 = vmatprep.subr.bf16.mxu0 %v7356_v23  ;;  %v7396_v23 = vld [vmem:[#allocation12 + $0x260] sm:$0xff]  }
0x12c5   :  { %4049 = vmatpush1.bf16.msra.mxu0 %v7354_v31  ;;  %v7395_v31 = vld [vmem:[#allocation12 + $0x2a8] sm:$0xff]  }
0x12c6   :  { %4050 = vmatprep.subr.bf16.mxu0 %v7362_v26  ;;  %v7399_v26 = vld [vmem:[#allocation12 + $0x2a0] sm:$0xff]  }
0x1378   :  { %v6876_v27 = vpop.f32.mrf.mxu0 }
0x1379   :  { %v3720_v32 = vmul.f32 %v6876_v27, %v3578_v30  ;;  %v7360_v27 = vld [vmem:[#allocation10 + $0x260] ss:$16 sps:$4 sm:$0xff]  }
0x137a   :  { %v3703_v34 = vpop.f32.mrf.mxu0  ;;  %4051 = vmatpush1.bf16.msra.mxu0 %v7360_v27  ;;  %v7401_v27 = vld [vmem:[#allocation12 + $0x2d8] sm:$0xff]  }
0x137b   :  { %v3718_v37 = vmul.f32 %v3703_v34, %v3578_v30  ;;  %v7363_v34 = vld [vmem:[#allocation10 + $0x268] ss:$16 sps:$4 sm:$0xff]   ;;  %v7368_v30 = vld [vmem:[#allocation10 + $0x244] ss:$16 sps:$4 sm:$0xff]  }
0x137c   :  { %v6877_v35 = vpop.f32.mrf.mxu0  ;;  %4052 = vmatprep.subr.bf16.mxu0 %v7368_v30  ;;  %v7403_v30 = vld [vmem:[#allocation12 + $0x298] sm:$0xff]  }
0x137d   :  { %v3721_v6 = vmul.f32 %v6877_v35, %v3581_v29  ;;  %v7366_v35 = vld [vmem:[#allocation10 + $0x240] ss:$16 sps:$4 sm:$0xff]  }
0x137e   :  { %v3706_v33 = vpop.f32.mrf.mxu0  ;;  %4053 = vmatpush1.bf16.msra.mxu0 %v7366_v35  ;;  %v7405_v35 = vld [vmem:[#allocation12 + $0x2d0] sm:$0xff]  }
0x137f   :  { %v3723_v39 = vadd.f32 %v3721_v6, %v3720_v32  ;;  %v3719_v28 = vmul.f32 %v3706_v33, %v3581_v29  ;;  %v7371_v29 = vld [vmem:[#allocation10 + $0x24c] ss:$16 sps:$4 sm:$0xff]   ;;  %v7369_v32 = vld [vmem:[#allocation10 + $0x248] ss:$16 sps:$4 sm:$0xff]   ;;  %v7374_v6 = vld [vmem:[#allocation10 + $0x224] ss:$16 sps:$4 sm:$0xff]  }
0x1380   :  { %v7377_v33 = vld [vmem:[#allocation10 + $0x22c] ss:$16 sps:$4 sm:$0xff]   ;;  %4054 = vmatprep.subr.bf16.mxu0 %v7374_v6  ;;  %v7407_v6 = vld [vmem:[#allocation12 + $0x290] sm:$0xff]  }
0x1381   :  { %v3722_v44 = vadd.f32 %v3719_v28, %v3718_v37  ;;  %v7372_v37 = vld [vmem:[#allocation10 + $0x220] ss:$16 sps:$4 sm:$0xff]   ;;  %v7380_v28 = vld [vmem:[#allocation10 + $0x204] ss:$16 sps:$4 sm:$0xff]  }
0x1382   :  { %4055 = vmatpush1.bf16.msra.mxu0 %v7372_v37  ;;  %v7409_v37 = vld [vmem:[#allocation12 + $0x2c8] sm:$0xff]  }
0x1383   :  { %v3724_v48 = vpack.c.bf16 %v3723_v39, %v3722_v44  ;;  %v7375_v39 = vld [vmem:[#allocation10 + $0x228] ss:$16 sps:$4 sm:$0xff]   ;;  %v7383_v44 = vld [vmem:[#allocation10 + $0x20c] ss:$16 sps:$4 sm:$0xff]   ;;  %4056 = vmatprep.subr.bf16.mxu0 %v7380_v28 }
0x1384   :  { %v7411_v28 = vld [vmem:[#allocation12 + $0x288] sm:$0xff]  }
0x1385   :  { %6895 = vmatmul.mubr.bf16.vlgmr.msra.gmra.mxu1 %v3724_v48  ;;  %v7378_v48 = vld [vmem:[#allocation10 + $0x200] ss:$16 sps:$4 sm:$0xff]  }
0x1386   :  { %4117 = vmatprep.mubr.bf16.mxu1 %v7864_v36  ;;  %4086 = vmatpush1.bf16.msra.mxu1 %v7339_v20  ;;  %v6147_v20 = vld [vmem:[%s8680_s17 + $0x2] ss:$0 sm:$0xff] }
0x1387   :  { %4087 = vmatprep.subr.bf16.mxu1 %v7347_v13  ;;  %4057 = vmatpush1.bf16.msra.mxu0 %v7378_v48  ;;  %v7387_v13 = vld [vmem:[#allocation12 + $0x2b8] sm:$0xff]   ;;  %v7413_v48 = vld [vmem:[#allocation12 + $0x2c0] sm:$0xff]  }
0x138a   :  { %4088 = vmatpush1.bf16.msra.mxu1 %v7345_v40  ;;  %v7389_v40 = vld [vmem:[#allocation12 + $0x2f0] sm:$0xff]  }
0x138b   :  { %4089 = vmatprep.subr.bf16.mxu1 %v7353_v42  ;;  %v7392_v42 = vld [vmem:[#allocation12 + $0x268] sm:$0xff]  }
0x138e   :  { %4090 = vmatpush1.bf16.msra.mxu1 %v7351_v50  ;;  %v7394_v50 = vld [vmem:[#allocation12 + $0x228] sm:$0xff]  }
0x138f   :  { %4091 = vmatprep.subr.bf16.mxu1 %v7359_v25  ;;  %v7398_v25 = vld [vmem:[#allocation12 + $0x220] sm:$0xff]  }
0x1392   :  { %4092 = vmatpush1.bf16.msra.mxu1 %v7357_v24  ;;  %v7397_v24 = vld [vmem:[#allocation12 + $0x2e0] sm:$0xff]  }
0x1393   :  { %4093 = vmatprep.subr.bf16.mxu1 %v7365_v10  ;;  %v7400_v10 = vld [vmem:[#allocation12 + $0x258] sm:$0xff]  }
0x1396   :  { %4094 = vmatpush1.bf16.msra.mxu1 %v7363_v34  ;;  %v7402_v34 = vld [vmem:[#allocation12 + $0x218] sm:$0xff]  }
0x1397   :  { %4095 = vmatprep.subr.bf16.mxu1 %v7371_v29  ;;  %v7404_v29 = vld [vmem:[#allocation12 + $0x250] sm:$0xff]  }
0x139a   :  { %4096 = vmatpush1.bf16.msra.mxu1 %v7369_v32  ;;  %v7406_v32 = vld [vmem:[#allocation12 + $0x210] sm:$0xff]  }
0x139b   :  { %4097 = vmatprep.subr.bf16.mxu1 %v7377_v33  ;;  %v7408_v33 = vld [vmem:[#allocation12 + $0x248] sm:$0xff]  }
0x139e   :  { %4098 = vmatpush1.bf16.msra.mxu1 %v7375_v39  ;;  %v7410_v39 = vld [vmem:[#allocation12 + $0x208] sm:$0xff]  }
0x139f   :  { %4099 = vmatprep.subr.bf16.mxu1 %v7383_v44  ;;  %v7412_v44 = vld [vmem:[#allocation12 + $0x240] sm:$0xff]  }
0x1445   :  { %v3813_v19 = vpop.f32.mrf.mxu1 }
0x1446   :  { %v3814_v52 = vadd.f32 %v6138_v51, %v3813_v19  ;;  %v7384_v19 = vld [vmem:[#allocation12 + $0x278] sm:$0xff]  }
0x1447   :  { %v6896_v53 = vpop.f32.mrf.mxu1  ;;  %6532 = vmatprep.subr.bf16.mxu0 %v7384_v19  ;;  %v7415_v19 = vld [vmem:[#allocation12 + $0x280] sm:$0xff]  }
0x1448   :  { %v3820_v38 = vadd.f32 %v3814_v52, %v8389_v11  ;;  %v7385_v52 = vld [vmem:[#allocation12 + $0x2f8] sm:$0xff]  }
0x1449   :  { %v3816_v57 = vpop.f32.mrf.mxu1 }
0x144a   :  { %v3817_v22 = vadd.f32 %v6138_v51, %v3816_v57  ;;  %3822 = vadd.xlane.f32.xlu0 %v3820_v38  ;;  %v7381_v51 = vld [vmem:[#allocation10 + $0x208] ss:$16 sps:$4 sm:$0xff]  }
0x144b   :  { %v6897_v55 = vpop.f32.mrf.mxu1  ;;  %4100 = vmatpush1.bf16.msra.mxu1 %v7381_v51  ;;  %v7414_v51 = vld [vmem:[#allocation12 + $0x200] sm:$0xff]  }
0x144c   :  { %v3821_v58 = vadd.f32 %v3817_v22, %v8391_v12  ;;  %6554 = vmatprep.subr.bf16.mxu1 %v7385_v52  ;;  %v6109_v52 = vld [vmem:[%s8677_s14 + $0x8] sm:$0xf] }
0x144e   :  { %3824 = vadd.xlane.f32.xlu1 %v3821_v58 }
0x14d3   :  { %v3823_v63 = vpop.xlane.xlu0 %3822 }
0x14d4   :  { %v3826_v1 = vmul.f32 0.0078125, %v3823_v63 }
0x14d6   :  { %v8479_v2 = vsub.f32 %v3820_v38, %v3826_v1 }
0x14d7   :  { %v3825_v11 = vpop.xlane.xlu1 %3824 }
0x14d8   :  { %v3827_v3 = vmul.f32 0.0078125, %v3825_v11  ;;  %v3830_v4 = vmul.f32 %v8479_v2, %v8479_v2  ;;  %v6148_v11 = vld [vmem:[#allocation15 + $0x2] ss:$0 sm:$0xff] }
0x14da   :  { %v8483_v8 = vsub.f32 %v3821_v58, %v3827_v3  ;;  %3832 = vadd.xlane.f32.xlu0 %v3830_v4 }
0x14dc   :  { %v3831_v12 = vmul.f32 %v8483_v8, %v8483_v8 }
0x14de   :  { %3834 = vadd.xlane.f32.xlu1 %v3831_v12 }
0x1563   :  { %v3833_v53 = vpop.xlane.xlu0 %3832 }
0x1564   :  { %v3836_v38 = vmul.f32 0.0078125, %v3833_v53 }
0x1566   :  { %v3838_v57 = vadd.f32 1e-05, %v3836_v38 }
0x1567   :  { %v3835_v22 = vpop.xlane.xlu1 %3834 }
0x1568   :  { %7596 = vrsqrt.f32 %v3838_v57  ;;  %v3837_v55 = vmul.f32 0.0078125, %v3835_v22  ;;  %v3869_v57 = vrot.slane %v6109_v52, %v8159_v45  ;;  %v3877_v22 = vrot.slane %v6109_v52, %v8232_v17 }
0x156a   :  { %v3839_v58 = vadd.f32 1e-05, %v3837_v55  ;;  %v3865_v55 = vrot.slane %v6109_v52, %v8162_v46 }
0x156c   :  { %7598 = vrsqrt.f32 %v3839_v58  ;;  %v3873_v58 = vrot.slane %v6109_v52, %v8202_v60 }
0x1575   :  { %v7597_v59 = vpop.eup %7596 }
0x1576   :  { %v3842_v61 = vmul.f32 %v7597_v59, %v8479_v2  ;;  %v7388_v2 = vld [vmem:[#allocation12 + $0x270] sm:$0xff]  }
0x1578   :  { %v3850_v1 = vmul.f32 %v6147_v20, %v3842_v61 }
0x1579   :  { %v7599_v62 = vpop.eup %7598 }
0x157a   :  { %v3843_v63 = vmul.f32 %v7599_v62, %v8483_v8  ;;  %v8492_v4 = vadd.f32 %v6148_v11, %v3850_v1  ;;  %v7391_v8 = vld [vmem:[#allocation12 + $0x2b0] sm:$0xff]  }
0x157c   :  { %v3851_v3 = vmul.f32 %v6147_v20, %v3843_v63 }
0x157e   :  { %v8494_v12 = vadd.f32 %v6148_v11, %v3851_v3 }
0x1580   :  { %v3860_v21 = vpack.c.bf16 %v8494_v12, %v8492_v4 }
0x1582   :  { %4075 = vmatmul.mubr.bf16.vlgmr.msra.gmra.mxu0 %v3860_v21  ;;  %4118 = vmatmul.mubr.bf16.vlgmr.msra.gmra.mxu1 %v3860_v21 }
0x1583   :  { %6533 = vmatpush3.bf16.msra.mxu0 %v7386_v9  ;;  %6555 = vmatpush3.bf16.msra.mxu1 %v7387_v13 }
0x1584   :  { %6534 = vmatprep.subr.bf16.mxu0 %v7388_v2  ;;  %6556 = vmatprep.subr.bf16.mxu1 %v7389_v40 }
0x1587   :  { %6535 = vmatpush3.bf16.msra.mxu0 %v7390_v41  ;;  %6557 = vmatpush3.bf16.msra.mxu1 %v7391_v8 }
0x1588   :  { %6536 = vmatprep.subr.bf16.mxu0 %v7392_v42  ;;  %6558 = vmatprep.subr.bf16.mxu1 %v7393_v43 }
0x158b   :  { %6537 = vmatpush3.bf16.msra.mxu0 %v7394_v50  ;;  %6559 = vmatpush3.bf16.msra.mxu1 %v7395_v31 }
0x158c   :  { %6538 = vmatprep.subr.bf16.mxu0 %v7396_v23  ;;  %6560 = vmatprep.subr.bf16.mxu1 %v7397_v24 }
0x158f   :  { %6539 = vmatpush3.bf16.msra.mxu0 %v7398_v25  ;;  %6561 = vmatpush3.bf16.msra.mxu1 %v7399_v26 }
0x1590   :  { %6540 = vmatprep.subr.bf16.mxu0 %v7400_v10  ;;  %6562 = vmatprep.subr.bf16.mxu1 %v7401_v27 }
0x1593   :  { %6541 = vmatpush3.bf16.msra.mxu0 %v7402_v34  ;;  %6563 = vmatpush3.bf16.msra.mxu1 %v7403_v30 }
0x1594   :  { %6542 = vmatprep.subr.bf16.mxu0 %v7404_v29  ;;  %6564 = vmatprep.subr.bf16.mxu1 %v7405_v35  ;;  %v6181_v35 = vld [vmem:[#allocation13 + $0x2] ss:$0 sm:$0xff] }
0x1597   :  { %6543 = vmatpush3.bf16.msra.mxu0 %v7406_v32  ;;  %6565 = vmatpush3.bf16.msra.mxu1 %v7407_v6 }
0x1598   :  { %6544 = vmatprep.subr.bf16.mxu0 %v7408_v33  ;;  %6566 = vmatprep.subr.bf16.mxu1 %v7409_v37 }
0x159b   :  { %6545 = vmatpush3.bf16.msra.mxu0 %v7410_v39  ;;  %6567 = vmatpush3.bf16.msra.mxu1 %v7411_v28 }
0x159c   :  { %6546 = vmatprep.subr.bf16.mxu0 %v7412_v44  ;;  %6568 = vmatprep.subr.bf16.mxu1 %v7413_v48 }
0x159f   :  { %6547 = vmatpush3.bf16.msra.mxu0 %v7414_v51  ;;  %6569 = vmatpush3.bf16.msra.mxu1 %v7415_v19 }
0x15a0   :  { %6898 = vmatprep.subr.bf16.mxu1 %v7862_v0 }
0x1642   :  { %v4076_v53 = vpop.f32.mrf.mxu0  ;;  %v4119_v38 = vpop.f32.mrf.mxu1 }
0x1643   :  { %v4077_v9 = vadd.f32 %v4076_v53, %v3865_v55  ;;  %v4120_v13 = vadd.f32 %v4119_v38, %v3873_v58 }
0x1644   :  { %v4078_v59 = vpop.f32.mrf.mxu0  ;;  %v4121_v61 = vpop.f32.mrf.mxu1 }
0x1645   :  { %v4079_v63 = vadd.f32 %v4078_v59, %v3869_v57  ;;  %v4122_v1 = vadd.f32 %v4121_v61, %v3877_v22  ;;  %v4128_v24 = vmax.f32 %v4077_v9, 0.0  ;;  %v4130_v25 = vmax.f32 %v4120_v13, 0.0  ;;  %v7418_v59 = vld [vmem:[#allocation6 + $0x2ec] ss:$12 sps:$4 sm:$0xff]   ;;  %v7419_v61 = vld [vmem:[#allocation6 + $0x2f0] ss:$12 sps:$4 sm:$0xff]  }
0x1646   :  { %v4080_v20 = vpop.f32.mrf.mxu0  ;;  %v4123_v62 = vpop.f32.mrf.mxu1  ;;  %4769 = vmatprep.subr.bf16.mxu0 %v7418_v59  ;;  %v7422_v9 = vld [vmem:[#allocation6 + $0x2d4] ss:$12 sps:$4 sm:$0xff]   ;;  %v7420_v13 = vld [vmem:[#allocation6 + $0x2d0] ss:$12 sps:$4 sm:$0xff]  }
0x1647   :  { %v4081_v11 = vadd.f32 %v4080_v20, %v3865_v55  ;;  %v4124_v3 = vadd.f32 %v4123_v62, %v3873_v58  ;;  %v4129_v43 = vmax.f32 %v4079_v63, 0.0  ;;  %v4131_v50 = vmax.f32 %v4122_v1, 0.0  ;;  %v7416_v58 = vld [vmem:[#allocation6 + $0x2e8] ss:$12 sps:$4 sm:$0xff]  }
0x1648   :  { %v4082_v21 = vpop.f32.mrf.mxu0  ;;  %v4125_v2 = vpop.f32.mrf.mxu1 }
0x1649   :  { %v4083_v40 = vadd.f32 %v4082_v21, %v3869_v57  ;;  %v4126_v41 = vadd.f32 %v4125_v2, %v3877_v22  ;;  %v4132_v8 = vmax.f32 %v4081_v11, 0.0  ;;  %v4134_v42 = vmax.f32 %v4124_v3, 0.0  ;;  %v7423_v21 = vld [vmem:[#allocation6 + $0x2d8] ss:$12 sps:$4 sm:$0xff]   ;;  %v7426_v2 = vld [vmem:[#allocation6 + $0x2bc] ss:$12 sps:$4 sm:$0xff]  }
0x164b   :  { %v4133_v31 = vmax.f32 %v4083_v40, 0.0  ;;  %v4135_v23 = vmax.f32 %v4126_v41, 0.0  ;;  %v4136_v27 = vpack.c.bf16 %v4132_v8, %v4128_v24  ;;  %v4138_v34 = vpack.c.bf16 %v4134_v42, %v4130_v25  ;;  %v7424_v40 = vld [vmem:[#allocation6 + $0x2b8] ss:$12 sps:$4 sm:$0xff]   ;;  %v7427_v41 = vld [vmem:[#allocation6 + $0x2c0] ss:$12 sps:$4 sm:$0xff]  }
0x164c   :  { %v7428_v8 = vld [vmem:[#allocation6 + $0x2a0] ss:$12 sps:$4 sm:$0xff]   ;;  %v7430_v42 = vld [vmem:[#allocation6 + $0x2a4] ss:$12 sps:$4 sm:$0xff]  }
0x164d   :  { %v4137_v26 = vpack.c.bf16 %v4133_v31, %v4129_v43  ;;  %v4139_v10 = vpack.c.bf16 %v4135_v23, %v4131_v50  ;;  %v7431_v43 = vld [vmem:[#allocation6 + $0x2a8] ss:$12 sps:$4 sm:$0xff]   ;;  %v7434_v50 = vld [vmem:[#allocation6 + $0x28c] ss:$12 sps:$4 sm:$0xff]   ;;  %v7435_v23 = vld [vmem:[#allocation6 + $0x290] ss:$12 sps:$4 sm:$0xff]  }
0x164e   :  { %v7432_v31 = vld [vmem:[#allocation6 + $0x288] ss:$12 sps:$4 sm:$0xff]   ;;  %v7436_v25 = vld [vmem:[#allocation6 + $0x270] ss:$12 sps:$4 sm:$0xff]  }
0x164f   :  { %4370 = vmatprep.mubr.bf16.mxu0 %v4137_v26  ;;  %4411 = vmatprep.mubr.bf16.mxu1 %v4139_v10  ;;  %v7438_v24 = vld [vmem:[#allocation6 + $0x274] ss:$12 sps:$4 sm:$0xff]   ;;  %v7439_v26 = vld [vmem:[#allocation6 + $0x278] ss:$12 sps:$4 sm:$0xff]   ;;  %v7442_v10 = vld [vmem:[#allocation6 + $0x25c] ss:$12 sps:$4 sm:$0xff]  }
0x1650   :  { %4371 = vmatmul.mubr.bf16.vlgmr.msra.gmra.mxu0 %v4136_v27  ;;  %4412 = vmatmul.mubr.bf16.vlgmr.msra.gmra.mxu1 %v4138_v34  ;;  %v7440_v27 = vld [vmem:[#allocation6 + $0x258] ss:$12 sps:$4 sm:$0xff]   ;;  %v7443_v34 = vld [vmem:[#allocation6 + $0x260] ss:$12 sps:$4 sm:$0xff]  }
0x1651   :  { %4801 = vmatprep.mubr.bf16.mxu0 %v7864_v36  ;;  %6914 = vmatprep.mubr.msk.bf16.mxu1 %vm7863_vm0, %v7862_v0 }
0x1652   :  { %6899 = vmatpush3.bf16.msra.mxu1 %v7419_v61  ;;  %4770 = vmatpush1.bf16.msra.mxu0 %v7416_v58 }
0x1653   :  { %6900 = vmatprep.subr.bf16.mxu1 %v7862_v0  ;;  %4771 = vmatprep.subr.bf16.mxu0 %v7422_v9 }
0x1656   :  { %4772 = vmatpush1.bf16.msra.mxu0 %v7420_v13  ;;  %6901 = vmatpush3.bf16.msra.mxu1 %v7423_v21  ;;  %v7448_v13 = vld [vmem:[#allocation7 + $0xf8] sm:$0xff]   ;;  %v7449_v21 = vld [vmem:[#allocation7 + $0xf0] sm:$0xff]  }
0x1657   :  { %6902 = vmatprep.subr.bf16.mxu1 %v7862_v0  ;;  %4773 = vmatprep.subr.bf16.mxu0 %v7426_v2  ;;  %v7450_v2 = vld [vmem:[#allocation7 + $0xe8] sm:$0xff]  }
0x165a   :  { %4774 = vmatpush1.bf16.msra.mxu0 %v7424_v40  ;;  %6903 = vmatpush3.bf16.msra.mxu1 %v7427_v41  ;;  %v7451_v40 = vld [vmem:[#allocation7 + $0xe0] sm:$0xff]   ;;  %v7452_v41 = vld [vmem:[#allocation7 + $0xd8] sm:$0xff]  }
0x165b   :  { %6904 = vmatprep.subr.bf16.mxu1 %v7862_v0  ;;  %4775 = vmatprep.subr.bf16.mxu0 %v7430_v42 }
0x165e   :  { %4776 = vmatpush1.bf16.msra.mxu0 %v7428_v8  ;;  %6905 = vmatpush3.bf16.msra.mxu1 %v7431_v43 }
0x165f   :  { %4777 = vmatprep.subr.bf16.mxu0 %v7434_v50  ;;  %6906 = vmatprep.subr.bf16.mxu1 %v7862_v0 }
0x1662   :  { %4778 = vmatpush1.bf16.msra.mxu0 %v7432_v31  ;;  %6907 = vmatpush3.bf16.msra.mxu1 %v7435_v23 }
0x1663   :  { %4779 = vmatprep.subr.bf16.mxu0 %v7438_v24  ;;  %6908 = vmatprep.subr.bf16.mxu1 %v7862_v0 }
0x1666   :  { %4780 = vmatpush1.bf16.msra.mxu0 %v7436_v25  ;;  %6909 = vmatpush3.bf16.msra.mxu1 %v7439_v26 }
0x1667   :  { %4781 = vmatprep.subr.bf16.mxu0 %v7442_v10  ;;  %6910 = vmatprep.subr.bf16.mxu1 %v7862_v0 }
0x166a   :  { %4782 = vmatpush1.bf16.msra.mxu0 %v7440_v27  ;;  %6911 = vmatpush3.bf16.msra.mxu1 %v7443_v34 }
0x166b   :  { %6912 = vmatprep.subr.bf16.mxu1 %v7862_v0 }
0x1710   :  { %v6548_v30 = vpop.f32.mrf.mxu0  ;;  %v6570_v29 = vpop.f32.mrf.mxu1 }
0x1712   :  { %v6549_v32 = vpop.f32.mrf.mxu0  ;;  %v6571_v6 = vpop.f32.mrf.mxu1 }
0x1713   :  { %v6550_v33 = vadd.f32 %v6549_v32, %v6548_v30  ;;  %v6572_v44 = vadd.f32 %v6571_v6, %v6570_v29  ;;  %v7446_v30 = vld [vmem:[#allocation6 + $0x244] ss:$12 sps:$4 sm:$0xff]   ;;  %v7444_v29 = vld [vmem:[#allocation6 + $0x240] ss:$12 sps:$4 sm:$0xff]  }
0x1714   :  { %v6551_v37 = vpop.f32.mrf.mxu0  ;;  %v6573_v39 = vpop.f32.mrf.mxu1  ;;  %4783 = vmatprep.subr.bf16.mxu0 %v7446_v30 }
0x1715   :  { %v4373_v28 = vadd.f32 %v6550_v33, %v6181_v35  ;;  %4784 = vmatpush1.bf16.msra.mxu0 %v7444_v29 }
0x1716   :  { %v6552_v48 = vpop.f32.mrf.mxu0  ;;  %v6574_v51 = vpop.f32.mrf.mxu1  ;;  %6918 = vmatprep.subr.bf16.mxu0 %v8374_v54 }
0x1717   :  { %v4414_v19 = vadd.f32 %v6572_v44, %v4373_v28  ;;  %v6553_v52 = vadd.f32 %v6552_v48, %v6551_v37  ;;  %v6575_v38 = vadd.f32 %v6574_v51, %v6573_v39  ;;  %v6214_v51 = vld [vmem:[%s8682_s19 + $0x2] ss:$0 sm:$0xff] }
0x1719   :  { %v4376_v53 = vadd.f32 %v6553_v52, %v6181_v35  ;;  %v4420_v57 = vadd.f32 %v4414_v19, %v8492_v4  ;;  %v7447_v35 = vld [vmem:[#allocation6 + $0x248] ss:$12 sps:$4 sm:$0xff]  }
0x171a   :  { %6913 = vmatpush3.bf16.msra.mxu1 %v7447_v35 }
0x171b   :  { %v4417_v22 = vadd.f32 %v6575_v38, %v4376_v53  ;;  %4422 = vadd.xlane.f32.xlu0 %v4420_v57  ;;  %6987 = vmatprep.subr.msk.bf16.mxu1 %vm1126_vm5, %v8380_v56  ;;  %v6215_v56 = vld [vmem:[#allocation16 + $0x2] ss:$0 sm:$0xff] }
0x171d   :  { %v4421_v55 = vadd.f32 %v4417_v22, %v8494_v12 }
0x171f   :  { %4424 = vadd.xlane.f32.xlu1 %v4421_v55 }
0x17a4   :  { %v4423_v20 = vpop.xlane.xlu0 %4422 }
0x17a5   :  { %v4426_v62 = vmul.f32 0.0078125, %v4423_v20 }
0x17a7   :  { %v8512_v63 = vsub.f32 %v4420_v57, %v4426_v62 }
0x17a8   :  { %v4425_v1 = vpop.xlane.xlu1 %4424 }
0x17a9   :  { %v4427_v11 = vmul.f32 0.0078125, %v4425_v1  ;;  %v4430_v4 = vmul.f32 %v8512_v63, %v8512_v63 }
0x17ab   :  { %v8516_v3 = vsub.f32 %v4421_v55, %v4427_v11  ;;  %4432 = vadd.xlane.f32.xlu0 %v4430_v4 }
0x17ad   :  { %v4431_v12 = vmul.f32 %v8516_v3, %v8516_v3 }
0x17af   :  { %4434 = vadd.xlane.f32.xlu1 %v4431_v12 }
0x1834   :  { %v4433_v32 = vpop.xlane.xlu0 %4432 }
0x1835   :  { %v4436_v6 = vmul.f32 0.0078125, %v4433_v32 }
0x1837   :  { %v4438_v33 = vadd.f32 1e-05, %v4436_v6 }
0x1838   :  { %v4435_v37 = vpop.xlane.xlu1 %4434 }
0x1839   :  { %7600 = vrsqrt.f32 %v4438_v33  ;;  %v4437_v39 = vmul.f32 0.0078125, %v4435_v37 }
0x183b   :  { %v4439_v28 = vadd.f32 1e-05, %v4437_v39 }
0x183d   :  { %7602 = vrsqrt.f32 %v4439_v28 }
0x1846   :  { %v7601_v44 = vpop.eup %7600 }
0x1847   :  { %v4442_v48 = vmul.f32 %v7601_v44, %v8512_v63 }
0x1849   :  { %v4450_v53 = vmul.f32 %v6214_v51, %v4442_v48 }
0x184a   :  { %v7603_v19 = vpop.eup %7602 }
0x184b   :  { %v4443_v52 = vmul.f32 %v7603_v19, %v8516_v3  ;;  %v8534_v57 = vadd.f32 %v6215_v56, %v4450_v53 }
0x184d   :  { %v4451_v38 = vmul.f32 %v6214_v51, %v4443_v52 }
0x184f   :  { %v8536_v22 = vadd.f32 %v6215_v56, %v4451_v38  ;;  %v7453_v38 = vld [vmem:[#allocation7 + $0xd0] sm:$0xff]  }
0x1851   :  { %v4624_v55 = vpack.c.bf16 %v8536_v22, %v8534_v57 }
0x1853   :  { %4802 = vmatmul.mubr.bf16.vlgmr.msra.gmra.mxu0 %v4624_v55  ;;  %6915 = vmatmul.mubr.bf16.vlgmr.msra.gmra.mxu1 %v4624_v55  ;;  %v7454_v55 = vld [vmem:[#allocation7 + $0xc8] sm:$0xff]  }
0x1854   :  { %6919 = vmatpush3.bf16.msra.mxu0 %v8374_v54  ;;  %6939 = vmatpush3.bf16.msra.mxu1 %v8188_v7  ;;  %v8560_v7 = vld [vmem:[%s8673_s10 + $0x9] sm:$0x7] }
0x1855   :  { %6920 = vmatprep.subr.bf16.mxu0 %v8400_v14 }
0x1858   :  { %6921 = vmatpush3.bf16.msra.mxu0 %v8400_v14 }
0x1859   :  { %6922 = vmatprep.subr.bf16.mxu0 %v8407_v15 }
0x185c   :  { %6923 = vmatpush3.bf16.msra.mxu0 %v8407_v15  ;;  %v4633_v15 = vrot.slane %v8560_v7, %v8159_v45 }
0x185d   :  { %6924 = vmatprep.subr.bf16.mxu0 %v8414_v16 }
0x1860   :  { %6925 = vmatpush3.bf16.msra.mxu0 %v8414_v16 }
0x1861   :  { %6926 = vmatprep.subr.bf16.mxu0 %v8421_v47 }
0x1864   :  { %6927 = vmatpush3.bf16.msra.mxu0 %v8421_v47 }
0x1865   :  { %6928 = vmatprep.subr.bf16.mxu0 %v8428_v18 }
0x1868   :  { %6929 = vmatpush3.bf16.msra.mxu0 %v8428_v18  ;;  %v4629_v18 = vrot.slane %v8560_v7, %v8162_v46 }
0x1869   :  { %6930 = vmatprep.subr.bf16.mxu0 %v8435_v49 }
0x186c   :  { %6931 = vmatpush3.bf16.msra.mxu0 %v8435_v49 }
0x186d   :  { %6932 = vmatprep.subr.bf16.mxu0 %v8442_v5 }
0x1870   :  { %6933 = vmatpush3.bf16.msra.mxu0 %v8442_v5 }
0x1871   :  { %6944 = vmatprep.subr.bf16.mxu0 %v7862_v0 }
0x1913   :  { %v4803_v54 = vpop.f32.mrf.mxu0  ;;  %v8562_v14 = vpop.f32.mrf.mxu1 }
0x1914   :  { %v4804_v62 = vadd.f32 %v4803_v54, %v4629_v18  ;;  %v7455_v54 = vld [vmem:[#allocation7 + $0xc0] sm:$0xff]  }
0x1915   :  { %v4805_v16 = vpop.f32.mrf.mxu0  ;;  %v6916_v47 = vpop.f32.mrf.mxu1 }
0x1916   :  { %v4806_v58 = vadd.f32 %v4805_v16, %v4633_v15 }
0x1917   :  { %v4807_v49 = vpop.f32.mrf.mxu0  ;;  %v8568_v5 = vpop.f32.mrf.mxu1 }
0x1918   :  { %v4808_v59 = vadd.f32 %v4807_v49, %v4629_v18  ;;  %v4853_v1 = vmul.f32 %v4806_v58, %v4804_v62 }
0x1919   :  { %v4809_v61 = vpop.f32.mrf.mxu0  ;;  %v6917_v20 = vpop.f32.mrf.mxu1 }
0x191a   :  { %v4810_v63 = vadd.f32 %v4809_v61, %v4633_v15  ;;  %v4855_v11 = vmul.f32 %v4808_v59, %v4806_v58  ;;  %v4637_v15 = vrot.slane %v8560_v7, %v8202_v60 }
0x191c   :  { %v4854_v4 = vmul.f32 %v4810_v63, %v4804_v62  ;;  %v4856_v3 = vmul.f32 %v4810_v63, %v4808_v59  ;;  %v4847_v18 = vadd.f32 %v8562_v14, %v4637_v15  ;;  %v4850_v49 = vadd.f32 %v8568_v5, %v4637_v15  ;;  %v7500_v15 = vld [vmem:[#allocation10 + $0x304] ss:$16 sps:$4 sm:$0xff]  }
0x191e   :  { %v4858_v12 = vpack.c.bf16 %v4856_v3, %v4855_v11  ;;  %v4857_v9 = vpack.c.bf16 %v4854_v4, %v4853_v1  ;;  %v6246_v3 = vld [vmem:[#allocation9 + $0x3] ss:$0 sm:$0xff] }
0x1920   :  { %6934 = vmatprep.mubr.bf16.mxu0 %v4857_v9 }
0x1921   :  { %6935 = vmatmul.mubr.bf16.vlgmr.msra.gmra.mxu0 %v4858_v12 }
0x1922   :  { %6960 = vmatprep.mubr.msk.bf16.mxu0 %vm7863_vm0, %v7862_v0  ;;  %6945 = vmatpush3.bf16.msra.mxu0 %v7448_v13 }
0x1923   :  { %6946 = vmatprep.subr.bf16.mxu0 %v7862_v0 }
0x1926   :  { %6947 = vmatpush3.bf16.msra.mxu0 %v7449_v21 }
0x1927   :  { %6948 = vmatprep.subr.bf16.mxu0 %v7862_v0 }
0x192a   :  { %6949 = vmatpush3.bf16.msra.mxu0 %v7450_v2 }
0x192b   :  { %6950 = vmatprep.subr.bf16.mxu0 %v7862_v0 }
0x192e   :  { %6951 = vmatpush3.bf16.msra.mxu0 %v7451_v40  ;;  %v7456_v40 = vld [vmem:[#allocation10 + $0x3e0] ss:$16 sps:$4 sm:$0xff]  }
0x192f   :  { %6952 = vmatprep.subr.bf16.mxu0 %v7862_v0 }
0x1932   :  { %6953 = vmatpush3.bf16.msra.mxu0 %v7452_v41  ;;  %v7458_v41 = vld [vmem:[#allocation10 + $0x3e4] ss:$16 sps:$4 sm:$0xff]  }
0x1933   :  { %6954 = vmatprep.subr.bf16.mxu0 %v7862_v0  ;;  %5311 = vmatprep.subr.bf16.mxu1 %v7458_v41 }
0x1936   :  { %6955 = vmatpush3.bf16.msra.mxu0 %v7453_v38  ;;  %v7497_v38 = vld [vmem:[#allocation10 + $0x32c] ss:$16 sps:$4 sm:$0xff]  }
0x1937   :  { %6956 = vmatprep.subr.bf16.mxu0 %v7862_v0 }
0x193a   :  { %6957 = vmatpush3.bf16.msra.mxu0 %v7454_v55  ;;  %v7492_v55 = vld [vmem:[#allocation10 + $0x320] ss:$16 sps:$4 sm:$0xff]  }
0x193b   :  { %6958 = vmatprep.subr.bf16.mxu0 %v7862_v0 }
0x193e   :  { %6959 = vmatpush3.bf16.msra.mxu0 %v7455_v54  ;;  %v7495_v54 = vld [vmem:[#allocation10 + $0x328] ss:$16 sps:$4 sm:$0xff]  }
0x19e1   :  { %v6936_v8 = vpop.f32.mrf.mxu0 }
0x19e3   :  { %v4893_v42 = vpop.f32.mrf.mxu0 }
0x19e5   :  { %v6937_v43 = vpop.f32.mrf.mxu0 }
0x19e6   :  { %v4919_v50 = vmax.f32 %v6936_v8, %v6937_v43 }
0x19e7   :  { %v4896_v31 = vpop.f32.mrf.mxu0 }
0x19e8   :  { %v4920_v23 = vsub.f32 %v6936_v8, %v4919_v50  ;;  %v4923_v24 = vsub.f32 %v6937_v43, %v4919_v50  ;;  %v4908_v25 = vmax.f32 %v4893_v42, %v4896_v31  ;;  %v7459_v8 = vld [vmem:[#allocation10 + $0x3e8] ss:$16 sps:$4 sm:$0xff]  }
0x19ea   :  { %v4921_v26 = vmul.f32 1.442695, %v4920_v23  ;;  %v4924_v10 = vmul.f32 1.442695, %v4923_v24  ;;  %v4909_v27 = vsub.f32 %v4893_v42, %v4908_v25  ;;  %v4912_v34 = vsub.f32 %v4896_v31, %v4908_v25  ;;  %v7461_v42 = vld [vmem:[#allocation10 + $0x3ec] ss:$16 sps:$4 sm:$0xff]  }
0x19eb   :  { %5354 = vmatprep.subr.bf16.mxu0 %v7461_v42  ;;  %v7464_v25 = vld [vmem:[#allocation10 + $0x3c4] ss:$16 sps:$4 sm:$0xff]  }
0x19ec   :  { %7604 = vpow2.f32 %v4921_v26  ;;  %v4910_v30 = vmul.f32 1.442695, %v4909_v27  ;;  %v4913_v29 = vmul.f32 1.442695, %v4912_v34  ;;  %v7467_v26 = vld [vmem:[#allocation10 + $0x3cc] ss:$16 sps:$4 sm:$0xff]  }
0x19ed   :  { %7606 = vpow2.f32 %v4924_v10  ;;  %v7462_v10 = vld [vmem:[#allocation10 + $0x3c0] ss:$16 sps:$4 sm:$0xff]   ;;  %v7465_v27 = vld [vmem:[#allocation10 + $0x3c8] ss:$16 sps:$4 sm:$0xff]   ;;  %v7470_v34 = vld [vmem:[#allocation10 + $0x3a4] ss:$16 sps:$4 sm:$0xff]  }
0x19ee   :  { %7608 = vpow2.f32 %v4910_v30  ;;  %v7473_v30 = vld [vmem:[#allocation10 + $0x3ac] ss:$16 sps:$4 sm:$0xff]   ;;  %v7509_v42 = vld [vmem:[#allocation12 + $0x3f0] sm:$0xff]  }
0x19ef   :  { %7610 = vpow2.f32 %v4913_v29  ;;  %v7468_v29 = vld [vmem:[#allocation10 + $0x3a0] ss:$16 sps:$4 sm:$0xff]  }
0x19f9   :  { %v7605_v35 = vpop.eup %7604 }
0x19fa   :  { %v7607_v32 = vpop.eup %7606 }
0x19fb   :  { %v7609_v6 = vpop.eup %7608  ;;  %v4926_v33 = vadd.f32 %v7607_v32, %v7605_v35 }
0x19fc   :  { %v7611_v37 = vpop.eup %7610 }
0x19fd   :  { %7612 = vrcp.f32 %v4926_v33  ;;  %v4915_v39 = vadd.f32 %v7611_v37, %v7609_v6  ;;  %v7477_v33 = vld [vmem:[#allocation10 + $0x388] ss:$16 sps:$4 sm:$0xff]  }
0x19ff   :  { %7614 = vrcp.f32 %v4915_v39  ;;  %v7482_v39 = vld [vmem:[#allocation10 + $0x364] ss:$16 sps:$4 sm:$0xff]  }
0x1a0a   :  { %v7613_v28 = vpop.eup %7612 }
0x1a0b   :  { %v4928_v48 = vmul.f32 %v7613_v28, %v7605_v35  ;;  %v4929_v51 = vmul.f32 %v7613_v28, %v7607_v32  ;;  %v7471_v35 = vld [vmem:[#allocation10 + $0x3a8] ss:$16 sps:$4 sm:$0xff]   ;;  %v7474_v32 = vld [vmem:[#allocation10 + $0x380] ss:$16 sps:$4 sm:$0xff]   ;;  %v7485_v28 = vld [vmem:[#allocation10 + $0x36c] ss:$16 sps:$4 sm:$0xff]  }
0x1a0c   :  { %v7615_v44 = vpop.eup %7614 }
0x1a0d   :  { %v4917_v19 = vmul.f32 %v7615_v44, %v7609_v6  ;;  %v4918_v52 = vmul.f32 %v7615_v44, %v7611_v37  ;;  %v4931_v56 = vpack.c.bf16 %v4929_v51, %v4928_v48  ;;  %v7476_v6 = vld [vmem:[#allocation10 + $0x384] ss:$16 sps:$4 sm:$0xff]   ;;  %v7479_v37 = vld [vmem:[#allocation10 + $0x38c] ss:$16 sps:$4 sm:$0xff]   ;;  %v7480_v44 = vld [vmem:[#allocation10 + $0x360] ss:$16 sps:$4 sm:$0xff]  }
0x1a0e   :  { %v7483_v48 = vld [vmem:[#allocation10 + $0x368] ss:$16 sps:$4 sm:$0xff]   ;;  %v7488_v51 = vld [vmem:[#allocation10 + $0x344] ss:$16 sps:$4 sm:$0xff]  }
0x1a0f   :  { %v4930_v53 = vpack.c.bf16 %v4918_v52, %v4917_v19  ;;  %v7491_v19 = vld [vmem:[#allocation10 + $0x34c] ss:$16 sps:$4 sm:$0xff]   ;;  %v7486_v52 = vld [vmem:[#allocation10 + $0x340] ss:$16 sps:$4 sm:$0xff]  }
0x1a11   :  { %6940 = vmatprep.mubr.msk.bf16.mxu1 %vm1119_vm6, %v4930_v53  ;;  %v7489_v53 = vld [vmem:[#allocation10 + $0x348] ss:$16 sps:$4 sm:$0xff]  }
0x1a12   :  { %6941 = vmatmul.mubr.msk.bf16.vlgmr.msra.gmra.mxu1 %vm1119_vm6, %v4931_v56  ;;  %v7494_v56 = vld [vmem:[#allocation10 + $0x324] ss:$16 sps:$4 sm:$0xff]  }
0x1a13   :  { %5343 = vmatprep.mubr.bf16.mxu1 %v7864_v36  ;;  %5312 = vmatpush1.bf16.msra.mxu1 %v7456_v40  ;;  %v7507_v40 = vld [vmem:[#allocation12 + $0x3b8] sm:$0xff]  }
0x1a14   :  { %5313 = vmatprep.subr.bf16.mxu1 %v7464_v25  ;;  %v7518_v25 = vld [vmem:[#allocation12 + $0x320] sm:$0xff]  }
0x1a17   :  { %5314 = vmatpush1.bf16.msra.mxu1 %v7462_v10  ;;  %v7520_v10 = vld [vmem:[#allocation12 + $0x358] sm:$0xff]  }
0x1a18   :  { %5315 = vmatprep.subr.bf16.mxu1 %v7470_v34  ;;  %v7522_v34 = vld [vmem:[#allocation12 + $0x318] sm:$0xff]  }
0x1a1b   :  { %5316 = vmatpush1.bf16.msra.mxu1 %v7468_v29  ;;  %v7524_v29 = vld [vmem:[#allocation12 + $0x350] sm:$0xff]  }
0x1a1c   :  { %5317 = vmatprep.subr.bf16.mxu1 %v7476_v6  ;;  %v7527_v6 = vld [vmem:[#allocation12 + $0x390] sm:$0xff]  }
0x1a1f   :  { %5318 = vmatpush1.bf16.msra.mxu1 %v7474_v32  ;;  %v7526_v32 = vld [vmem:[#allocation12 + $0x310] sm:$0xff]  }
0x1a20   :  { %5319 = vmatprep.subr.bf16.mxu1 %v7482_v39  ;;  %v7530_v39 = vld [vmem:[#allocation12 + $0x308] sm:$0xff]  }
0x1a23   :  { %5320 = vmatpush1.bf16.msra.mxu1 %v7480_v44  ;;  %v7532_v44 = vld [vmem:[#allocation12 + $0x340] sm:$0xff]  }
0x1a24   :  { %5321 = vmatprep.subr.bf16.mxu1 %v7488_v51  ;;  %v7534_v51 = vld [vmem:[#allocation12 + $0x300] sm:$0xff]  }
0x1a27   :  { %5322 = vmatpush1.bf16.msra.mxu1 %v7486_v52  ;;  %v6217_v52 = vld [vmem:[%s8677_s14 + $0xc] sm:$0xf] }
0x1a28   :  { %5323 = vmatprep.subr.bf16.mxu1 %v7494_v56 }
0x1a2b   :  { %5324 = vmatpush1.bf16.msra.mxu1 %v7492_v55  ;;  %v5146_v55 = vrot.slane %v6217_v52, %v8232_v17 }
0x1a2c   :  { %5325 = vmatprep.subr.bf16.mxu1 %v7500_v15  ;;  %v5142_v15 = vrot.slane %v6217_v52, %v8202_v60 }
0x1ad2   :  { %v6942_v16 = vpop.f32.mrf.mxu1 }
0x1ad3   :  { %v4989_v59 = vmul.f32 %v6942_v16, %v4847_v18  ;;  %v7503_v16 = vld [vmem:[#allocation10 + $0x30c] ss:$16 sps:$4 sm:$0xff]  }
0x1ad4   :  { %v4972_v47 = vpop.f32.mrf.mxu1 }
0x1ad5   :  { %v4987_v62 = vmul.f32 %v4972_v47, %v4847_v18  ;;  %v7498_v47 = vld [vmem:[#allocation10 + $0x300] ss:$16 sps:$4 sm:$0xff]   ;;  %v7501_v18 = vld [vmem:[#allocation10 + $0x308] ss:$16 sps:$4 sm:$0xff]  }
0x1ad6   :  { %v6943_v58 = vpop.f32.mrf.mxu1  ;;  %5326 = vmatpush1.bf16.msra.mxu1 %v7498_v47 }
0x1ad7   :  { %v4990_v61 = vmul.f32 %v6943_v58, %v4850_v49  ;;  %v7505_v58 = vld [vmem:[#allocation12 + $0x3f8] sm:$0xff]  }
0x1ad8   :  { %v4975_v20 = vpop.f32.mrf.mxu1 }
0x1ad9   :  { %v4992_v63 = vadd.f32 %v4990_v61, %v4989_v59  ;;  %v4988_v1 = vmul.f32 %v4975_v20, %v4850_v49  ;;  %v7504_v49 = vld [vmem:[#allocation12 + $0x378] sm:$0xff]  }
0x1ada   :  { %6607 = vmatprep.subr.bf16.mxu1 %v7504_v49 }
0x1adb   :  { %v4991_v11 = vadd.f32 %v4988_v1, %v4987_v62 }
0x1add   :  { %v4993_v4 = vpack.c.bf16 %v4992_v63, %v4991_v11 }
0x1adf   :  { %6961 = vmatmul.mubr.bf16.vlgmr.msra.gmra.mxu0 %v4993_v4 }
0x1ae0   :  { %5386 = vmatprep.mubr.bf16.mxu0 %v7864_v36  ;;  %5355 = vmatpush1.bf16.msra.mxu0 %v7459_v8  ;;  %v7508_v8 = vld [vmem:[#allocation12 + $0x370] sm:$0xff]  }
0x1ae1   :  { %5356 = vmatprep.subr.bf16.mxu0 %v7467_v26  ;;  %v7519_v26 = vld [vmem:[#allocation12 + $0x3a0] sm:$0xff]  }
0x1ae4   :  { %5357 = vmatpush1.bf16.msra.mxu0 %v7465_v27  ;;  %v7521_v27 = vld [vmem:[#allocation12 + $0x3d8] sm:$0xff]  }
0x1ae5   :  { %5358 = vmatprep.subr.bf16.mxu0 %v7473_v30  ;;  %v7523_v30 = vld [vmem:[#allocation12 + $0x398] sm:$0xff]  }
0x1ae8   :  { %5359 = vmatpush1.bf16.msra.mxu0 %v7471_v35  ;;  %v7525_v35 = vld [vmem:[#allocation12 + $0x3d0] sm:$0xff]  }
0x1ae9   :  { %5360 = vmatprep.subr.bf16.mxu0 %v7479_v37  ;;  %v7529_v37 = vld [vmem:[#allocation12 + $0x3c8] sm:$0xff]  }
0x1aec   :  { %5361 = vmatpush1.bf16.msra.mxu0 %v7477_v33  ;;  %v7528_v33 = vld [vmem:[#allocation12 + $0x348] sm:$0xff]  }
0x1aed   :  { %5362 = vmatprep.subr.bf16.mxu0 %v7485_v28  ;;  %v7531_v28 = vld [vmem:[#allocation12 + $0x388] sm:$0xff]  }
0x1af0   :  { %5363 = vmatpush1.bf16.msra.mxu0 %v7483_v48  ;;  %v7533_v48 = vld [vmem:[#allocation12 + $0x3c0] sm:$0xff]  }
0x1af1   :  { %5364 = vmatprep.subr.bf16.mxu0 %v7491_v19  ;;  %v7535_v19 = vld [vmem:[#allocation12 + $0x380] sm:$0xff]  }
0x1af4   :  { %5365 = vmatpush1.bf16.msra.mxu0 %v7489_v53 }
0x1af5   :  { %5366 = vmatprep.subr.bf16.mxu0 %v7497_v38  ;;  %v5138_v38 = vrot.slane %v6217_v52, %v8159_v45 }
0x1af8   :  { %5367 = vmatpush1.bf16.msra.mxu0 %v7495_v54  ;;  %v5134_v54 = vrot.slane %v6217_v52, %v8162_v46  ;;  %v7539_v52 = vld [vmem:[%s8670_s7 + $0x20] sm:$0xff]  }
0x1af9   :  { %5368 = vmatprep.subr.bf16.mxu0 %v7503_v16 }
0x1afc   :  { %5369 = vmatpush1.bf16.msra.mxu0 %v7501_v18 }
0x1afd   :  { %6629 = vmatprep.subr.bf16.mxu0 %v7505_v58 }
0x1b9f   :  { %v5082_v7 = vpop.f32.mrf.mxu0 }
0x1ba0   :  { %v5083_v12 = vadd.f32 %v6246_v3, %v5082_v7 }
0x1ba1   :  { %v6962_v9 = vpop.f32.mrf.mxu0 }
0x1ba2   :  { %v5089_v14 = vadd.f32 %v5083_v12, %v8534_v57 }
0x1ba3   :  { %v5085_v13 = vpop.f32.mrf.mxu0 }
0x1ba4   :  { %v5086_v5 = vadd.f32 %v6246_v3, %v5085_v13  ;;  %5091 = vadd.xlane.f32.xlu0 %v5089_v14  ;;  %v6255_v3 = vld [vmem:[%s8680_s17 + $0x3] ss:$0 sm:$0xff] }
0x1ba5   :  { %v6963_v21 = vpop.f32.mrf.mxu0 }
0x1ba6   :  { %v5090_v2 = vadd.f32 %v5086_v5, %v8536_v22 }
0x1ba8   :  { %5093 = vadd.xlane.f32.xlu1 %v5090_v2 }
0x1c2d   :  { %v5092_v36 = vpop.xlane.xlu0 %5091 }
0x1c2e   :  { %v5095_v43 = vmul.f32 0.0078125, %v5092_v36  ;;  %v7510_v36 = vld [vmem:[#allocation12 + $0x330] sm:$0xff]  }
0x1c30   :  { %v8589_v50 = vsub.f32 %v5089_v14, %v5095_v43  ;;  %v6256_v14 = vld [vmem:[#allocation15 + $0x3] ss:$0 sm:$0xff]  ;;  %v7511_v43 = vld [vmem:[#allocation12 + $0x3b0] sm:$0xff]  }
0x1c31   :  { %v5094_v57 = vpop.xlane.xlu1 %5093 }
0x1c32   :  { %v5096_v31 = vmul.f32 0.0078125, %v5094_v57  ;;  %v5099_v23 = vmul.f32 %v8589_v50, %v8589_v50  ;;  %v7513_v57 = vld [vmem:[#allocation12 + $0x3e8] sm:$0xff]  }
0x1c34   :  { %v8593_v24 = vsub.f32 %v5090_v2, %v5096_v31  ;;  %5101 = vadd.xlane.f32.xlu0 %v5099_v23  ;;  %v7506_v2 = vld [vmem:[#allocation12 + $0x338] sm:$0xff]   ;;  %v7514_v31 = vld [vmem:[#allocation12 + $0x328] sm:$0xff]  }
0x1c35   :  { %v7515_v23 = vld [vmem:[#allocation12 + $0x3a8] sm:$0xff]  }
0x1c36   :  { %v5100_v22 = vmul.f32 %v8593_v24, %v8593_v24 }
0x1c38   :  { %5103 = vadd.xlane.f32.xlu1 %v5100_v22  ;;  %v7517_v22 = vld [vmem:[#allocation12 + $0x3e0] sm:$0xff]  }
0x1cbd   :  { %v5102_v59 = vpop.xlane.xlu0 %5101 }
0x1cbe   :  { %v5105_v61 = vmul.f32 0.0078125, %v5102_v59 }
0x1cc0   :  { %v5107_v20 = vadd.f32 1e-05, %v5105_v61 }
0x1cc1   :  { %v5104_v62 = vpop.xlane.xlu1 %5103 }
0x1cc2   :  { %7616 = vrsqrt.f32 %v5107_v20  ;;  %v5106_v63 = vmul.f32 0.0078125, %v5104_v62 }
0x1cc4   :  { %v5108_v1 = vadd.f32 1e-05, %v5106_v63 }
0x1cc6   :  { %7618 = vrsqrt.f32 %v5108_v1 }
0x1ccf   :  { %v7617_v11 = vpop.eup %7616 }
0x1cd0   :  { %v5111_v4 = vmul.f32 %v7617_v11, %v8589_v50  ;;  %v7512_v50 = vld [vmem:[#allocation12 + $0x368] sm:$0xff]  }
0x1cd2   :  { %v5119_v9 = vmul.f32 %v6255_v3, %v5111_v4 }
0x1cd3   :  { %v7619_v7 = vpop.eup %7618 }
0x1cd4   :  { %v5112_v12 = vmul.f32 %v7619_v7, %v8593_v24  ;;  %v8602_v5 = vadd.f32 %v6256_v14, %v5119_v9  ;;  %v7516_v24 = vld [vmem:[#allocation12 + $0x360] sm:$0xff]  }
0x1cd6   :  { %v5120_v13 = vmul.f32 %v6255_v3, %v5112_v12 }
0x1cd8   :  { %v8604_v21 = vadd.f32 %v6256_v14, %v5120_v13 }
0x1cda   :  { %v5129_v41 = vpack.c.bf16 %v8604_v21, %v8602_v5 }
0x1cdc   :  { %5344 = vmatmul.mubr.bf16.vlgmr.msra.gmra.mxu1 %v5129_v41  ;;  %5387 = vmatmul.mubr.bf16.vlgmr.msra.gmra.mxu0 %v5129_v41 }
0x1cdd   :  { %6608 = vmatpush3.bf16.msra.mxu1 %v7506_v2  ;;  %6630 = vmatpush3.bf16.msra.mxu0 %v7507_v40 }
0x1cde   :  { %6609 = vmatprep.subr.bf16.mxu1 %v7508_v8  ;;  %6631 = vmatprep.subr.bf16.mxu0 %v7509_v42 }
0x1ce1   :  { %6610 = vmatpush3.bf16.msra.mxu1 %v7510_v36  ;;  %6632 = vmatpush3.bf16.msra.mxu0 %v7511_v43  ;;  %v6289_v36 = vld [vmem:[#allocation13 + $0x3] ss:$0 sm:$0xff] }
0x1ce2   :  { %6611 = vmatprep.subr.bf16.mxu1 %v7512_v50  ;;  %6633 = vmatprep.subr.bf16.mxu0 %v7513_v57 }
0x1ce5   :  { %6612 = vmatpush3.bf16.msra.mxu1 %v7514_v31  ;;  %6634 = vmatpush3.bf16.msra.mxu0 %v7515_v23 }
0x1ce6   :  { %6613 = vmatprep.subr.bf16.mxu1 %v7516_v24  ;;  %6635 = vmatprep.subr.bf16.mxu0 %v7517_v22 }
0x1ce9   :  { %6614 = vmatpush3.bf16.msra.mxu1 %v7518_v25  ;;  %6636 = vmatpush3.bf16.msra.mxu0 %v7519_v26 }
0x1cea   :  { %6615 = vmatprep.subr.bf16.mxu1 %v7520_v10  ;;  %6637 = vmatprep.subr.bf16.mxu0 %v7521_v27 }
0x1ced   :  { %6616 = vmatpush3.bf16.msra.mxu1 %v7522_v34  ;;  %6638 = vmatpush3.bf16.msra.mxu0 %v7523_v30 }
0x1cee   :  { %6617 = vmatprep.subr.bf16.mxu1 %v7524_v29  ;;  %6639 = vmatprep.subr.bf16.mxu0 %v7525_v35 }
0x1cf1   :  { %6618 = vmatpush3.bf16.msra.mxu1 %v7526_v32  ;;  %6640 = vmatpush3.bf16.msra.mxu0 %v7527_v6  ;;  %v7536_v6 = vld [vmem:[%s8670_s7 + $0x38] sm:$0xff]  }
0x1cf2   :  { %6619 = vmatprep.subr.bf16.mxu1 %v7528_v33  ;;  %6641 = vmatprep.subr.bf16.mxu0 %v7529_v37 }
0x1cf5   :  { %6620 = vmatpush3.bf16.msra.mxu1 %v7530_v39  ;;  %6642 = vmatpush3.bf16.msra.mxu0 %v7531_v28 }
0x1cf6   :  { %6621 = vmatprep.subr.bf16.mxu1 %v7532_v44  ;;  %6643 = vmatprep.subr.bf16.mxu0 %v7533_v48 }
0x1cf9   :  { %6622 = vmatpush3.bf16.msra.mxu1 %v7534_v51  ;;  %6644 = vmatpush3.bf16.msra.mxu0 %v7535_v19  ;;  %v7538_v19 = vld [vmem:[%s8670_s7 + $0x28] sm:$0xff]  }
0x1cfa   :  { %6964 = vmatprep.subr.bf16.mxu1 %v7862_v0 }
0x1d9c   :  { %v5345_v53 = vpop.f32.mrf.mxu1  ;;  %v5388_v56 = vpop.f32.mrf.mxu0 }
0x1d9d   :  { %v5346_v62 = vadd.f32 %v5345_v53, %v5134_v54  ;;  %v5389_v63 = vadd.f32 %v5388_v56, %v5142_v15  ;;  %v7540_v53 = vld [vmem:[%s8670_s7 + $0x18] sm:$0xff]   ;;  %v7541_v56 = vld [vmem:[%s8670_s7 + $0x10] sm:$0xff]  }
0x1d9e   :  { %v5347_v16 = vpop.f32.mrf.mxu1  ;;  %v5390_v47 = vpop.f32.mrf.mxu0 }
0x1d9f   :  { %v5348_v58 = vadd.f32 %v5347_v16, %v5138_v38  ;;  %v5391_v59 = vadd.f32 %v5390_v47, %v5146_v55  ;;  %v5397_v9 = vmax.f32 %v5346_v62, 0.0  ;;  %v5399_v14 = vmax.f32 %v5389_v63, 0.0 }
0x1da0   :  { %v5349_v18 = vpop.f32.mrf.mxu1  ;;  %v5392_v49 = vpop.f32.mrf.mxu0 }
0x1da1   :  { %v5350_v61 = vadd.f32 %v5349_v18, %v5134_v54  ;;  %v5393_v20 = vadd.f32 %v5392_v49, %v5142_v15  ;;  %v5398_v7 = vmax.f32 %v5348_v58, 0.0  ;;  %v5400_v46 = vmax.f32 %v5391_v59, 0.0 }
0x1da2   :  { %v5351_v1 = vpop.f32.mrf.mxu1  ;;  %v5394_v11 = vpop.f32.mrf.mxu0 }
0x1da3   :  { %v5352_v4 = vadd.f32 %v5351_v1, %v5138_v38  ;;  %v5395_v45 = vadd.f32 %v5394_v11, %v5146_v55  ;;  %v5401_v3 = vmax.f32 %v5350_v61, 0.0  ;;  %v5403_v17 = vmax.f32 %v5393_v20, 0.0  ;;  %v7542_v38 = vld [vmem:[%s8670_s7 + $0x8] sm:$0xff]   ;;  %v7543_v55 = vld [vmem:[%s8670_s7] sm:$0xff]   ;;  %v6323_v1 = vld [vmem:[#allocation16 + $0x3] ss:$0 sm:$0xff] }
0x1da4   :  { %v6322_v61 = vld [vmem:[%s8682_s19 + $0x3] ss:$0 sm:$0xff] }
0x1da5   :  { %v5402_v12 = vmax.f32 %v5352_v4, 0.0  ;;  %v5404_v60 = vmax.f32 %v5395_v45, 0.0  ;;  %v5405_v40 = vpack.c.bf16 %v5401_v3, %v5397_v9  ;;  %v5407_v41 = vpack.c.bf16 %v5403_v17, %v5399_v14  ;;  %v6324_v3 = vld [vmem:[%s8671_s8] ss:$0 sm:$0xff] }
0x1da7   :  { %v5406_v13 = vpack.c.bf16 %v5402_v12, %v5398_v7  ;;  %v5408_v2 = vpack.c.bf16 %v5404_v60, %v5400_v46 }
0x1da9   :  { %5639 = vmatprep.mubr.bf16.mxu1 %v5406_v13  ;;  %5680 = vmatprep.mubr.bf16.mxu0 %v5408_v2 }
0x1daa   :  { %5640 = vmatmul.mubr.bf16.vlgmr.msra.gmra.mxu1 %v5405_v40  ;;  %5681 = vmatmul.mubr.bf16.vlgmr.msra.gmra.mxu0 %v5407_v41 }
0x1dab   :  { %6980 = vmatprep.mubr.msk.bf16.mxu1 %vm7863_vm0, %v7862_v0  ;;  %6965 = vmatpush3.bf16.msra.mxu1 %v7536_v6 }
0x1dac   :  { %6966 = vmatprep.subr.bf16.mxu1 %v7862_v0 }
0x1e6a   :  { %v6623_v8 = vpop.f32.mrf.mxu1  ;;  %v6645_v42 = vpop.f32.mrf.mxu0 }
0x1e6c   :  { %v6624_v43 = vpop.f32.mrf.mxu1  ;;  %v6646_v50 = vpop.f32.mrf.mxu0 }
0x1e6d   :  { %v6625_v57 = vadd.f32 %v6624_v43, %v6623_v8  ;;  %v6647_v22 = vadd.f32 %v6646_v50, %v6645_v42 }
0x1e6e   :  { %v6626_v31 = vpop.f32.mrf.mxu1  ;;  %v6648_v23 = vpop.f32.mrf.mxu0 }
0x1e6f   :  { %v5642_v24 = vadd.f32 %v6625_v57, %v6289_v36 }
0x1e70   :  { %v6627_v25 = vpop.f32.mrf.mxu1  ;;  %v6649_v26 = vpop.f32.mrf.mxu0 }
0x1e71   :  { %v5683_v10 = vadd.f32 %v6647_v22, %v5642_v24  ;;  %v6628_v27 = vadd.f32 %v6627_v25, %v6626_v31  ;;  %v6650_v30 = vadd.f32 %v6649_v26, %v6648_v23 }
0x1e73   :  { %v5645_v34 = vadd.f32 %v6628_v27, %v6289_v36  ;;  %v5689_v29 = vadd.f32 %v5683_v10, %v8602_v5 }
0x1e75   :  { %v5686_v35 = vadd.f32 %v6650_v30, %v5645_v34  ;;  %5691 = vadd.xlane.f32.xlu0 %v5689_v29 }
0x1e77   :  { %v5690_v32 = vadd.f32 %v5686_v35, %v8604_v21  ;;  %v7537_v21 = vld [vmem:[%s8670_s7 + $0x30] sm:$0xff]  }
0x1e78   :  { %6967 = vmatpush3.bf16.msra.mxu1 %v7537_v21 }
0x1e79   :  { %5693 = vadd.xlane.f32.xlu1 %v5690_v32  ;;  %6968 = vmatprep.subr.bf16.mxu1 %v7862_v0 }
0x1e7c   :  { %6969 = vmatpush3.bf16.msra.mxu1 %v7538_v19 }
0x1e7d   :  { %6970 = vmatprep.subr.bf16.mxu1 %v7862_v0 }
0x1e80   :  { %6971 = vmatpush3.bf16.msra.mxu1 %v7539_v52 }
0x1e81   :  { %6972 = vmatprep.subr.bf16.mxu1 %v7862_v0 }
0x1e84   :  { %6973 = vmatpush3.bf16.msra.mxu1 %v7540_v53 }
0x1e85   :  { %6974 = vmatprep.subr.bf16.mxu1 %v7862_v0 }
0x1e88   :  { %6975 = vmatpush3.bf16.msra.mxu1 %v7541_v56 }
0x1e89   :  { %6976 = vmatprep.subr.bf16.mxu1 %v7862_v0 }
0x1e8c   :  { %6977 = vmatpush3.bf16.msra.mxu1 %v7542_v38 }
0x1e8d   :  { %6978 = vmatprep.subr.bf16.mxu1 %v7862_v0 }
0x1e90   :  { %6979 = vmatpush3.bf16.msra.mxu1 %v7543_v55 }
0x1efe   :  { %v5692_v33 = vpop.xlane.xlu0 %5691 }
0x1eff   :  { %v5695_v37 = vmul.f32 0.0078125, %v5692_v33 }
0x1f01   :  { %v5697_v39 = vsub.f32 %v5689_v29, %v5695_v37 }
0x1f02   :  { %v5694_v28 = vpop.xlane.xlu1 %5693 }
0x1f03   :  { %v5696_v44 = vmul.f32 0.0078125, %v5694_v28  ;;  %v5699_v48 = vmul.f32 %v5697_v39, %v5697_v39 }
0x1f05   :  { %v5698_v51 = vsub.f32 %v5690_v32, %v5696_v44  ;;  %5701 = vadd.xlane.f32.xlu0 %v5699_v48 }
0x1f07   :  { %v5700_v5 = vmul.f32 %v5698_v51, %v5698_v51 }
0x1f09   :  { %5703 = vadd.xlane.f32.xlu1 %v5700_v5 }
0x1f8e   :  { %v5702_v54 = vpop.xlane.xlu0 %5701 }
0x1f8f   :  { %v5705_v15 = vmul.f32 0.0078125, %v5702_v54 }
0x1f91   :  { %v5707_v16 = vadd.f32 1e-05, %v5705_v15 }
0x1f92   :  { %v5704_v47 = vpop.xlane.xlu1 %5703 }
0x1f93   :  { %7620 = vrsqrt.f32 %v5707_v16  ;;  %v5706_v18 = vmul.f32 0.0078125, %v5704_v47 }
0x1f95   :  { %v5708_v49 = vadd.f32 1e-05, %v5706_v18 }
0x1f97   :  { %7622 = vrsqrt.f32 %v5708_v49 }
0x1fa0   :  { %v7621_v58 = vpop.eup %7620 }
0x1fa1   :  { %v5711_v59 = vmul.f32 %v7621_v58, %v5697_v39 }
0x1fa3   :  { %v5719_v63 = vmul.f32 %v6322_v61, %v5711_v59 }
0x1fa4   :  { %v7623_v20 = vpop.eup %7622 }
0x1fa5   :  { %v5712_v62 = vmul.f32 %v7623_v20, %v5698_v51  ;;  %v5727_v11 = vadd.f32 %v6323_v1, %v5719_v63 }
0x1fa7   :  { %v5720_v0 = vmul.f32 %v6322_v61, %v5712_v62 }
0x1fa9   :  { %v5728_v4 = vadd.f32 %v6323_v1, %v5720_v0 }
0x1fab   :  { %v5729_v45 = vpack.c.bf16 %v5728_v4, %v5727_v11 }
0x1fad   :  { %6981 = vmatmul.mubr.bf16.vlgmr.msra.gmra.mxu1 %v5729_v45 }
0x206d   :  { %v5835_v17 = vpop.f32.mrf.mxu1 }
0x206e   :  { %v5836_v7 = vadd.f32 %v6324_v3, %v5835_v17 }
0x206f   :  { %v6982_v46 = vpop.f32.mrf.mxu1 }
0x2070   :  { %5842 = vst [vmem:[%s8684_s21] sm:$0xff] %v5836_v7 }
0x2071   :  { %v5838_v12 = vpop.f32.mrf.mxu1 }
0x2072   :  { %v5839_v60 = vadd.f32 %v6324_v3, %v5838_v12 }
0x2073   :  { %v6983_v9 = vpop.f32.mrf.mxu1 }
0x2074   :  { %5843 = vst [vmem:[%s8684_s21 + $0x8] sm:$0xff] %v5839_v60 }
0x2075   :  { %5848 = vsyncpa [#allocation3], 1 }
0x2076   :  { %5849 = vsyncpa [#allocation5], 1 }
0x2077   :  { %5850 = vsyncpa [#allocation8], 1 }
0x2078   :  { %5851 = vsyncpa [#allocation11], 1 }
0x2079   :  { %5852 = vsyncpa [#allocation14], 1 }
0x207a   :  { %5853 = vsyncpa [#allocation17], 1 }

</bundles_post_ra>
